<compile_context>
chip_gen: v7x
topology: tpu7x:2x2x1
jax: 0.10.0
libtpu: 0.0.40
codegen_flags: <defaults>
</compile_context>

<pallas_src>
import numpy as np

import jax
import jax.numpy as jnp
from jax.experimental import pallas as pl
from jax.experimental.pallas import tpu as pltpu

_LEAKY_SLOPE = 0.2
_LANEW = 256  # slab lane width: layer-1 gather needs 256 columns, everything else is narrower

# (spatial_in, rows_in_per_sample, C_in, C_out): 16x16x1 -> 8x8x16 -> 4x4x32 -> 2x2x64 -> 1x1x128
_LAYER_CFG = ((16, 256, 1, 16), (8, 64, 16, 32), (4, 16, 32, 64), (2, 8, 64, 128))


def _round8(n):
    return -(-n // 8) * 8


# ------------------------- trace-time constant builders -------------------------


def _build_gather(H, n_in_rows, m_pad):
    """Per-sample 0/1 gather realizing im2col of a 3x3 / stride-2 / pad-1 conv on an HxH input.

    The input activation is an (n_in_rows, C_in) matrix whose first H*H rows are the spatial
    positions in (h, w) order (any extra rows are zeros).  For valid tap t = ky*3+kx, block
    G[i*m_pad:(i+1)*m_pad] maps output position (ho, wo) to source row (2ho+ky-1, 2wo+kx-1);
    out-of-image source positions stay zero rows (== zero padding).  Tap blocks are padded to
    m_pad (multiple of 8) rows so in-kernel slices are sublane aligned.
    """
    Ho = H // 2
    blocks, taps = [], []
    for ky in range(3):
        for kx in range(3):
            g = np.zeros((m_pad, n_in_rows), np.float32)
            hit = False
            for ho in range(Ho):
                hi = 2 * ho + ky - 1
                if not 0 <= hi < H:
                    continue
                for wo in range(Ho):
                    wi = 2 * wo + kx - 1
                    if 0 <= wi < H:
                        g[ho * Ho + wo, hi * H + wi] = 1.0
                        hit = True
            if hit:
                blocks.append(g)
                taps.append(ky * 3 + kx)
    return np.concatenate(blocks, axis=0), taps


def pack_constants(params):
    """One-time packing (outside jit) of gathers + packed weights into a single bf16 slab.

    Returns (slab, layout); layout holds static row offsets used for in-kernel ref slicing.
    Exact in bf16 for the 0/1 gathers; weights round to bf16 (MXU operand dtype).
    """
    segs, layers, off = [], [], 0

    def add(arr):
        nonlocal off
        arr = np.asarray(arr, np.float32)
        rpad = _round8(arr.shape[0])
        seg = np.zeros((rpad, _LANEW), np.float32)
        seg[: arr.shape[0], : arr.shape[1]] = arr
        segs.append(seg)
        start = off
        off += rpad
        return start

    for (H, n_in, cin, cout), w in zip(_LAYER_CFG, params["conv_ws"]):
        m_pad = _round8((H // 2) ** 2)
        g, taps = _build_gather(H, n_in, m_pad)
        wp = np.asarray(w, np.float32).reshape(9, cin, cout)[list(taps)]
        wp = wp.reshape(len(taps) * cin, cout)               # rows ordered (valid tap, cin)
        layers.append(dict(
            g_off=add(g), g_rows=g.shape[0], g_cols=n_in,
            w_off=add(wp), w_rows=wp.shape[0], w_cols=cout,
            ntaps=len(taps), m_pad=m_pad, cin=cin, cout=cout))
    lw_off = add(np.asarray(params["lin_w"], np.float32))    # (128, 1) head weight
    slab = jnp.asarray(np.concatenate(segs, axis=0), dtype=jnp.bfloat16)
    return slab, dict(layers=layers, lw_off=lw_off)


# ------------------------------ fused Pallas kernel ------------------------------


def _make_kernel(B, layout):
    layers = layout["layers"]
    lw_off = layout["lw_off"]
    l1, rest = layers[0], layers[1:]

    def leaky(x):
        return jnp.maximum(x, _LEAKY_SLOPE * x)              # one VALU op, f32

    def kernel(img_ref, c_ref, lb_ref, out_ref):
        def g_of(d):
            return c_ref[d["g_off"]:d["g_off"] + d["g_rows"], 0:d["g_cols"]]

        def w_of(d):
            return c_ref[d["w_off"]:d["w_off"] + d["w_rows"], 0:d["w_cols"]]

        # Constant slices hoisted out of the batch loop (loaded once, reused per sample).
        g1 = g_of(l1)                                        # (9*64, 256) bf16
        w1 = w_of(l1).astype(jnp.float32)                    # (9, 16) tap rows, f32
        gws = [(g_of(d), w_of(d), d) for d in rest]
        lw = c_ref[lw_off:lw_off + 128, 0:1]                 # (128, 1) bf16
        bias = lb_ref[0, 0]

        for b in range(B):                                   # B=2: tiny static unroll
            # ---- layer 1 (C_in=1): gather matvec + per-tap broadcast outer products (VPU) ----
            xb = img_ref[b].astype(jnp.bfloat16)             # (256, 1)
            xa = jnp.dot(g1, xb, preferred_element_type=jnp.float32)      # (9*64, 1) f32
            m1 = l1["m_pad"]
            acc = xa[0:m1, :] * w1[0:1, :]
            for i in range(1, l1["ntaps"]):
                acc = acc + xa[i * m1:(i + 1) * m1, :] * w1[i:i + 1, :]
            a = leaky(acc).astype(jnp.bfloat16)              # (64, 16)

            # ---- layers 2..4: one gather matmul -> lane-concat im2col -> ONE big-K dot ----
            for g, w, d in gws:
                xa = jnp.dot(g, a, preferred_element_type=jnp.float32)    # (ntaps*m_pad, cin)
                m = d["m_pad"]
                p = jnp.concatenate(
                    [xa[i * m:(i + 1) * m, :] for i in range(d["ntaps"])], axis=1)
                conv = jnp.dot(p.astype(jnp.bfloat16), w,
                               preferred_element_type=jnp.float32)        # (m_pad, cout)
                a = leaky(conv).astype(jnp.bfloat16)

            # ---- head: Linear(128 -> 1) + numerically stable sigmoid (tanh form, EUP) ----
            feat = a[0:1, :]                                 # row 0 == the 1x1x128 features
            logit = jnp.dot(feat, lw, preferred_element_type=jnp.float32) + bias
            out_ref[b:b + 1, :] = 0.5 * (jnp.tanh(0.5 * logit) + 1.0)

    return kernel


# --------------------------------- forward pass ----------------------------------


def make_forward(layout):
    def forward(images_nchw, const_slab, lin_b):
        B = images_nchw.shape[0]
        img = images_nchw.reshape(B, 256, 1)                 # free relabel: rows = (h*16 + w)
        vmem = pl.BlockSpec(memory_space=pltpu.MemorySpace.VMEM)
        smem = pl.BlockSpec(memory_space=pltpu.MemorySpace.SMEM)
        return pl.pallas_call(
            _make_kernel(B, layout),
            out_shape=jax.ShapeDtypeStruct((B, 1), jnp.float32),
            in_specs=[vmem, vmem, smem],
            out_specs=vmem,
        )(img, const_slab, lin_b)
    return forward


# ------------------------------ params & reference -------------------------------


def init_params(key):
    """Deterministic synthetic parameters matching the module's shapes (f32, HWIO)."""
    channels = [(cin, cout) for (_, _, cin, cout) in _LAYER_CFG]
    keys = jax.random.split(key, len(channels) + 2)
    conv_ws = []
    for k, (cin, cout) in zip(keys[: len(channels)], channels):
        scale = 1.0 / jnp.sqrt(jnp.float32(9 * cin))
        conv_ws.append(scale * jax.random.normal(k, (3, 3, cin, cout), jnp.float32))
    lin_w = (1.0 / jnp.sqrt(128.0)) * jax.random.normal(keys[-2], (128, 1), jnp.float32)
    lin_b = (1.0 / jnp.sqrt(128.0)) * jax.random.normal(keys[-1], (1, 1), jnp.float32)
    return {"conv_ws": conv_ws, "lin_w": lin_w, "lin_b": lin_b}


def _reference_forward(images_nchw, params):
    """Pure-XLA f32 reference (independent path) for a tolerance check."""
    x = jnp.transpose(images_nchw, (0, 2, 3, 1)).astype(jnp.float32)
    for w in params["conv_ws"]:
        x = jax.lax.conv_general_dilated(
            x, w, window_strides=(2, 2), padding=((1, 1), (1, 1)),
            dimension_numbers=("NHWC", "HWIO", "NHWC"))
        x = jnp.where(x >= 0, x, _LEAKY_SLOPE * x)
    feat = x.reshape(x.shape[0], -1)                         # 1x1 spatial -> (B, 128)
    logit = feat @ params["lin_w"] + params["lin_b"].reshape(1, 1)
    return jax.nn.sigmoid(logit)


# ------------------------------------- main --------------------------------------


if __name__ == "__main__":
    key = jax.random.PRNGKey(0)
    k_img, k_par = jax.random.split(key)
    images = jax.random.normal(k_img, (2, 1, 16, 16), jnp.float32)   # NCHW like PyTorch
    params = init_params(k_par)

    const_slab, layout = pack_constants(params)              # one-time packing, outside jit
    lin_b = jnp.asarray(np.asarray(params["lin_b"], np.float32).reshape(1, 1))

    fwd = jax.jit(make_forward(layout))
    out = jax.block_until_ready(fwd(images, const_slab, lin_b))

    assert out.shape == (2, 1), out.shape
    assert bool(jnp.all(jnp.isfinite(out)))
    assert bool(jnp.all((out >= 0.0) & (out <= 1.0)))

    ref = _reference_forward(images, params)
    assert bool(jnp.max(jnp.abs(out - ref)) < 5e-2), (out, ref)      # bf16-operand tolerance

    print("KERNEL_OK")
</pallas_src>

<mosaic_0001>
module attributes {stable_mosaic.version = 11 : i64} {
  func.func @kernel(%arg0: memref<2x256x1xf32, #tpu.memory_space<vmem>>, %arg1: memref<1656x256xbf16, #tpu.memory_space<vmem>>, %arg2: memref<1x1xf32, #tpu.memory_space<smem>>, %arg3: memref<2x1xf32, #tpu.memory_space<vmem>>) attributes {dimension_semantics = [], scalar_prefetch = 0 : i64, scratch_operands = 0 : i64, tpu.core_type = #tpu.core_type<tc>} {
    %c0 = arith.constant 0 : index
    %c0_0 = arith.constant 0 : index
    %0 = vector.load %arg1[%c0, %c0_0] : memref<1656x256xbf16, #tpu.memory_space<vmem>>, vector<576x256xbf16>
    %c576 = arith.constant 576 : index
    %c0_1 = arith.constant 0 : index
    %1 = vector.load %arg1[%c576, %c0_1] : memref<1656x256xbf16, #tpu.memory_space<vmem>>, vector<9x16xbf16>
    %2 = arith.extf %1 : vector<9x16xbf16> to vector<9x16xf32>
    %c592 = arith.constant 592 : index
    %c0_2 = arith.constant 0 : index
    %3 = vector.load %arg1[%c592, %c0_2] : memref<1656x256xbf16, #tpu.memory_space<vmem>>, vector<144x64xbf16>
    %c736 = arith.constant 736 : index
    %c0_3 = arith.constant 0 : index
    %4 = vector.load %arg1[%c736, %c0_3] : memref<1656x256xbf16, #tpu.memory_space<vmem>>, vector<144x32xbf16>
    %c880 = arith.constant 880 : index
    %c0_4 = arith.constant 0 : index
    %5 = vector.load %arg1[%c880, %c0_4] : memref<1656x256xbf16, #tpu.memory_space<vmem>>, vector<72x16xbf16>
    %c952 = arith.constant 952 : index
    %c0_5 = arith.constant 0 : index
    %6 = vector.load %arg1[%c952, %c0_5] : memref<1656x256xbf16, #tpu.memory_space<vmem>>, vector<288x64xbf16>
    %c1240 = arith.constant 1240 : index
    %c0_6 = arith.constant 0 : index
    %7 = vector.load %arg1[%c1240, %c0_6] : memref<1656x256xbf16, #tpu.memory_space<vmem>>, vector<32x8xbf16>
    %c1272 = arith.constant 1272 : index
    %c0_7 = arith.constant 0 : index
    %8 = vector.load %arg1[%c1272, %c0_7] : memref<1656x256xbf16, #tpu.memory_space<vmem>>, vector<256x128xbf16>
    %c1528 = arith.constant 1528 : index
    %c0_8 = arith.constant 0 : index
    %9 = vector.load %arg1[%c1528, %c0_8] : memref<1656x256xbf16, #tpu.memory_space<vmem>>, vector<128x1xbf16>
    %c0_9 = arith.constant 0 : index
    %c0_10 = arith.constant 0 : index
    %10 = memref.load %arg2[%c0_9, %c0_10] : memref<1x1xf32, #tpu.memory_space<smem>>
    %c0_11 = arith.constant 0 : index
    %c0_12 = arith.constant 0 : index
    %c0_13 = arith.constant 0 : index
    %11 = vector.load %arg0[%c0_11, %c0_12, %c0_13] : memref<2x256x1xf32, #tpu.memory_space<vmem>>, vector<1x256x1xf32>
    %12 = vector.shape_cast %11 : vector<1x256x1xf32> to vector<256x1xf32>
    %13 = arith.truncf %12 : vector<256x1xf32> to vector<256x1xbf16>
    %cst = arith.constant dense<0.000000e+00> : vector<576x1xf32>
    %14 = tpu.matmul %0, %13, %cst {dimension_numbers = #tpu.dot_dimension_numbers<[1], [0], [0], [1], [0, 0, 1, 1], [], []>} : vector<576x256xbf16>, vector<256x1xbf16>, vector<576x1xf32> -> vector<576x1xf32>
    %15 = vector.extract_strided_slice %14 {offsets = [0, 0], sizes = [64, 1], strides = [1, 1]} : vector<576x1xf32> to vector<64x1xf32>
    %16 = vector.extract_strided_slice %2 {offsets = [0, 0], sizes = [1, 16], strides = [1, 1]} : vector<9x16xf32> to vector<1x16xf32>
    %17 = vector.broadcast %15 : vector<64x1xf32> to vector<64x16xf32>
    %18 = vector.broadcast %16 : vector<1x16xf32> to vector<64x16xf32>
    %19 = arith.mulf %17, %18 : vector<64x16xf32>
    %20 = vector.extract_strided_slice %14 {offsets = [64, 0], sizes = [64, 1], strides = [1, 1]} : vector<576x1xf32> to vector<64x1xf32>
    %21 = vector.extract_strided_slice %2 {offsets = [1, 0], sizes = [1, 16], strides = [1, 1]} : vector<9x16xf32> to vector<1x16xf32>
    %22 = vector.broadcast %20 : vector<64x1xf32> to vector<64x16xf32>
    %23 = vector.broadcast %21 : vector<1x16xf32> to vector<64x16xf32>
    %24 = arith.mulf %22, %23 : vector<64x16xf32>
    %25 = arith.addf %19, %24 : vector<64x16xf32>
    %26 = vector.extract_strided_slice %14 {offsets = [128, 0], sizes = [64, 1], strides = [1, 1]} : vector<576x1xf32> to vector<64x1xf32>
    %27 = vector.extract_strided_slice %2 {offsets = [2, 0], sizes = [1, 16], strides = [1, 1]} : vector<9x16xf32> to vector<1x16xf32>
    %28 = vector.broadcast %26 : vector<64x1xf32> to vector<64x16xf32>
    %29 = vector.broadcast %27 : vector<1x16xf32> to vector<64x16xf32>
    %30 = arith.mulf %28, %29 : vector<64x16xf32>
    %31 = arith.addf %25, %30 : vector<64x16xf32>
    %32 = vector.extract_strided_slice %14 {offsets = [192, 0], sizes = [64, 1], strides = [1, 1]} : vector<576x1xf32> to vector<64x1xf32>
    %33 = vector.extract_strided_slice %2 {offsets = [3, 0], sizes = [1, 16], strides = [1, 1]} : vector<9x16xf32> to vector<1x16xf32>
    %34 = vector.broadcast %32 : vector<64x1xf32> to vector<64x16xf32>
    %35 = vector.broadcast %33 : vector<1x16xf32> to vector<64x16xf32>
    %36 = arith.mulf %34, %35 : vector<64x16xf32>
    %37 = arith.addf %31, %36 : vector<64x16xf32>
    %38 = vector.extract_strided_slice %14 {offsets = [256, 0], sizes = [64, 1], strides = [1, 1]} : vector<576x1xf32> to vector<64x1xf32>
    %39 = vector.extract_strided_slice %2 {offsets = [4, 0], sizes = [1, 16], strides = [1, 1]} : vector<9x16xf32> to vector<1x16xf32>
    %40 = vector.broadcast %38 : vector<64x1xf32> to vector<64x16xf32>
    %41 = vector.broadcast %39 : vector<1x16xf32> to vector<64x16xf32>
    %42 = arith.mulf %40, %41 : vector<64x16xf32>
    %43 = arith.addf %37, %42 : vector<64x16xf32>
    %44 = vector.extract_strided_slice %14 {offsets = [320, 0], sizes = [64, 1], strides = [1, 1]} : vector<576x1xf32> to vector<64x1xf32>
    %45 = vector.extract_strided_slice %2 {offsets = [5, 0], sizes = [1, 16], strides = [1, 1]} : vector<9x16xf32> to vector<1x16xf32>
    %46 = vector.broadcast %44 : vector<64x1xf32> to vector<64x16xf32>
    %47 = vector.broadcast %45 : vector<1x16xf32> to vector<64x16xf32>
    %48 = arith.mulf %46, %47 : vector<64x16xf32>
    %49 = arith.addf %43, %48 : vector<64x16xf32>
    %50 = vector.extract_strided_slice %14 {offsets = [384, 0], sizes = [64, 1], strides = [1, 1]} : vector<576x1xf32> to vector<64x1xf32>
    %51 = vector.extract_strided_slice %2 {offsets = [6, 0], sizes = [1, 16], strides = [1, 1]} : vector<9x16xf32> to vector<1x16xf32>
    %52 = vector.broadcast %50 : vector<64x1xf32> to vector<64x16xf32>
    %53 = vector.broadcast %51 : vector<1x16xf32> to vector<64x16xf32>
    %54 = arith.mulf %52, %53 : vector<64x16xf32>
    %55 = arith.addf %49, %54 : vector<64x16xf32>
    %56 = vector.extract_strided_slice %14 {offsets = [448, 0], sizes = [64, 1], strides = [1, 1]} : vector<576x1xf32> to vector<64x1xf32>
    %57 = vector.extract_strided_slice %2 {offsets = [7, 0], sizes = [1, 16], strides = [1, 1]} : vector<9x16xf32> to vector<1x16xf32>
    %58 = vector.broadcast %56 : vector<64x1xf32> to vector<64x16xf32>
    %59 = vector.broadcast %57 : vector<1x16xf32> to vector<64x16xf32>
    %60 = arith.mulf %58, %59 : vector<64x16xf32>
    %61 = arith.addf %55, %60 : vector<64x16xf32>
    %62 = vector.extract_strided_slice %14 {offsets = [512, 0], sizes = [64, 1], strides = [1, 1]} : vector<576x1xf32> to vector<64x1xf32>
    %63 = vector.extract_strided_slice %2 {offsets = [8, 0], sizes = [1, 16], strides = [1, 1]} : vector<9x16xf32> to vector<1x16xf32>
    %64 = vector.broadcast %62 : vector<64x1xf32> to vector<64x16xf32>
    %65 = vector.broadcast %63 : vector<1x16xf32> to vector<64x16xf32>
    %66 = arith.mulf %64, %65 : vector<64x16xf32>
    %67 = arith.addf %61, %66 : vector<64x16xf32>
    %cst_14 = arith.constant 2.000000e-01 : f32
    %68 = vector.broadcast %cst_14 : f32 to vector<64x16xf32>
    %69 = arith.mulf %68, %67 : vector<64x16xf32>
    %70 = arith.maximumf %67, %69 : vector<64x16xf32>
    %71 = arith.truncf %70 : vector<64x16xf32> to vector<64x16xbf16>
    %cst_15 = arith.constant dense<0.000000e+00> : vector<144x16xf32>
    %72 = tpu.matmul %3, %71, %cst_15 {dimension_numbers = #tpu.dot_dimension_numbers<[1], [0], [0], [1], [0, 0, 1, 1], [], []>} : vector<144x64xbf16>, vector<64x16xbf16>, vector<144x16xf32> -> vector<144x16xf32>
    %73 = vector.extract_strided_slice %72 {offsets = [0, 0], sizes = [16, 16], strides = [1, 1]} : vector<144x16xf32> to vector<16x16xf32>
    %74 = vector.extract_strided_slice %72 {offsets = [16, 0], sizes = [16, 16], strides = [1, 1]} : vector<144x16xf32> to vector<16x16xf32>
    %75 = vector.extract_strided_slice %72 {offsets = [32, 0], sizes = [16, 16], strides = [1, 1]} : vector<144x16xf32> to vector<16x16xf32>
    %76 = vector.extract_strided_slice %72 {offsets = [48, 0], sizes = [16, 16], strides = [1, 1]} : vector<144x16xf32> to vector<16x16xf32>
    %77 = vector.extract_strided_slice %72 {offsets = [64, 0], sizes = [16, 16], strides = [1, 1]} : vector<144x16xf32> to vector<16x16xf32>
    %78 = vector.extract_strided_slice %72 {offsets = [80, 0], sizes = [16, 16], strides = [1, 1]} : vector<144x16xf32> to vector<16x16xf32>
    %79 = vector.extract_strided_slice %72 {offsets = [96, 0], sizes = [16, 16], strides = [1, 1]} : vector<144x16xf32> to vector<16x16xf32>
    %80 = vector.extract_strided_slice %72 {offsets = [112, 0], sizes = [16, 16], strides = [1, 1]} : vector<144x16xf32> to vector<16x16xf32>
    %81 = vector.extract_strided_slice %72 {offsets = [128, 0], sizes = [16, 16], strides = [1, 1]} : vector<144x16xf32> to vector<16x16xf32>
    %82 = tpu.concatenate %73, %74, %75, %76, %77, %78, %79, %80, %81 in 1 : vector<16x16xf32>, vector<16x16xf32>, vector<16x16xf32>, vector<16x16xf32>, vector<16x16xf32>, vector<16x16xf32>, vector<16x16xf32>, vector<16x16xf32>, vector<16x16xf32> -> vector<16x144xf32>
    %83 = arith.truncf %82 : vector<16x144xf32> to vector<16x144xbf16>
    %cst_16 = arith.constant dense<0.000000e+00> : vector<16x32xf32>
    %84 = tpu.matmul %83, %4, %cst_16 {dimension_numbers = #tpu.dot_dimension_numbers<[1], [0], [0], [1], [0, 0, 1, 1], [], []>} : vector<16x144xbf16>, vector<144x32xbf16>, vector<16x32xf32> -> vector<16x32xf32>
    %cst_17 = arith.constant 2.000000e-01 : f32
    %85 = vector.broadcast %cst_17 : f32 to vector<16x32xf32>
    %86 = arith.mulf %85, %84 : vector<16x32xf32>
    %87 = arith.maximumf %84, %86 : vector<16x32xf32>
    %88 = arith.truncf %87 : vector<16x32xf32> to vector<16x32xbf16>
    %cst_18 = arith.constant dense<0.000000e+00> : vector<72x32xf32>
    %89 = tpu.matmul %5, %88, %cst_18 {dimension_numbers = #tpu.dot_dimension_numbers<[1], [0], [0], [1], [0, 0, 1, 1], [], []>} : vector<72x16xbf16>, vector<16x32xbf16>, vector<72x32xf32> -> vector<72x32xf32>
    %90 = vector.extract_strided_slice %89 {offsets = [0, 0], sizes = [8, 32], strides = [1, 1]} : vector<72x32xf32> to vector<8x32xf32>
    %91 = vector.extract_strided_slice %89 {offsets = [8, 0], sizes = [8, 32], strides = [1, 1]} : vector<72x32xf32> to vector<8x32xf32>
    %92 = vector.extract_strided_slice %89 {offsets = [16, 0], sizes = [8, 32], strides = [1, 1]} : vector<72x32xf32> to vector<8x32xf32>
    %93 = vector.extract_strided_slice %89 {offsets = [24, 0], sizes = [8, 32], strides = [1, 1]} : vector<72x32xf32> to vector<8x32xf32>
    %94 = vector.extract_strided_slice %89 {offsets = [32, 0], sizes = [8, 32], strides = [1, 1]} : vector<72x32xf32> to vector<8x32xf32>
    %95 = vector.extract_strided_slice %89 {offsets = [40, 0], sizes = [8, 32], strides = [1, 1]} : vector<72x32xf32> to vector<8x32xf32>
    %96 = vector.extract_strided_slice %89 {offsets = [48, 0], sizes = [8, 32], strides = [1, 1]} : vector<72x32xf32> to vector<8x32xf32>
    %97 = vector.extract_strided_slice %89 {offsets = [56, 0], sizes = [8, 32], strides = [1, 1]} : vector<72x32xf32> to vector<8x32xf32>
    %98 = vector.extract_strided_slice %89 {offsets = [64, 0], sizes = [8, 32], strides = [1, 1]} : vector<72x32xf32> to vector<8x32xf32>
    %99 = tpu.concatenate %90, %91, %92, %93, %94, %95, %96, %97, %98 in 1 : vector<8x32xf32>, vector<8x32xf32>, vector<8x32xf32>, vector<8x32xf32>, vector<8x32xf32>, vector<8x32xf32>, vector<8x32xf32>, vector<8x32xf32>, vector<8x32xf32> -> vector<8x288xf32>
    %100 = arith.truncf %99 : vector<8x288xf32> to vector<8x288xbf16>
    %cst_19 = arith.constant dense<0.000000e+00> : vector<8x64xf32>
    %101 = tpu.matmul %100, %6, %cst_19 {dimension_numbers = #tpu.dot_dimension_numbers<[1], [0], [0], [1], [0, 0, 1, 1], [], []>} : vector<8x288xbf16>, vector<288x64xbf16>, vector<8x64xf32> -> vector<8x64xf32>
    %cst_20 = arith.constant 2.000000e-01 : f32
    %102 = vector.broadcast %cst_20 : f32 to vector<8x64xf32>
    %103 = arith.mulf %102, %101 : vector<8x64xf32>
    %104 = arith.maximumf %101, %103 : vector<8x64xf32>
    %105 = arith.truncf %104 : vector<8x64xf32> to vector<8x64xbf16>
    %cst_21 = arith.constant dense<0.000000e+00> : vector<32x64xf32>
    %106 = tpu.matmul %7, %105, %cst_21 {dimension_numbers = #tpu.dot_dimension_numbers<[1], [0], [0], [1], [0, 0, 1, 1], [], []>} : vector<32x8xbf16>, vector<8x64xbf16>, vector<32x64xf32> -> vector<32x64xf32>
    %107 = vector.extract_strided_slice %106 {offsets = [0, 0], sizes = [8, 64], strides = [1, 1]} : vector<32x64xf32> to vector<8x64xf32>
    %108 = vector.extract_strided_slice %106 {offsets = [8, 0], sizes = [8, 64], strides = [1, 1]} : vector<32x64xf32> to vector<8x64xf32>
    %109 = vector.extract_strided_slice %106 {offsets = [16, 0], sizes = [8, 64], strides = [1, 1]} : vector<32x64xf32> to vector<8x64xf32>
    %110 = vector.extract_strided_slice %106 {offsets = [24, 0], sizes = [8, 64], strides = [1, 1]} : vector<32x64xf32> to vector<8x64xf32>
    %111 = tpu.concatenate %107, %108, %109, %110 in 1 : vector<8x64xf32>, vector<8x64xf32>, vector<8x64xf32>, vector<8x64xf32> -> vector<8x256xf32>
    %112 = arith.truncf %111 : vector<8x256xf32> to vector<8x256xbf16>
    %cst_22 = arith.constant dense<0.000000e+00> : vector<8x128xf32>
    %113 = tpu.matmul %112, %8, %cst_22 {dimension_numbers = #tpu.dot_dimension_numbers<[1], [0], [0], [1], [0, 0, 1, 1], [], []>} : vector<8x256xbf16>, vector<256x128xbf16>, vector<8x128xf32> -> vector<8x128xf32>
    %cst_23 = arith.constant 2.000000e-01 : f32
    %114 = vector.broadcast %cst_23 : f32 to vector<8x128xf32>
    %115 = arith.mulf %114, %113 : vector<8x128xf32>
    %116 = arith.maximumf %113, %115 : vector<8x128xf32>
    %117 = arith.truncf %116 : vector<8x128xf32> to vector<8x128xbf16>
    %118 = vector.extract_strided_slice %117 {offsets = [0, 0], sizes = [1, 128], strides = [1, 1]} : vector<8x128xbf16> to vector<1x128xbf16>
    %cst_24 = arith.constant dense<0.000000e+00> : vector<1x1xf32>
    %119 = tpu.matmul %118, %9, %cst_24 {dimension_numbers = #tpu.dot_dimension_numbers<[1], [0], [0], [1], [0, 0, 1, 1], [], []>} : vector<1x128xbf16>, vector<128x1xbf16>, vector<1x1xf32> -> vector<1x1xf32>
    %120 = vector.broadcast %10 : f32 to vector<1x1xf32>
    %121 = arith.addf %119, %120 : vector<1x1xf32>
    %cst_25 = arith.constant 5.000000e-01 : f32
    %122 = vector.broadcast %cst_25 : f32 to vector<1x1xf32>
    %123 = arith.mulf %122, %121 : vector<1x1xf32>
    %124 = math.tanh %123 : vector<1x1xf32>
    %cst_26 = arith.constant 1.000000e+00 : f32
    %125 = vector.broadcast %cst_26 : f32 to vector<1x1xf32>
    %126 = arith.addf %124, %125 : vector<1x1xf32>
    %cst_27 = arith.constant 5.000000e-01 : f32
    %127 = vector.broadcast %cst_27 : f32 to vector<1x1xf32>
    %128 = arith.mulf %127, %126 : vector<1x1xf32>
    %c0_28 = arith.constant 0 : index
    %c0_29 = arith.constant 0 : index
    %129 = vector.load %arg3[%c0_28, %c0_29] : memref<2x1xf32, #tpu.memory_space<vmem>>, vector<1x1xf32>
    tpu.vector_store %arg3[%c0_28, %c0_29], %128 {strides = array<i32>} : memref<2x1xf32, #tpu.memory_space<vmem>>, vector<1x1xf32>,
    %c1 = arith.constant 1 : index
    %c0_30 = arith.constant 0 : index
    %c0_31 = arith.constant 0 : index
    %130 = vector.load %arg0[%c1, %c0_30, %c0_31] : memref<2x256x1xf32, #tpu.memory_space<vmem>>, vector<1x256x1xf32>
    %131 = vector.shape_cast %130 : vector<1x256x1xf32> to vector<256x1xf32>
    %132 = arith.truncf %131 : vector<256x1xf32> to vector<256x1xbf16>
    %cst_32 = arith.constant dense<0.000000e+00> : vector<576x1xf32>
    %133 = tpu.matmul %0, %132, %cst_32 {dimension_numbers = #tpu.dot_dimension_numbers<[1], [0], [0], [1], [0, 0, 1, 1], [], []>} : vector<576x256xbf16>, vector<256x1xbf16>, vector<576x1xf32> -> vector<576x1xf32>
    %134 = vector.extract_strided_slice %133 {offsets = [0, 0], sizes = [64, 1], strides = [1, 1]} : vector<576x1xf32> to vector<64x1xf32>
    %135 = vector.extract_strided_slice %2 {offsets = [0, 0], sizes = [1, 16], strides = [1, 1]} : vector<9x16xf32> to vector<1x16xf32>
    %136 = vector.broadcast %134 : vector<64x1xf32> to vector<64x16xf32>
    %137 = vector.broadcast %135 : vector<1x16xf32> to vector<64x16xf32>
    %138 = arith.mulf %136, %137 : vector<64x16xf32>
    %139 = vector.extract_strided_slice %133 {offsets = [64, 0], sizes = [64, 1], strides = [1, 1]} : vector<576x1xf32> to vector<64x1xf32>
    %140 = vector.extract_strided_slice %2 {offsets = [1, 0], sizes = [1, 16], strides = [1, 1]} : vector<9x16xf32> to vector<1x16xf32>
    %141 = vector.broadcast %139 : vector<64x1xf32> to vector<64x16xf32>
    %142 = vector.broadcast %140 : vector<1x16xf32> to vector<64x16xf32>
    %143 = arith.mulf %141, %142 : vector<64x16xf32>
    %144 = arith.addf %138, %143 : vector<64x16xf32>
    %145 = vector.extract_strided_slice %133 {offsets = [128, 0], sizes = [64, 1], strides = [1, 1]} : vector<576x1xf32> to vector<64x1xf32>
    %146 = vector.extract_strided_slice %2 {offsets = [2, 0], sizes = [1, 16], strides = [1, 1]} : vector<9x16xf32> to vector<1x16xf32>
    %147 = vector.broadcast %145 : vector<64x1xf32> to vector<64x16xf32>
    %148 = vector.broadcast %146 : vector<1x16xf32> to vector<64x16xf32>
    %149 = arith.mulf %147, %148 : vector<64x16xf32>
    %150 = arith.addf %144, %149 : vector<64x16xf32>
    %151 = vector.extract_strided_slice %133 {offsets = [192, 0], sizes = [64, 1], strides = [1, 1]} : vector<576x1xf32> to vector<64x1xf32>
    %152 = vector.extract_strided_slice %2 {offsets = [3, 0], sizes = [1, 16], strides = [1, 1]} : vector<9x16xf32> to vector<1x16xf32>
    %153 = vector.broadcast %151 : vector<64x1xf32> to vector<64x16xf32>
    %154 = vector.broadcast %152 : vector<1x16xf32> to vector<64x16xf32>
    %155 = arith.mulf %153, %154 : vector<64x16xf32>
    %156 = arith.addf %150, %155 : vector<64x16xf32>
    %157 = vector.extract_strided_slice %133 {offsets = [256, 0], sizes = [64, 1], strides = [1, 1]} : vector<576x1xf32> to vector<64x1xf32>
    %158 = vector.extract_strided_slice %2 {offsets = [4, 0], sizes = [1, 16], strides = [1, 1]} : vector<9x16xf32> to vector<1x16xf32>
    %159 = vector.broadcast %157 : vector<64x1xf32> to vector<64x16xf32>
    %160 = vector.broadcast %158 : vector<1x16xf32> to vector<64x16xf32>
    %161 = arith.mulf %159, %160 : vector<64x16xf32>
    %162 = arith.addf %156, %161 : vector<64x16xf32>
    %163 = vector.extract_strided_slice %133 {offsets = [320, 0], sizes = [64, 1], strides = [1, 1]} : vector<576x1xf32> to vector<64x1xf32>
    %164 = vector.extract_strided_slice %2 {offsets = [5, 0], sizes = [1, 16], strides = [1, 1]} : vector<9x16xf32> to vector<1x16xf32>
    %165 = vector.broadcast %163 : vector<64x1xf32> to vector<64x16xf32>
    %166 = vector.broadcast %164 : vector<1x16xf32> to vector<64x16xf32>
    %167 = arith.mulf %165, %166 : vector<64x16xf32>
    %168 = arith.addf %162, %167 : vector<64x16xf32>
    %169 = vector.extract_strided_slice %133 {offsets = [384, 0], sizes = [64, 1], strides = [1, 1]} : vector<576x1xf32> to vector<64x1xf32>
    %170 = vector.extract_strided_slice %2 {offsets = [6, 0], sizes = [1, 16], strides = [1, 1]} : vector<9x16xf32> to vector<1x16xf32>
    %171 = vector.broadcast %169 : vector<64x1xf32> to vector<64x16xf32>
    %172 = vector.broadcast %170 : vector<1x16xf32> to vector<64x16xf32>
    %173 = arith.mulf %171, %172 : vector<64x16xf32>
    %174 = arith.addf %168, %173 : vector<64x16xf32>
    %175 = vector.extract_strided_slice %133 {offsets = [448, 0], sizes = [64, 1], strides = [1, 1]} : vector<576x1xf32> to vector<64x1xf32>
    %176 = vector.extract_strided_slice %2 {offsets = [7, 0], sizes = [1, 16], strides = [1, 1]} : vector<9x16xf32> to vector<1x16xf32>
    %177 = vector.broadcast %175 : vector<64x1xf32> to vector<64x16xf32>
    %178 = vector.broadcast %176 : vector<1x16xf32> to vector<64x16xf32>
    %179 = arith.mulf %177, %178 : vector<64x16xf32>
    %180 = arith.addf %174, %179 : vector<64x16xf32>
    %181 = vector.extract_strided_slice %133 {offsets = [512, 0], sizes = [64, 1], strides = [1, 1]} : vector<576x1xf32> to vector<64x1xf32>
    %182 = vector.extract_strided_slice %2 {offsets = [8, 0], sizes = [1, 16], strides = [1, 1]} : vector<9x16xf32> to vector<1x16xf32>
    %183 = vector.broadcast %181 : vector<64x1xf32> to vector<64x16xf32>
    %184 = vector.broadcast %182 : vector<1x16xf32> to vector<64x16xf32>
    %185 = arith.mulf %183, %184 : vector<64x16xf32>
    %186 = arith.addf %180, %185 : vector<64x16xf32>
    %cst_33 = arith.constant 2.000000e-01 : f32
    %187 = vector.broadcast %cst_33 : f32 to vector<64x16xf32>
    %188 = arith.mulf %187, %186 : vector<64x16xf32>
    %189 = arith.maximumf %186, %188 : vector<64x16xf32>
    %190 = arith.truncf %189 : vector<64x16xf32> to vector<64x16xbf16>
    %cst_34 = arith.constant dense<0.000000e+00> : vector<144x16xf32>
    %191 = tpu.matmul %3, %190, %cst_34 {dimension_numbers = #tpu.dot_dimension_numbers<[1], [0], [0], [1], [0, 0, 1, 1], [], []>} : vector<144x64xbf16>, vector<64x16xbf16>, vector<144x16xf32> -> vector<144x16xf32>
    %192 = vector.extract_strided_slice %191 {offsets = [0, 0], sizes = [16, 16], strides = [1, 1]} : vector<144x16xf32> to vector<16x16xf32>
    %193 = vector.extract_strided_slice %191 {offsets = [16, 0], sizes = [16, 16], strides = [1, 1]} : vector<144x16xf32> to vector<16x16xf32>
    %194 = vector.extract_strided_slice %191 {offsets = [32, 0], sizes = [16, 16], strides = [1, 1]} : vector<144x16xf32> to vector<16x16xf32>
    %195 = vector.extract_strided_slice %191 {offsets = [48, 0], sizes = [16, 16], strides = [1, 1]} : vector<144x16xf32> to vector<16x16xf32>
    %196 = vector.extract_strided_slice %191 {offsets = [64, 0], sizes = [16, 16], strides = [1, 1]} : vector<144x16xf32> to vector<16x16xf32>
    %197 = vector.extract_strided_slice %191 {offsets = [80, 0], sizes = [16, 16], strides = [1, 1]} : vector<144x16xf32> to vector<16x16xf32>
    %198 = vector.extract_strided_slice %191 {offsets = [96, 0], sizes = [16, 16], strides = [1, 1]} : vector<144x16xf32> to vector<16x16xf32>
    %199 = vector.extract_strided_slice %191 {offsets = [112, 0], sizes = [16, 16], strides = [1, 1]} : vector<144x16xf32> to vector<16x16xf32>
    %200 = vector.extract_strided_slice %191 {offsets = [128, 0], sizes = [16, 16], strides = [1, 1]} : vector<144x16xf32> to vector<16x16xf32>
    %201 = tpu.concatenate %192, %193, %194, %195, %196, %197, %198, %199, %200 in 1 : vector<16x16xf32>, vector<16x16xf32>, vector<16x16xf32>, vector<16x16xf32>, vector<16x16xf32>, vector<16x16xf32>, vector<16x16xf32>, vector<16x16xf32>, vector<16x16xf32> -> vector<16x144xf32>
    %202 = arith.truncf %201 : vector<16x144xf32> to vector<16x144xbf16>
    %cst_35 = arith.constant dense<0.000000e+00> : vector<16x32xf32>
    %203 = tpu.matmul %202, %4, %cst_35 {dimension_numbers = #tpu.dot_dimension_numbers<[1], [0], [0], [1], [0, 0, 1, 1], [], []>} : vector<16x144xbf16>, vector<144x32xbf16>, vector<16x32xf32> -> vector<16x32xf32>
    %cst_36 = arith.constant 2.000000e-01 : f32
    %204 = vector.broadcast %cst_36 : f32 to vector<16x32xf32>
    %205 = arith.mulf %204, %203 : vector<16x32xf32>
    %206 = arith.maximumf %203, %205 : vector<16x32xf32>
    %207 = arith.truncf %206 : vector<16x32xf32> to vector<16x32xbf16>
    %cst_37 = arith.constant dense<0.000000e+00> : vector<72x32xf32>
    %208 = tpu.matmul %5, %207, %cst_37 {dimension_numbers = #tpu.dot_dimension_numbers<[1], [0], [0], [1], [0, 0, 1, 1], [], []>} : vector<72x16xbf16>, vector<16x32xbf16>, vector<72x32xf32> -> vector<72x32xf32>
    %209 = vector.extract_strided_slice %208 {offsets = [0, 0], sizes = [8, 32], strides = [1, 1]} : vector<72x32xf32> to vector<8x32xf32>
    %210 = vector.extract_strided_slice %208 {offsets = [8, 0], sizes = [8, 32], strides = [1, 1]} : vector<72x32xf32> to vector<8x32xf32>
    %211 = vector.extract_strided_slice %208 {offsets = [16, 0], sizes = [8, 32], strides = [1, 1]} : vector<72x32xf32> to vector<8x32xf32>
    %212 = vector.extract_strided_slice %208 {offsets = [24, 0], sizes = [8, 32], strides = [1, 1]} : vector<72x32xf32> to vector<8x32xf32>
    %213 = vector.extract_strided_slice %208 {offsets = [32, 0], sizes = [8, 32], strides = [1, 1]} : vector<72x32xf32> to vector<8x32xf32>
    %214 = vector.extract_strided_slice %208 {offsets = [40, 0], sizes = [8, 32], strides = [1, 1]} : vector<72x32xf32> to vector<8x32xf32>
    %215 = vector.extract_strided_slice %208 {offsets = [48, 0], sizes = [8, 32], strides = [1, 1]} : vector<72x32xf32> to vector<8x32xf32>
    %216 = vector.extract_strided_slice %208 {offsets = [56, 0], sizes = [8, 32], strides = [1, 1]} : vector<72x32xf32> to vector<8x32xf32>
    %217 = vector.extract_strided_slice %208 {offsets = [64, 0], sizes = [8, 32], strides = [1, 1]} : vector<72x32xf32> to vector<8x32xf32>
    %218 = tpu.concatenate %209, %210, %211, %212, %213, %214, %215, %216, %217 in 1 : vector<8x32xf32>, vector<8x32xf32>, vector<8x32xf32>, vector<8x32xf32>, vector<8x32xf32>, vector<8x32xf32>, vector<8x32xf32>, vector<8x32xf32>, vector<8x32xf32> -> vector<8x288xf32>
    %219 = arith.truncf %218 : vector<8x288xf32> to vector<8x288xbf16>
    %cst_38 = arith.constant dense<0.000000e+00> : vector<8x64xf32>
    %220 = tpu.matmul %219, %6, %cst_38 {dimension_numbers = #tpu.dot_dimension_numbers<[1], [0], [0], [1], [0, 0, 1, 1], [], []>} : vector<8x288xbf16>, vector<288x64xbf16>, vector<8x64xf32> -> vector<8x64xf32>
    %cst_39 = arith.constant 2.000000e-01 : f32
    %221 = vector.broadcast %cst_39 : f32 to vector<8x64xf32>
    %222 = arith.mulf %221, %220 : vector<8x64xf32>
    %223 = arith.maximumf %220, %222 : vector<8x64xf32>
    %224 = arith.truncf %223 : vector<8x64xf32> to vector<8x64xbf16>
    %cst_40 = arith.constant dense<0.000000e+00> : vector<32x64xf32>
    %225 = tpu.matmul %7, %224, %cst_40 {dimension_numbers = #tpu.dot_dimension_numbers<[1], [0], [0], [1], [0, 0, 1, 1], [], []>} : vector<32x8xbf16>, vector<8x64xbf16>, vector<32x64xf32> -> vector<32x64xf32>
    %226 = vector.extract_strided_slice %225 {offsets = [0, 0], sizes = [8, 64], strides = [1, 1]} : vector<32x64xf32> to vector<8x64xf32>
    %227 = vector.extract_strided_slice %225 {offsets = [8, 0], sizes = [8, 64], strides = [1, 1]} : vector<32x64xf32> to vector<8x64xf32>
    %228 = vector.extract_strided_slice %225 {offsets = [16, 0], sizes = [8, 64], strides = [1, 1]} : vector<32x64xf32> to vector<8x64xf32>
    %229 = vector.extract_strided_slice %225 {offsets = [24, 0], sizes = [8, 64], strides = [1, 1]} : vector<32x64xf32> to vector<8x64xf32>
    %230 = tpu.concatenate %226, %227, %228, %229 in 1 : vector<8x64xf32>, vector<8x64xf32>, vector<8x64xf32>, vector<8x64xf32> -> vector<8x256xf32>
    %231 = arith.truncf %230 : vector<8x256xf32> to vector<8x256xbf16>
    %cst_41 = arith.constant dense<0.000000e+00> : vector<8x128xf32>
    %232 = tpu.matmul %231, %8, %cst_41 {dimension_numbers = #tpu.dot_dimension_numbers<[1], [0], [0], [1], [0, 0, 1, 1], [], []>} : vector<8x256xbf16>, vector<256x128xbf16>, vector<8x128xf32> -> vector<8x128xf32>
    %cst_42 = arith.constant 2.000000e-01 : f32
    %233 = vector.broadcast %cst_42 : f32 to vector<8x128xf32>
    %234 = arith.mulf %233, %232 : vector<8x128xf32>
    %235 = arith.maximumf %232, %234 : vector<8x128xf32>
    %236 = arith.truncf %235 : vector<8x128xf32> to vector<8x128xbf16>
    %237 = vector.extract_strided_slice %236 {offsets = [0, 0], sizes = [1, 128], strides = [1, 1]} : vector<8x128xbf16> to vector<1x128xbf16>
    %cst_43 = arith.constant dense<0.000000e+00> : vector<1x1xf32>
    %238 = tpu.matmul %237, %9, %cst_43 {dimension_numbers = #tpu.dot_dimension_numbers<[1], [0], [0], [1], [0, 0, 1, 1], [], []>} : vector<1x128xbf16>, vector<128x1xbf16>, vector<1x1xf32> -> vector<1x1xf32>
    %239 = vector.broadcast %10 : f32 to vector<1x1xf32>
    %240 = arith.addf %238, %239 : vector<1x1xf32>
    %cst_44 = arith.constant 5.000000e-01 : f32
    %241 = vector.broadcast %cst_44 : f32 to vector<1x1xf32>
    %242 = arith.mulf %241, %240 : vector<1x1xf32>
    %243 = math.tanh %242 : vector<1x1xf32>
    %cst_45 = arith.constant 1.000000e+00 : f32
    %244 = vector.broadcast %cst_45 : f32 to vector<1x1xf32>
    %245 = arith.addf %243, %244 : vector<1x1xf32>
    %cst_46 = arith.constant 5.000000e-01 : f32
    %246 = vector.broadcast %cst_46 : f32 to vector<1x1xf32>
    %247 = arith.mulf %246, %245 : vector<1x1xf32>
    %c1_47 = arith.constant 1 : index
    %c0_48 = arith.constant 0 : index
    %248 = vector.load %arg3[%c1_47, %c0_48] : memref<2x1xf32, #tpu.memory_space<vmem>>, vector<1x1xf32>
    tpu.vector_store %arg3[%c1_47, %c0_48], %247 {strides = array<i32>} : memref<2x1xf32, #tpu.memory_space<vmem>>, vector<1x1xf32>,
    return
  }
}

</mosaic_0001>

<bundles_post_ra>
// kernel: forward.1
= control target key start
LH: loop header
LB: loop body
LE: loop exit
PB: predicated region body
PF: predicated region fallthrough
CT: control target
= control target key end

     0   :  { %9 = vsyncpa [#allocation4], 0  ;;  %s5025_s12 = smov [#allocation3]   ;;  %s5961_s0 = inlined_call_operand.vmem [shape: f32[2,256,1], index: 0, kind: input, shape index: {}]   ;;  %s5962_s1 = inlined_call_operand.hbm [shape: bf16[1656,256], index: 1, kind: input, shape index: {}]   ;;  %s5963_s2 = inlined_call_operand.<no memory space> [shape: f32[1,1], index: 2, kind: input, shape index: {}]   ;;  %s5964_s3 = inlined_call_operand.vmem [shape: f32[2,1], index: 3, kind: output, shape index: {}]  }
   0x1   :  { %s17_s13 = sshll.u32 %s5025_s12, 4  ;;  %s5001_s16 = scalar_lea.hbm %s5962_s1, 26496  ;;  %s18_s13 = int_to_ptr.vmem [resolvable:$true] %s17_s13 }
   0x2   :  { %p5002_p0 = scmp.ne.s32.totalorder %s5962_s1, %s5001_s16  ;;  %p5005_p1 = scmp.lt.u32.totalorder %s5001_s16, %s5962_s1 }
   0x4   :  { %p5007_p2 = pnand %p5005_p1, %p5002_p0 }
   0x6   :  { %5010 = shalt.err (!%p5007_p2)
}
   0x7   :  { %s5011_s21 = scalar_lea.vmem %s18_s13, 26496  ;;  %p5016_p4 = scmp.lt.s32.totalorder %s18_s13, %s18_s13 }
   0x8   :  { %p5012_p3 = scmp.ne.s32.totalorder %s18_s13, %s5011_s21  ;;  %p5017_p5 = scmp.lt.s32.totalorder %s5011_s21, %s5011_s21 }
   0xa   :  { %p5018_p6 = por %p5017_p5, %p5016_p4 }
   0xc   :  { %p5019_p7 = pnand %p5018_p6, %p5012_p3 }
   0xe   :  { %5022 = shalt.err (!%p5019_p7)
}
   0xf   :  { %s5026_s22 = smov 128   ;;  %s5027_s23 = smov 8  }
  0x10   :  { %23 = dma.hbm_to_vmem [thread:$0]  %s5962_s1, 26496, %s18_s13, [#allocation4], %s5026_s22, %s5026_s22, %s5027_s23  }
  0x11   :  { %5023 = dma.done.wait [#allocation4], 26496  }
  0x12   :  { %5024 = vsyncadd [#allocation4], 4294940800  ;;  %v5965_v0 = vmov 0   ;;  %v240_v1 = vld [vmem:[%s5961_s0] sm:$0xff]  ;;  %v241_v2 = vld [vmem:[%s5961_s0 + $0x8] sm:$0xff]  ;;  %vm5030_vm0 = vmmov 0  }
  0x13   :  { %648 = vmatprep.subr.bf16.mxu0 %v5965_v0  ;;  %4571 = vset.pattern.permute.xlu0 %v5965_v0  ;;  %v242_v3 = vld [vmem:[%s5961_s0 + $0x10] sm:$0xff]  ;;  %v272_v4 = vpack.c.bf16 %v241_v2, %v240_v1  ;;  %v243_v5 = vld [vmem:[%s5961_s0 + $0x18] sm:$0xff]  ;;  %v244_v7 = vld [vmem:[%s5961_s0 + $0x20] sm:$0xff]  ;;  %vm1566_vm1 = vcmask 523264   ;;  %s5031_s6 = smov 16   ;;  %s5032_s7 = smov 32  }
  0x14   :  { %4572 = vset.pattern.permute.xlu1 %v5965_v0  ;;  %v273_v6 = vpack.c.bf16 %v243_v5, %v242_v3  ;;  %v245_v8 = vld [vmem:[%s5961_s0 + $0x28] sm:$0xff]  ;;  %v246_v10 = vld [vmem:[%s5961_s0 + $0x30] sm:$0xff]  ;;  %v247_v11 = vld [vmem:[%s5961_s0 + $0x38] sm:$0xff]  ;;  %s5033_s8 = smov 48   ;;  %s5034_s9 = smov 64   ;;  %vm1755_vm2 = vcmask 130048  }
  0x15   :  { %649 = vmatpush1.bf16.msra.mxu0 %v272_v4  ;;  %v274_v9 = vpack.c.bf16 %v245_v8, %v244_v7  ;;  %v275_v12 = vpack.c.bf16 %v247_v11, %v246_v10  ;;  %v248_v13 = vld [vmem:[%s5961_s0 + $0x40] sm:$0xff]  ;;  %v249_v15 = vld [vmem:[%s5961_s0 + $0x48] sm:$0xff]  ;;  %v250_v17 = vld [vmem:[%s5961_s0 + $0x50] sm:$0xff]  ;;  %s5035_s10 = smov 80   ;;  %s5036_s11 = smov 96   ;;  %vm1758_vm3 = vcmask 261120  }
  0x16   :  { %650 = vmatprep.subr.bf16.mxu0 %v5965_v0  ;;  %v4685_v14 = vld [vmem:[#allocation3 + $0x4] ss:$8 sps:$4 sm:$0xff]   ;;  %v276_v16 = vpack.c.bf16 %v249_v15, %v248_v13  ;;  %v251_v18 = vld [vmem:[%s5961_s0 + $0x58] sm:$0xff]  ;;  %v254_v23 = vld [vmem:[%s5961_s0 + $0x70] sm:$0xff]  ;;  %s5037_s12 = smov 112   ;;  %vm1761_vm4 = vcmask 392192  }
  0x17   :  { %680 = vmatprep.mubr.bf16.mxu0 %v4685_v14  ;;  %v277_v19 = vpack.c.bf16 %v251_v18, %v250_v17  ;;  %v252_v20 = vld [vmem:[%s5961_s0 + $0x60] sm:$0xff]  ;;  %v253_v21 = vld [vmem:[%s5961_s0 + $0x68] sm:$0xff]  ;;  %v255_v24 = vld [vmem:[%s5961_s0 + $0x78] sm:$0xff]  ;;  %vm1766_vm5 = vcmask 654336   ;;  %vm1769_vm6 = vcmask 785408   ;;  %vm1772_vm7 = vcmask 916480  }
  0x18   :  { %v278_v22 = vpack.c.bf16 %v253_v21, %v252_v20  ;;  %v279_v25 = vpack.c.bf16 %v255_v24, %v254_v23  ;;  %v256_v26 = vld [vmem:[%s5961_s0 + $0x80] sm:$0xff]  ;;  %v257_v27 = vld [vmem:[%s5961_s0 + $0x88] sm:$0xff]  ;;  %v258_v28 = vld [vmem:[%s5961_s0 + $0x90] sm:$0xff]  ;;  %vm2227_vm8 = vcmask 64512   ;;  %vm2234_vm9 = vcmask 1043456  }
  0x19   :  { %651 = vmatpush1.bf16.msra.mxu0 %v273_v6  ;;  %v259_v29 = vld [vmem:[%s5961_s0 + $0x98] sm:$0xff]  ;;  %v280_v30 = vpack.c.bf16 %v257_v27, %v256_v26  ;;  %v260_v31 = vld [vmem:[%s5961_s0 + $0xa0] sm:$0xff]  ;;  %v261_v33 = vld [vmem:[%s5961_s0 + $0xa8] sm:$0xff]  ;;  %vm2531_vm10 = vcmask 0  }
  0x1a   :  { %652 = vmatprep.subr.bf16.mxu0 %v5965_v0  ;;  %v281_v32 = vpack.c.bf16 %v259_v29, %v258_v28  ;;  %v262_v34 = vld [vmem:[%s5961_s0 + $0xb0] sm:$0xff]  ;;  %v263_v35 = vld [vmem:[%s5961_s0 + $0xb8] sm:$0xff]  ;;  %v282_v36 = vpack.c.bf16 %v261_v33, %v260_v31  ;;  %v264_v37 = vld [vmem:[%s5961_s0 + $0xc0] sm:$0xff] }
  0x1b   :  { %v283_v38 = vpack.c.bf16 %v263_v35, %v262_v34  ;;  %v265_v39 = vld [vmem:[%s5961_s0 + $0xc8] sm:$0xff]  ;;  %v266_v40 = vld [vmem:[%s5961_s0 + $0xd0] sm:$0xff]  ;;  %v267_v41 = vld [vmem:[%s5961_s0 + $0xd8] sm:$0xff] }
  0x1c   :  { %v284_v42 = vpack.c.bf16 %v265_v39, %v264_v37  ;;  %v268_v43 = vld [vmem:[%s5961_s0 + $0xe0] sm:$0xff]  ;;  %v285_v44 = vpack.c.bf16 %v267_v41, %v266_v40  ;;  %v269_v45 = vld [vmem:[%s5961_s0 + $0xe8] sm:$0xff]  ;;  %v270_v46 = vld [vmem:[%s5961_s0 + $0xf0] sm:$0xff] }
  0x1d   :  { %653 = vmatpush1.bf16.msra.mxu0 %v274_v9  ;;  %v271_v47 = vld [vmem:[%s5961_s0 + $0xf8] sm:$0xff]  ;;  %v286_v48 = vpack.c.bf16 %v269_v45, %v268_v43  ;;  %v4683_v50 = vld [vmem:[#allocation3] ss:$8 sps:$4 sm:$0xff]   ;;  %v4689_v53 = vld [vmem:[#allocation3 + $0x24] ss:$8 sps:$4 sm:$0xff]  }
  0x1e   :  { %654 = vmatprep.subr.bf16.mxu0 %v5965_v0  ;;  %v287_v49 = vpack.c.bf16 %v271_v47, %v270_v46  ;;  %v4686_v51 = vld [vmem:[#allocation3 + $0x14] ss:$8 sps:$4 sm:$0xff]   ;;  %v4688_v52 = vld [vmem:[#allocation3 + $0x10] ss:$8 sps:$4 sm:$0xff]   ;;  %v4691_v54 = vld [vmem:[#allocation3 + $0x20] ss:$8 sps:$4 sm:$0xff]  }
  0x1f   :  { %v4692_v55 = vld [vmem:[#allocation3 + $0x34] ss:$8 sps:$4 sm:$0xff]   ;;  %v4694_v56 = vld [vmem:[#allocation3 + $0x30] ss:$8 sps:$4 sm:$0xff]   ;;  %v4695_v57 = vld [vmem:[#allocation3 + $0x44] ss:$8 sps:$4 sm:$0xff]  }
  0x20   :  { %v4697_v58 = vld [vmem:[#allocation3 + $0x40] ss:$8 sps:$4 sm:$0xff]   ;;  %v4698_v59 = vld [vmem:[#allocation3 + $0x54] ss:$8 sps:$4 sm:$0xff]   ;;  %v4700_v60 = vld [vmem:[#allocation3 + $0x50] ss:$8 sps:$4 sm:$0xff]  }
  0x21   :  { %655 = vmatpush1.bf16.msra.mxu0 %v275_v12  ;;  %v4701_v61 = vld [vmem:[#allocation3 + $0x64] ss:$8 sps:$4 sm:$0xff]   ;;  %v4703_v62 = vld [vmem:[#allocation3 + $0x60] ss:$8 sps:$4 sm:$0xff]   ;;  %v4704_v63 = vld [vmem:[#allocation3 + $0x74] ss:$8 sps:$4 sm:$0xff]  }
  0x22   :  { %656 = vmatprep.subr.bf16.mxu0 %v5965_v0  ;;  %v4706_v1 = vld [vmem:[#allocation3 + $0x70] ss:$8 sps:$4 sm:$0xff]   ;;  %v4707_v2 = vld [vmem:[#allocation3 + $0x84] ss:$8 sps:$4 sm:$0xff]   ;;  %v4709_v3 = vld [vmem:[#allocation3 + $0x80] ss:$8 sps:$4 sm:$0xff]  }
  0x23   :  { %v4710_v4 = vld [vmem:[#allocation3 + $0x94] ss:$8 sps:$4 sm:$0xff]   ;;  %v4712_v5 = vld [vmem:[#allocation3 + $0x90] ss:$8 sps:$4 sm:$0xff]   ;;  %v4713_v6 = vld [vmem:[#allocation3 + $0xa4] ss:$8 sps:$4 sm:$0xff]  }
  0x24   :  { %v4715_v7 = vld [vmem:[#allocation3 + $0xa0] ss:$8 sps:$4 sm:$0xff]   ;;  %v4716_v8 = vld [vmem:[#allocation3 + $0xb4] ss:$8 sps:$4 sm:$0xff]   ;;  %v4718_v9 = vld [vmem:[#allocation3 + $0xb0] ss:$8 sps:$4 sm:$0xff]  }
  0x25   :  { %657 = vmatpush1.bf16.msra.mxu0 %v276_v16  ;;  %v4719_v10 = vld [vmem:[#allocation3 + $0xc4] ss:$8 sps:$4 sm:$0xff]   ;;  %v4721_v11 = vld [vmem:[#allocation3 + $0xc0] ss:$8 sps:$4 sm:$0xff]   ;;  %v4722_v12 = vld [vmem:[#allocation3 + $0xd4] ss:$8 sps:$4 sm:$0xff]  }
  0x26   :  { %658 = vmatprep.subr.bf16.mxu0 %v5965_v0  ;;  %v4724_v13 = vld [vmem:[#allocation3 + $0xd0] ss:$8 sps:$4 sm:$0xff]   ;;  %v4725_v14 = vld [vmem:[#allocation3 + $0xe4] ss:$8 sps:$4 sm:$0xff]   ;;  %v4727_v15 = vld [vmem:[#allocation3 + $0xe0] ss:$8 sps:$4 sm:$0xff]  }
  0x27   :  { %v4728_v16 = vld [vmem:[#allocation3 + $0xf4] ss:$8 sps:$4 sm:$0xff]   ;;  %v4730_v17 = vld [vmem:[#allocation3 + $0xf0] ss:$8 sps:$4 sm:$0xff]   ;;  %v4731_v18 = vld [vmem:[#allocation3 + $0x104] ss:$8 sps:$4 sm:$0xff]  }
  0x28   :  { %v4734_v20 = vld [vmem:[#allocation3 + $0x114] ss:$8 sps:$4 sm:$0xff]   ;;  %v4736_v21 = vld [vmem:[#allocation3 + $0x110] ss:$8 sps:$4 sm:$0xff]   ;;  %v4739_v23 = vld [vmem:[#allocation3 + $0x120] ss:$8 sps:$4 sm:$0xff]  }
  0x29   :  { %659 = vmatpush1.bf16.msra.mxu0 %v277_v19  ;;  %v4733_v19 = vld [vmem:[#allocation3 + $0x100] ss:$8 sps:$4 sm:$0xff]   ;;  %v4740_v24 = vld [vmem:[#allocation3 + $0x134] ss:$8 sps:$4 sm:$0xff]   ;;  %v4743_v26 = vld [vmem:[#allocation3 + $0x144] ss:$8 sps:$4 sm:$0xff]  }
  0x2a   :  { %660 = vmatprep.subr.bf16.mxu0 %v5965_v0  ;;  %v4745_v27 = vld [vmem:[#allocation3 + $0x140] ss:$8 sps:$4 sm:$0xff]   ;;  %v4746_v28 = vld [vmem:[#allocation3 + $0x154] ss:$8 sps:$4 sm:$0xff]   ;;  %v4748_v29 = vld [vmem:[#allocation3 + $0x150] ss:$8 sps:$4 sm:$0xff]  }
  0x2b   :  { %v4751_v31 = vld [vmem:[#allocation3 + $0x160] ss:$8 sps:$4 sm:$0xff]   ;;  %v4754_v33 = vld [vmem:[#allocation3 + $0x170] ss:$8 sps:$4 sm:$0xff]   ;;  %v4755_v34 = vld [vmem:[#allocation3 + $0x184] ss:$8 sps:$4 sm:$0xff]  }
  0x2c   :  { %v4757_v35 = vld [vmem:[#allocation3 + $0x180] ss:$8 sps:$4 sm:$0xff]   ;;  %v4760_v37 = vld [vmem:[#allocation3 + $0x190] ss:$8 sps:$4 sm:$0xff]   ;;  %v4764_v40 = vld [vmem:[#allocation3 + $0x1b4] ss:$8 sps:$4 sm:$0xff]  }
  0x2d   :  { %661 = vmatpush1.bf16.msra.mxu0 %v278_v22  ;;  %v4737_v22 = vld [vmem:[#allocation3 + $0x124] ss:$8 sps:$4 sm:$0xff]   ;;  %v4763_v39 = vld [vmem:[#allocation3 + $0x1a0] ss:$8 sps:$4 sm:$0xff]   ;;  %v4766_v43 = vld [vmem:[#allocation3 + $0x1b0] ss:$8 sps:$4 sm:$0xff]  }
  0x2e   :  { %662 = vmatprep.subr.bf16.mxu0 %v5965_v0  ;;  %v4767_v45 = vld [vmem:[#allocation3 + $0x1c4] ss:$8 sps:$4 sm:$0xff]  }
  0x31   :  { %663 = vmatpush1.bf16.msra.mxu0 %v279_v25  ;;  %v4742_v25 = vld [vmem:[#allocation3 + $0x130] ss:$8 sps:$4 sm:$0xff]  }
  0x32   :  { %664 = vmatprep.subr.bf16.mxu0 %v5965_v0 }
  0x35   :  { %665 = vmatpush1.bf16.msra.mxu0 %v280_v30  ;;  %v4749_v30 = vld [vmem:[#allocation3 + $0x164] ss:$8 sps:$4 sm:$0xff]  }
  0x36   :  { %666 = vmatprep.subr.bf16.mxu0 %v5965_v0 }
  0x39   :  { %667 = vmatpush1.bf16.msra.mxu0 %v281_v32  ;;  %v4752_v32 = vld [vmem:[#allocation3 + $0x174] ss:$8 sps:$4 sm:$0xff]  }
  0x3a   :  { %668 = vmatprep.subr.bf16.mxu0 %v5965_v0 }
  0x3d   :  { %669 = vmatpush1.bf16.msra.mxu0 %v282_v36  ;;  %v4758_v36 = vld [vmem:[#allocation3 + $0x194] ss:$8 sps:$4 sm:$0xff]  }
  0x3e   :  { %670 = vmatprep.subr.bf16.mxu0 %v5965_v0 }
  0x41   :  { %671 = vmatpush1.bf16.msra.mxu0 %v283_v38  ;;  %v4761_v38 = vld [vmem:[#allocation3 + $0x1a4] ss:$8 sps:$4 sm:$0xff]  }
  0x42   :  { %672 = vmatprep.subr.bf16.mxu0 %v5965_v0 }
  0x45   :  { %673 = vmatpush1.bf16.msra.mxu0 %v284_v42 }
  0x46   :  { %674 = vmatprep.subr.bf16.mxu0 %v5965_v0 }
  0x49   :  { %675 = vmatpush1.bf16.msra.mxu0 %v285_v44 }
  0x4a   :  { %676 = vmatprep.subr.bf16.mxu0 %v5965_v0 }
  0x4d   :  { %677 = vmatpush1.bf16.msra.mxu0 %v286_v48 }
  0x4e   :  { %678 = vmatprep.subr.bf16.mxu0 %v5965_v0 }
  0x51   :  { %679 = vmatpush1.bf16.msra.mxu0 %v287_v49  ;;  %v4769_v49 = vld [vmem:[#allocation3 + $0x1c0] ss:$8 sps:$4 sm:$0xff]  }
  0x54   :  { %681 = vmatmul.mubr.bf16.vlgmr.msra.gmra.mrb[0].mxu0 %v4683_v50 }
  0x55   :  { %688 = vmatprep.mubr.bf16.mxu0 %v4686_v51  ;;  %v4770_v51 = vld [vmem:[#allocation3 + $0x1d4] ss:$8 sps:$4 sm:$0xff]  }
  0x5c   :  { %689 = vmatmul.mubr.bf16.gmra.mrb[4].mxu0 %v4688_v52 }
  0x5d   :  { %696 = vmatprep.mubr.bf16.mxu0 %v4689_v53 }
  0x64   :  { %697 = vmatmul.mubr.bf16.gmra.mrb[8].mxu0 %v4691_v54 }
  0x65   :  { %704 = vmatprep.mubr.bf16.mxu0 %v4692_v55  ;;  %v4772_v55 = vld [vmem:[#allocation3 + $0x1d0] ss:$8 sps:$4 sm:$0xff]  }
  0x6c   :  { %705 = vmatmul.mubr.bf16.gmra.mrb[12].mxu0 %v4694_v56 }
  0x6d   :  { %712 = vmatprep.mubr.bf16.mxu0 %v4695_v57  ;;  %v4773_v57 = vld [vmem:[#allocation3 + $0x1e4] ss:$8 sps:$4 sm:$0xff]  }
  0x74   :  { %713 = vmatmul.mubr.bf16.gmra.mrb[16].mxu0 %v4697_v58 }
  0x75   :  { %720 = vmatprep.mubr.bf16.mxu0 %v4698_v59 }
  0x7c   :  { %721 = vmatmul.mubr.bf16.gmra.mrb[20].mxu0 %v4700_v60 }
  0x7d   :  { %728 = vmatprep.mubr.bf16.mxu0 %v4701_v61  ;;  %v4775_v61 = vld [vmem:[#allocation3 + $0x1e0] ss:$8 sps:$4 sm:$0xff]  }
  0x84   :  { %729 = vmatmul.mubr.bf16.gmra.mrb[24].mxu0 %v4703_v62 }
  0x85   :  { %736 = vmatprep.mubr.bf16.mxu0 %v4704_v63  ;;  %v4776_v63 = vld [vmem:[#allocation3 + $0x1f4] ss:$8 sps:$4 sm:$0xff]  }
  0x8c   :  { %737 = vmatmul.mubr.bf16.gmra.mrb[28].mxu0 %v4706_v1 }
  0x8d   :  { %744 = vmatprep.mubr.bf16.mxu0 %v4707_v2 }
  0x94   :  { %745 = vmatmul.mubr.bf16.gmra.mrb[32].mxu0 %v4709_v3 }
  0x95   :  { %752 = vmatprep.mubr.bf16.mxu0 %v4710_v4  ;;  %v4778_v4 = vld [vmem:[#allocation3 + $0x1f0] ss:$8 sps:$4 sm:$0xff]  }
  0x9c   :  { %753 = vmatmul.mubr.bf16.gmra.mrb[36].mxu0 %v4712_v5 }
  0x9d   :  { %760 = vmatprep.mubr.bf16.mxu0 %v4713_v6  ;;  %v4779_v6 = vld [vmem:[#allocation3 + $0x204] ss:$8 sps:$4 sm:$0xff]  }
  0xa4   :  { %761 = vmatmul.mubr.bf16.gmra.mrb[40].mxu0 %v4715_v7 }
  0xa5   :  { %768 = vmatprep.mubr.bf16.mxu0 %v4716_v8 }
  0xac   :  { %769 = vmatmul.mubr.bf16.gmra.mrb[44].mxu0 %v4718_v9 }
  0xad   :  { %776 = vmatprep.mubr.bf16.mxu0 %v4719_v10  ;;  %v4781_v10 = vld [vmem:[#allocation3 + $0x200] ss:$8 sps:$4 sm:$0xff]  }
  0xb4   :  { %777 = vmatmul.mubr.bf16.gmra.mrb[48].mxu0 %v4721_v11 }
  0xb5   :  { %784 = vmatprep.mubr.bf16.mxu0 %v4722_v12  ;;  %v4782_v12 = vld [vmem:[#allocation3 + $0x214] ss:$8 sps:$4 sm:$0xff]  }
  0xbc   :  { %785 = vmatmul.mubr.bf16.gmra.mrb[52].mxu0 %v4724_v13 }
  0xbd   :  { %792 = vmatprep.mubr.bf16.mxu0 %v4725_v14 }
  0xc4   :  { %793 = vmatmul.mubr.bf16.gmra.mrb[56].mxu0 %v4727_v15 }
  0xc5   :  { %800 = vmatprep.mubr.bf16.mxu0 %v4728_v16  ;;  %v4784_v16 = vld [vmem:[#allocation3 + $0x210] ss:$8 sps:$4 sm:$0xff]  }
  0xcc   :  { %801 = vmatmul.mubr.bf16.gmra.mrb[60].mxu0 %v4730_v17 }
  0xcd   :  { %808 = vmatprep.mubr.bf16.mxu0 %v4731_v18  ;;  %v4785_v18 = vld [vmem:[#allocation3 + $0x224] ss:$8 sps:$4 sm:$0xff]  }
  0xd4   :  { %809 = vmatmul.mubr.bf16.gmra.mrb[64].mxu0 %v4733_v19 }
  0xd5   :  { %816 = vmatprep.mubr.bf16.mxu0 %v4734_v20 }
  0xdc   :  { %817 = vmatmul.mubr.bf16.gmra.mrb[68].mxu0 %v4736_v21 }
  0xdd   :  { %824 = vmatprep.mubr.bf16.mxu0 %v4737_v22  ;;  %v4787_v22 = vld [vmem:[#allocation3 + $0x220] ss:$8 sps:$4 sm:$0xff]  }
  0xe4   :  { %825 = vmatmul.mubr.bf16.gmra.mrb[72].mxu0 %v4739_v23 }
  0xe5   :  { %832 = vmatprep.mubr.bf16.mxu0 %v4740_v24  ;;  %v4788_v24 = vld [vmem:[#allocation3 + $0x234] ss:$8 sps:$4 sm:$0xff]  }
  0xec   :  { %833 = vmatmul.mubr.bf16.gmra.mrb[76].mxu0 %v4742_v25 }
  0xed   :  { %840 = vmatprep.mubr.bf16.mxu0 %v4743_v26 }
  0xf4   :  { %841 = vmatmul.mubr.bf16.gmra.mrb[80].mxu0 %v4745_v27 }
  0xf5   :  { %848 = vmatprep.mubr.bf16.mxu0 %v4746_v28  ;;  %v4790_v28 = vld [vmem:[#allocation3 + $0x230] ss:$8 sps:$4 sm:$0xff]  }
  0xfc   :  { %849 = vmatmul.mubr.bf16.gmra.mrb[84].mxu0 %v4748_v29 }
  0xfd   :  { %856 = vmatprep.mubr.bf16.mxu0 %v4749_v30 }
 0x104   :  { %857 = vmatmul.mubr.bf16.gmra.mrb[88].mxu0 %v4751_v31 }
 0x105   :  { %864 = vmatprep.mubr.bf16.mxu0 %v4752_v32 }
 0x10c   :  { %865 = vmatmul.mubr.bf16.gmra.mrb[92].mxu0 %v4754_v33 }
 0x10d   :  { %872 = vmatprep.mubr.bf16.mxu0 %v4755_v34 }
 0x114   :  { %873 = vmatmul.mubr.bf16.gmra.mrb[96].mxu0 %v4757_v35 }
 0x115   :  { %880 = vmatprep.mubr.bf16.mxu0 %v4758_v36 }
 0x11c   :  { %881 = vmatmul.mubr.bf16.gmra.mrb[100].mxu0 %v4760_v37 }
 0x11d   :  { %888 = vmatprep.mubr.bf16.mxu0 %v4761_v38 }
 0x124   :  { %889 = vmatmul.mubr.bf16.gmra.mrb[104].mxu0 %v4763_v39 }
 0x125   :  { %896 = vmatprep.mubr.bf16.mxu0 %v4764_v40 }
 0x127   :  { %v682_v41 = vpop.f32.mrb[0].mxu0 }
 0x128   :  { %971 = vperm.xlu0 %4571, %v682_v41   ;;  %v684_v42 = vpop.f32.mrb[1].mxu0 }
 0x129   :  { %v685_v44 = vpop.f32.mrb[2].mxu0 }
 0x12a   :  { %v687_v46 = vpop.f32.mrb[3].mxu0 }
 0x12c   :  { %897 = vmatmul.mubr.bf16.gmra.mrb[108].mxu0 %v4766_v43  ;;  %976 = vperm.xlu0 %4571, %v685_v44  }
 0x12d   :  { %904 = vmatprep.mubr.bf16.mxu0 %v4767_v45 }
 0x12f   :  { %v690_v47 = vpop.f32.mrb[4].mxu0 }
 0x130   :  { %981 = vperm.xlu0 %4571, %v690_v47   ;;  %v692_v48 = vpop.f32.mrb[5].mxu0 }
 0x131   :  { %v693_v50 = vpop.f32.mrb[6].mxu0 }
 0x132   :  { %986 = vperm.xlu1 %4572, %v693_v50   ;;  %v695_v52 = vpop.f32.mrb[7].mxu0 }
 0x134   :  { %905 = vmatmul.mubr.bf16.gmra.mrb[112].mxu0 %v4769_v49 }
 0x135   :  { %912 = vmatprep.mubr.bf16.mxu0 %v4770_v51 }
 0x137   :  { %v698_v53 = vpop.f32.mrb[8].mxu0 }
 0x138   :  { %991 = vperm.xlu0 %4571, %v698_v53   ;;  %v700_v54 = vpop.f32.mrb[9].mxu0 }
 0x139   :  { %v701_v56 = vpop.f32.mrb[10].mxu0 }
 0x13a   :  { %996 = vperm.xlu1 %4572, %v701_v56   ;;  %v703_v58 = vpop.f32.mrb[11].mxu0 }
 0x13c   :  { %913 = vmatmul.mubr.bf16.gmra.mrb[116].mxu0 %v4772_v55 }
 0x13d   :  { %920 = vmatprep.mubr.bf16.mxu0 %v4773_v57 }
 0x13f   :  { %v706_v59 = vpop.f32.mrb[12].mxu0 }
 0x140   :  { %1001 = vperm.xlu0 %4571, %v706_v59   ;;  %v708_v60 = vpop.f32.mrb[13].mxu0 }
 0x141   :  { %v709_v62 = vpop.f32.mrb[14].mxu0 }
 0x142   :  { %1006 = vperm.xlu1 %4572, %v709_v62   ;;  %v711_v1 = vpop.f32.mrb[15].mxu0 }
 0x144   :  { %921 = vmatmul.mubr.bf16.gmra.mrb[120].mxu0 %v4775_v61 }
 0x145   :  { %928 = vmatprep.mubr.bf16.mxu0 %v4776_v63 }
 0x147   :  { %v714_v2 = vpop.f32.mrb[16].mxu0 }
 0x148   :  { %1023 = vperm.xlu1 %4572, %v714_v2   ;;  %v716_v3 = vpop.f32.mrb[17].mxu0 }
 0x149   :  { %v717_v5 = vpop.f32.mrb[18].mxu0 }
 0x14a   :  { %v719_v7 = vpop.f32.mrb[19].mxu0 }
 0x14c   :  { %929 = vmatmul.mubr.bf16.gmra.mrb[124].mxu0 %v4778_v4  ;;  %1028 = vperm.xlu1 %4572, %v717_v5  }
 0x14d   :  { %936 = vmatprep.mubr.bf16.mxu0 %v4779_v6 }
 0x14f   :  { %v722_v8 = vpop.f32.mrb[20].mxu0 }
 0x150   :  { %1033 = vperm.xlu0 %4571, %v722_v8   ;;  %v724_v9 = vpop.f32.mrb[21].mxu0 }
 0x151   :  { %v725_v11 = vpop.f32.mrb[22].mxu0 }
 0x152   :  { %1038 = vperm.xlu1 %4572, %v725_v11   ;;  %v727_v13 = vpop.f32.mrb[23].mxu0 }
 0x154   :  { %937 = vmatmul.mubr.bf16.gmra.mrb[128].mxu0 %v4781_v10 }
 0x155   :  { %944 = vmatprep.mubr.bf16.mxu0 %v4782_v12 }
 0x157   :  { %v730_v14 = vpop.f32.mrb[24].mxu0 }
 0x158   :  { %1043 = vperm.xlu0 %4571, %v730_v14   ;;  %v732_v15 = vpop.f32.mrb[25].mxu0 }
 0x159   :  { %v733_v17 = vpop.f32.mrb[26].mxu0 }
 0x15a   :  { %1048 = vperm.xlu1 %4572, %v733_v17   ;;  %v735_v19 = vpop.f32.mrb[27].mxu0 }
 0x15c   :  { %945 = vmatmul.mubr.bf16.gmra.mrb[132].mxu0 %v4784_v16 }
 0x15d   :  { %952 = vmatprep.mubr.bf16.mxu0 %v4785_v18 }
 0x15f   :  { %v738_v20 = vpop.f32.mrb[28].mxu0 }
 0x160   :  { %1053 = vperm.xlu0 %4571, %v738_v20   ;;  %v740_v21 = vpop.f32.mrb[29].mxu0 }
 0x161   :  { %v741_v23 = vpop.f32.mrb[30].mxu0 }
 0x162   :  { %1058 = vperm.xlu1 %4572, %v741_v23   ;;  %v743_v25 = vpop.f32.mrb[31].mxu0 }
 0x164   :  { %953 = vmatmul.mubr.bf16.gmra.mrb[136].mxu0 %v4787_v22 }
 0x165   :  { %960 = vmatprep.mubr.bf16.mxu0 %v4788_v24 }
 0x167   :  { %v746_v26 = vpop.f32.mrb[32].mxu0 }
 0x168   :  { %1083 = vperm.xlu0 %4571, %v746_v26   ;;  %v748_v27 = vpop.f32.mrb[33].mxu0 }
 0x169   :  { %v749_v29 = vpop.f32.mrb[34].mxu0 }
 0x16a   :  { %1088 = vperm.xlu1 %4572, %v749_v29   ;;  %v751_v30 = vpop.f32.mrb[35].mxu0 }
 0x16c   :  { %961 = vmatmul.mubr.bf16.gmra.mrb[140].mxu0 %v4790_v28 }
 0x16f   :  { %v754_v31 = vpop.f32.mrb[36].mxu0 }
 0x170   :  { %1093 = vperm.xlu0 %4571, %v754_v31   ;;  %v756_v32 = vpop.f32.mrb[37].mxu0 }
 0x171   :  { %v757_v33 = vpop.f32.mrb[38].mxu0 }
 0x172   :  { %1098 = vperm.xlu1 %4572, %v757_v33   ;;  %v759_v34 = vpop.f32.mrb[39].mxu0 }
 0x177   :  { %v762_v35 = vpop.f32.mrb[40].mxu0 }
 0x178   :  { %1103 = vperm.xlu0 %4571, %v762_v35   ;;  %v764_v36 = vpop.f32.mrb[41].mxu0 }
 0x179   :  { %v765_v37 = vpop.f32.mrb[42].mxu0 }
 0x17a   :  { %1108 = vperm.xlu1 %4572, %v765_v37   ;;  %v767_v38 = vpop.f32.mrb[43].mxu0 }
 0x17f   :  { %v770_v39 = vpop.f32.mrb[44].mxu0 }
 0x180   :  { %1113 = vperm.xlu0 %4571, %v770_v39   ;;  %v772_v40 = vpop.f32.mrb[45].mxu0 }
 0x181   :  { %v773_v41 = vpop.f32.mrb[46].mxu0 }
 0x182   :  { %1118 = vperm.xlu1 %4572, %v773_v41   ;;  %v775_v42 = vpop.f32.mrb[47].mxu0 }
 0x187   :  { %v778_v43 = vpop.f32.mrb[48].mxu0 }
 0x188   :  { %1143 = vperm.xlu0 %4571, %v778_v43   ;;  %v780_v44 = vpop.f32.mrb[49].mxu0 }
 0x189   :  { %v781_v45 = vpop.f32.mrb[50].mxu0 }
 0x18a   :  { %1148 = vperm.xlu1 %4572, %v781_v45   ;;  %v783_v46 = vpop.f32.mrb[51].mxu0 }
 0x18f   :  { %v786_v47 = vpop.f32.mrb[52].mxu0 }
 0x190   :  { %1153 = vperm.xlu0 %4571, %v786_v47   ;;  %v788_v48 = vpop.f32.mrb[53].mxu0 }
 0x191   :  { %v789_v49 = vpop.f32.mrb[54].mxu0 }
 0x192   :  { %1158 = vperm.xlu1 %4572, %v789_v49   ;;  %v791_v50 = vpop.f32.mrb[55].mxu0 }
 0x197   :  { %v794_v51 = vpop.f32.mrb[56].mxu0 }
 0x198   :  { %1163 = vperm.xlu0 %4571, %v794_v51   ;;  %v796_v52 = vpop.f32.mrb[57].mxu0 }
 0x199   :  { %v797_v53 = vpop.f32.mrb[58].mxu0 }
 0x19a   :  { %1168 = vperm.xlu1 %4572, %v797_v53   ;;  %v799_v54 = vpop.f32.mrb[59].mxu0 }
 0x19f   :  { %v802_v55 = vpop.f32.mrb[60].mxu0 }
 0x1a0   :  { %1173 = vperm.xlu0 %4571, %v802_v55   ;;  %v804_v56 = vpop.f32.mrb[61].mxu0 }
 0x1a1   :  { %v805_v57 = vpop.f32.mrb[62].mxu0 }
 0x1a2   :  { %1178 = vperm.xlu1 %4572, %v805_v57   ;;  %v807_v58 = vpop.f32.mrb[63].mxu0 }
 0x1a7   :  { %v810_v59 = vpop.f32.mrb[64].mxu0 }
 0x1a8   :  { %1203 = vperm.xlu0 %4571, %v810_v59   ;;  %v812_v60 = vpop.f32.mrb[65].mxu0  ;;  %v5184_v59 = vpop.permute.xlu0 %971 }
 0x1a9   :  { %v813_v61 = vpop.f32.mrb[66].mxu0 }
 0x1aa   :  { %1208 = vperm.xlu1 %4572, %v813_v61   ;;  %v815_v62 = vpop.f32.mrb[67].mxu0 }
 0x1af   :  { %v818_v63 = vpop.f32.mrb[68].mxu0 }
 0x1b0   :  { %1213 = vperm.xlu0 %4571, %v818_v63   ;;  %v820_v1 = vpop.f32.mrb[69].mxu0  ;;  %v5188_v63 = vpop.permute.xlu0 %976 }
 0x1b1   :  { %v821_v2 = vpop.f32.mrb[70].mxu0  ;;  %v5186_v61 = vpop.permute.xlu1 %986 }
 0x1b2   :  { %1218 = vperm.xlu1 %4572, %v821_v2   ;;  %v823_v3 = vpop.f32.mrb[71].mxu0 }
 0x1b7   :  { %v826_v4 = vpop.f32.mrb[72].mxu0 }
 0x1b8   :  { %1223 = vperm.xlu0 %4571, %v826_v4   ;;  %v828_v5 = vpop.f32.mrb[73].mxu0 }
 0x1b9   :  { %v829_v6 = vpop.f32.mrb[74].mxu0  ;;  %v5190_v4 = vpop.permute.xlu1 %996 }
 0x1ba   :  { %1228 = vperm.xlu1 %4572, %v829_v6   ;;  %v831_v7 = vpop.f32.mrb[75].mxu0  ;;  %v5192_v5 = vpop.permute.xlu0 %981 }
 0x1bf   :  { %v834_v8 = vpop.f32.mrb[76].mxu0 }
 0x1c0   :  { %1233 = vperm.xlu0 %4571, %v834_v8   ;;  %v836_v9 = vpop.f32.mrb[77].mxu0 }
 0x1c1   :  { %v837_v10 = vpop.f32.mrb[78].mxu0  ;;  %v5194_v6 = vpop.permute.xlu1 %1006 }
 0x1c2   :  { %1238 = vperm.xlu1 %4572, %v837_v10   ;;  %v839_v11 = vpop.f32.mrb[79].mxu0 }
 0x1c3   :  { %v5196_v11 = vpop.permute.xlu0 %991 }
 0x1c7   :  { %v842_v12 = vpop.f32.mrb[80].mxu0 }
 0x1c8   :  { %1263 = vperm.xlu0 %4571, %v842_v12   ;;  %v844_v13 = vpop.f32.mrb[81].mxu0  ;;  %v5198_v12 = vpop.permute.xlu1 %1023 }
 0x1c9   :  { %v845_v14 = vpop.f32.mrb[82].mxu0  ;;  %v5967_v13 = vmov 0.0  }
 0x1ca   :  { %1268 = vperm.xlu1 %4572, %v845_v14   ;;  %v847_v15 = vpop.f32.mrb[83].mxu0  ;;  %4356 = vmatprep.subr.bf16.mxu1 %v5967_v13  ;;  %v5202_v14 = vpop.permute.xlu0 %1001 }
 0x1cb   :  { %4456 = vmatprep.subr.bf16.mxu0 %v5967_v13  ;;  %4364 = vmatprep.mubr.msk.bf16.mxu1 %vm5030_vm0, %v5967_v13 }
 0x1cc   :  { %4464 = vmatprep.mubr.msk.bf16.mxu0 %vm5030_vm0, %v5967_v13 }
 0x1cf   :  { %v850_v16 = vpop.f32.mrb[84].mxu0 }
 0x1d0   :  { %1273 = vperm.xlu0 %4571, %v850_v16   ;;  %v852_v17 = vpop.f32.mrb[85].mxu0 }
 0x1d1   :  { %v853_v18 = vpop.f32.mrb[86].mxu0  ;;  %v5204_v17 = vpop.permute.xlu1 %1028 }
 0x1d2   :  { %1278 = vperm.xlu1 %4572, %v853_v18   ;;  %v855_v19 = vpop.f32.mrb[87].mxu0 }
 0x1d7   :  { %v858_v20 = vpop.f32.mrb[88].mxu0 }
 0x1d8   :  { %1283 = vperm.xlu0 %4571, %v858_v20   ;;  %v860_v21 = vpop.f32.mrb[89].mxu0  ;;  %v5206_v20 = vpop.permute.xlu0 %1033 }
 0x1d9   :  { %v861_v22 = vpop.f32.mrb[90].mxu0  ;;  %v5208_v21 = vpop.permute.xlu1 %1038 }
 0x1da   :  { %1288 = vperm.xlu1 %4572, %v861_v22   ;;  %v863_v23 = vpop.f32.mrb[91].mxu0 }
 0x1dc   :  { %v5210_v22 = vpop.permute.xlu0 %1043 }
 0x1df   :  { %v866_v24 = vpop.f32.mrb[92].mxu0 }
 0x1e0   :  { %1293 = vperm.xlu0 %4571, %v866_v24   ;;  %v868_v25 = vpop.f32.mrb[93].mxu0 }
 0x1e1   :  { %v869_v26 = vpop.f32.mrb[94].mxu0  ;;  %v5212_v25 = vpop.permute.xlu1 %1048 }
 0x1e2   :  { %1298 = vperm.xlu1 %4572, %v869_v26   ;;  %v871_v27 = vpop.f32.mrb[95].mxu0 }
 0x1e7   :  { %v874_v28 = vpop.f32.mrb[96].mxu0 }
 0x1e8   :  { %1323 = vperm.xlu0 %4571, %v874_v28   ;;  %v876_v29 = vpop.f32.mrb[97].mxu0  ;;  %v5214_v28 = vpop.permute.xlu0 %1053 }
 0x1e9   :  { %v877_v30 = vpop.f32.mrb[98].mxu0  ;;  %v5216_v29 = vpop.permute.xlu1 %1058 }
 0x1ea   :  { %1328 = vperm.xlu1 %4572, %v877_v30   ;;  %v879_v31 = vpop.f32.mrb[99].mxu0 }
 0x1ec   :  { %v5218_v30 = vpop.permute.xlu0 %1083 }
 0x1ed   :  { %v5220_v31 = vpop.permute.xlu1 %1088 }
 0x1ef   :  { %v882_v32 = vpop.f32.mrb[100].mxu0 }
 0x1f0   :  { %1333 = vperm.xlu0 %4571, %v882_v32   ;;  %v884_v33 = vpop.f32.mrb[101].mxu0  ;;  %v5222_v32 = vpop.permute.xlu0 %1093 }
 0x1f1   :  { %v885_v34 = vpop.f32.mrb[102].mxu0  ;;  %v5224_v33 = vpop.permute.xlu1 %1098 }
 0x1f2   :  { %1338 = vperm.xlu1 %4572, %v885_v34   ;;  %v887_v35 = vpop.f32.mrb[103].mxu0 }
 0x1f7   :  { %v890_v36 = vpop.f32.mrb[104].mxu0  ;;  %v5230_v34 = vpop.permute.xlu0 %1103 }
 0x1f8   :  { %1343 = vperm.xlu0 %4571, %v890_v36   ;;  %v892_v37 = vpop.f32.mrb[105].mxu0 }
 0x1f9   :  { %v893_v38 = vpop.f32.mrb[106].mxu0  ;;  %v5232_v35 = vpop.permute.xlu1 %1108 }
 0x1fa   :  { %1348 = vperm.xlu1 %4572, %v893_v38   ;;  %v895_v39 = vpop.f32.mrb[107].mxu0 }
 0x1ff   :  { %v898_v40 = vpop.f32.mrb[108].mxu0  ;;  %v5234_v36 = vpop.permute.xlu0 %1113 }
 0x200   :  { %1353 = vperm.xlu0 %4571, %v898_v40   ;;  %v900_v41 = vpop.f32.mrb[109].mxu0 }
 0x201   :  { %v901_v42 = vpop.f32.mrb[110].mxu0  ;;  %v5236_v37 = vpop.permute.xlu1 %1118 }
 0x202   :  { %1358 = vperm.xlu1 %4572, %v901_v42   ;;  %v903_v43 = vpop.f32.mrb[111].mxu0 }
 0x207   :  { %v906_v44 = vpop.f32.mrb[112].mxu0  ;;  %v5238_v38 = vpop.permute.xlu0 %1143 }
 0x208   :  { %1383 = vperm.xlu0 %4571, %v906_v44   ;;  %v908_v45 = vpop.f32.mrb[113].mxu0 }
 0x209   :  { %v909_v46 = vpop.f32.mrb[114].mxu0  ;;  %v5240_v39 = vpop.permute.xlu1 %1148 }
 0x20a   :  { %1388 = vperm.xlu1 %4572, %v909_v46   ;;  %v911_v47 = vpop.f32.mrb[115].mxu0 }
 0x20f   :  { %v914_v48 = vpop.f32.mrb[116].mxu0  ;;  %v5242_v40 = vpop.permute.xlu0 %1153 }
 0x210   :  { %1393 = vperm.xlu0 %4571, %v914_v48   ;;  %v916_v49 = vpop.f32.mrb[117].mxu0 }
 0x211   :  { %v917_v50 = vpop.f32.mrb[118].mxu0  ;;  %v5244_v41 = vpop.permute.xlu1 %1158 }
 0x212   :  { %1398 = vperm.xlu1 %4572, %v917_v50   ;;  %v919_v51 = vpop.f32.mrb[119].mxu0 }
 0x217   :  { %v922_v52 = vpop.f32.mrb[120].mxu0  ;;  %v5246_v42 = vpop.permute.xlu0 %1163 }
 0x218   :  { %1403 = vperm.xlu0 %4571, %v922_v52   ;;  %v924_v53 = vpop.f32.mrb[121].mxu0 }
 0x219   :  { %v925_v54 = vpop.f32.mrb[122].mxu0  ;;  %v5248_v43 = vpop.permute.xlu1 %1168 }
 0x21a   :  { %1408 = vperm.xlu1 %4572, %v925_v54   ;;  %v927_v55 = vpop.f32.mrb[123].mxu0 }
 0x21f   :  { %v930_v56 = vpop.f32.mrb[124].mxu0  ;;  %v5250_v44 = vpop.permute.xlu0 %1173 }
 0x220   :  { %1413 = vperm.xlu0 %4571, %v930_v56   ;;  %v932_v57 = vpop.f32.mrb[125].mxu0  ;;  %5972 = vst [vmem:[#allocation6_spill] sm:$0xff] %v5250_v44 }
 0x221   :  { %v933_v58 = vpop.f32.mrb[126].mxu0  ;;  %v5252_v45 = vpop.permute.xlu1 %1178 }
 0x222   :  { %1418 = vperm.xlu1 %4572, %v933_v58   ;;  %v935_v60 = vpop.f32.mrb[127].mxu0  ;;  %5973 = vst [vmem:[#allocation7_spill] sm:$0xff] %v5252_v45 }
 0x227   :  { %v938_v62 = vpop.f32.mrb[128].mxu0  ;;  %v5254_v46 = vpop.permute.xlu0 %1203 }
 0x228   :  { %1443 = vperm.xlu0 %4571, %v938_v62   ;;  %v940_v1 = vpop.f32.mrb[129].mxu0 }
 0x229   :  { %v941_v2 = vpop.f32.mrb[130].mxu0  ;;  %v5256_v47 = vpop.permute.xlu1 %1208 }
 0x22a   :  { %1448 = vperm.xlu1 %4572, %v941_v2   ;;  %v943_v3 = vpop.f32.mrb[131].mxu0 }
 0x22b   :  { %v1009_v3 = vlaneseq }
 0x22f   :  { %v946_v7 = vpop.f32.mrb[132].mxu0  ;;  %v5258_v48 = vpop.permute.xlu0 %1213 }
 0x230   :  { %1453 = vperm.xlu0 %4571, %v946_v7   ;;  %v948_v8 = vpop.f32.mrb[133].mxu0 }
 0x231   :  { %v949_v9 = vpop.f32.mrb[134].mxu0  ;;  %v5260_v49 = vpop.permute.xlu1 %1218 }
 0x232   :  { %1458 = vperm.xlu1 %4572, %v949_v9   ;;  %v951_v10 = vpop.f32.mrb[135].mxu0  ;;  %v5292_v9 = vshrl.u32 %v1009_v3, 7 }
 0x233   :  { %v102_v10 = vld [vmem:[#allocation3 + $0x240] sm:$0xf] }
 0x237   :  { %v954_v15 = vpop.f32.mrb[136].mxu0  ;;  %v5262_v50 = vpop.permute.xlu0 %1223 }
 0x238   :  { %1463 = vperm.xlu0 %4571, %v954_v15   ;;  %v956_v16 = vpop.f32.mrb[137].mxu0 }
 0x239   :  { %v957_v18 = vpop.f32.mrb[138].mxu0  ;;  %v5264_v51 = vpop.permute.xlu1 %1228 }
 0x23a   :  { %1468 = vperm.xlu1 %4572, %v957_v18   ;;  %v959_v19 = vpop.f32.mrb[139].mxu0  ;;  %5974 = vst [vmem:[#allocation8_spill] sm:$0xff] %v5264_v51  ;;  %v104_v18 = vunpack.c.l.bf16 %v102_v10  ;;  %v1243_v10 = vsub.s32 4, %v5292_v9 }
 0x23b   :  { %v5969_v19 = vsub.s32 0, %v5292_v9 }
 0x23d   :  { %v5308_v3 = vrot.slane %v104_v18, %v5969_v19 }
 0x23f   :  { %v962_v23 = vpop.f32.mrb[140].mxu0  ;;  %v5266_v52 = vpop.permute.xlu0 %1233  ;;  %5984 = vst [vmem:[#allocation18_spill] sm:$0xff] %v5308_v3  ;;  %v1013_v45 = vmul.f32 %v5308_v3, %v5184_v59  ;;  %v1014_v19 = vmul.f32 %v5308_v3, %v5188_v63  ;;  %v1363_v63 = vsub.s32 6, %v5292_v9 }
 0x240   :  { %1473 = vperm.xlu0 %4571, %v962_v23   ;;  %v964_v24 = vpop.f32.mrb[141].mxu0  ;;  %5975 = vst [vmem:[#allocation9_spill] sm:$0xff] %v5266_v52  ;;  %v1063_v23 = vsub.s32 1, %v5292_v9 }
 0x241   :  { %v965_v26 = vpop.f32.mrb[142].mxu0  ;;  %v5268_v53 = vpop.permute.xlu1 %1238 }
 0x242   :  { %1478 = vperm.xlu1 %4572, %v965_v26   ;;  %v967_v27 = vpop.f32.mrb[143].mxu0  ;;  %5976 = vst [vmem:[#allocation10_spill] sm:$0xff] %v5268_v53  ;;  %v1123_v26 = vsub.s32 2, %v5292_v9  ;;  %v5310_v13 = vrot.slane %v104_v18, %v1063_v23  ;;  %v1303_v23 = vsub.s32 5, %v5292_v9 }
 0x243   :  { %v1183_v27 = vsub.s32 3, %v5292_v9 }
 0x245   :  { %v5317_v53 = vrot.slane %v104_v18, %v1183_v27  ;;  %v1016_v27 = vmul.f32 %v5308_v3, %v5186_v61  ;;  %v5345_v61 = vmul.f32 %v5308_v3, %v5194_v6  ;;  %v1068_v6 = vmul.f32 %v5310_v13, %v5208_v21 }
 0x246   :  { %v1071_v21 = vmul.f32 %v5310_v13, %v5214_v28 }
 0x247   :  { %v5270_v54 = vpop.permute.xlu0 %1263  ;;  %5986 = vst [vmem:[#allocation20_spill] sm:$0xff] %v5345_v61 }
 0x249   :  { %v5272_v55 = vpop.permute.xlu1 %1268 }
 0x24f   :  { %v5274_v56 = vpop.permute.xlu0 %1273 }
 0x251   :  { %v5276_v57 = vpop.permute.xlu1 %1278 }
 0x257   :  { %v5278_v58 = vpop.permute.xlu0 %1283 }
 0x258   :  { %5977 = vst [vmem:[#allocation11_spill] sm:$0xff] %v5278_v58  ;;  %v103_v58 = vld [vmem:[#allocation3 + $0x248] sm:$0x1] }
 0x259   :  { %v5280_v60 = vpop.permute.xlu1 %1288  ;;  %v105_v61 = vunpack.c.l.bf16 %v103_v58 }
 0x25a   :  { %5978 = vst [vmem:[#allocation12_spill] sm:$0xff] %v5280_v60  ;;  %v5355_v60 = vrot.slane %v104_v18, %v1303_v23  ;;  %v5370_v23 = vrot.slane %v104_v18, %v1363_v63 }
 0x25c   :  { %v1306_v58 = vmul.f32 %v5355_v60, %v5272_v55 }
 0x25f   :  { %v5282_v62 = vpop.permute.xlu0 %1293 }
 0x260   :  { %5979 = vst [vmem:[#allocation13_spill] sm:$0xff] %v5282_v62  ;;  %v5315_v62 = vrot.slane %v104_v18, %v1123_v26  ;;  %v1015_v26 = vmul.f32 %v5308_v3, %v5192_v5  ;;  %v1019_v5 = vmul.f32 %v5308_v3, %v5202_v14  ;;  %v1423_v14 = vsub.s32 7, %v5292_v9 }
 0x261   :  { %v5284_v1 = vpop.permute.xlu1 %1298 }
 0x262   :  { %5980 = vst [vmem:[#allocation14_spill] sm:$0xff] %v5284_v1  ;;  %v1125_v44 = vmul.f32 %v5315_v62, %v5218_v30  ;;  %v1185_v30 = vmul.f32 %v5317_v53, %v5238_v38  ;;  %v1186_v38 = vmul.f32 %v5317_v53, %v5240_v39  ;;  %v1305_v39 = vmul.f32 %v5355_v60, %v5270_v54 }
 0x263   :  { %v1128_v54 = vmul.f32 %v5315_v62, %v5224_v33  ;;  %v1129_v33 = vmul.f32 %v5315_v62, %v5230_v34 }
 0x267   :  { %v5286_v2 = vpop.permute.xlu0 %1323 }
 0x269   :  { %v5288_v7 = vpop.permute.xlu1 %1328 }
 0x26a   :  { %v1366_v55 = vmul.f32 %v5370_v23, %v5288_v7 }
 0x26f   :  { %v5290_v8 = vpop.permute.xlu0 %1333 }
 0x271   :  { %v5294_v15 = vpop.permute.xlu1 %1338 }
 0x277   :  { %v5296_v16 = vpop.permute.xlu0 %1343 }
 0x278   :  { %5981 = vst [vmem:[#allocation15_spill] sm:$0xff] %v5296_v16 }
 0x279   :  { %v5300_v24 = vpop.permute.xlu1 %1348 }
 0x27a   :  { %5982 = vst [vmem:[#allocation16_spill] sm:$0xff] %v5300_v24  ;;  %v5323_v24 = vrot.slane %v104_v18, %v1243_v10  ;;  %v1018_v10 = vmul.f32 %v5308_v3, %v5190_v4 }
 0x27f   :  { %v5304_v0 = vpop.permute.xlu0 %1353 }
 0x280   :  { %5983 = vst [vmem:[#allocation17_spill] sm:$0xff] %v5304_v0  ;;  %v1065_v0 = vmul.f32 %v5310_v13, %v5198_v12  ;;  %v1017_v12 = vmul.f32 %v5308_v3, %v5196_v11  ;;  %v1126_v11 = vmul.f32 %v5315_v62, %v5220_v31  ;;  %v1070_v31 = vmul.f32 %v5310_v13, %v5212_v25 }
 0x281   :  { %v5313_v1 = vpop.permute.xlu1 %1358 }
 0x282   :  { %5985 = vst [vmem:[#allocation19_spill] sm:$0xff] %v5313_v1  ;;  %v1066_v1 = vmul.f32 %v5310_v13, %v5204_v17  ;;  %v1067_v17 = vmul.f32 %v5310_v13, %v5206_v20  ;;  %v1073_v4 = vadd.f32 %v1065_v0, %v1013_v45  ;;  %v1069_v20 = vmul.f32 %v5310_v13, %v5210_v22 }
 0x283   :  { %v1245_v45 = vmul.f32 %v5323_v24, %v5254_v46  ;;  %v1076_v46 = vadd.f32 %v1068_v6, %v1016_v27 }
 0x284   :  { %v1074_v51 = vadd.f32 %v1066_v1, %v1014_v19  ;;  %v1133_v0 = vadd.f32 %v1125_v44, %v1073_v4  ;;  %v1075_v1 = vadd.f32 %v1067_v17, %v1015_v26  ;;  %v1246_v44 = vmul.f32 %v5323_v24, %v5256_v47 }
 0x285   :  { %v5380_v4 = vrot.slane %v104_v18, %v1423_v14  ;;  %v1077_v63 = vadd.f32 %v1069_v20, %v1017_v12  ;;  %v1127_v26 = vmul.f32 %v5315_v62, %v5222_v32  ;;  %v1365_v47 = vmul.f32 %v5370_v23, %v5286_v2 }
 0x286   :  { %v1134_v19 = vadd.f32 %v1126_v11, %v1074_v51  ;;  %v1193_v25 = vadd.f32 %v1185_v30, %v1133_v0  ;;  %v5390_v11 = vadd.f32 %v1071_v21, %v1019_v5  ;;  %v1187_v18 = vmul.f32 %v5317_v53, %v5242_v40 }
 0x287   :  { %v1384_v52 = vpop.permute.xlu0 %1383  ;;  %v5988_v32 = vsub.s32 0, %v5292_v9  ;;  %v1135_v5 = vadd.f32 %v1127_v26, %v1075_v1  ;;  %v1188_v40 = vmul.f32 %v5317_v53, %v5244_v41  ;;  %v1247_v14 = vmul.f32 %v5323_v24, %v5258_v48 }
 0x288   :  { %v1194_v51 = vadd.f32 %v1186_v38, %v1134_v19  ;;  %v1253_v17 = vadd.f32 %v1245_v45, %v1193_v25  ;;  %v1425_v2 = vmul.f32 %v5380_v4, %v1384_v52  ;;  %v1136_v52 = vadd.f32 %v1128_v54, %v1076_v46 }
 0x289   :  { %v1389_v59 = vpop.permute.xlu1 %1388  ;;  %v5400_v12 = vrot.slane %v105_v61, %v5988_v32  ;;  %v1072_v61 = vmul.f32 %v5310_v13, %v5216_v29  ;;  %v1195_v34 = vadd.f32 %v1187_v18, %v1135_v5  ;;  %v1248_v41 = vmul.f32 %v5323_v24, %v5260_v49 }
 0x28a   :  { %v1313_v30 = vadd.f32 %v1305_v39, %v1253_v17  ;;  %v1426_v7 = vmul.f32 %v5380_v4, %v1389_v59  ;;  %v1307_v48 = vmul.f32 %v5355_v60, %v5274_v56  ;;  %v1137_v1 = vadd.f32 %v1129_v33, %v1077_v63 }
 0x28b   :  { %v1196_v21 = vadd.f32 %v1188_v40, %v1136_v52  ;;  %v1255_v19 = vadd.f32 %v1247_v14, %v1195_v34  ;;  %v1308_v59 = vmul.f32 %v5355_v60, %v5276_v57  ;;  %v1189_v56 = vmul.f32 %v5317_v53, %v5246_v42  ;;  %v5993_v52 = vld [vmem:[#allocation15_spill] sm:$0xff] }
 0x28c   :  { %v1373_v20 = vadd.f32 %v1365_v47, %v1313_v30  ;;  %v1368_v63 = vmul.f32 %v5370_v23, %v5294_v15  ;;  %v1190_v47 = vmul.f32 %v5317_v53, %v5248_v43  ;;  %v1132_v54 = vmul.f32 %v5315_v62, %v5236_v37  ;;  %v5990_v30 = vld [vmem:[#allocation8_spill] sm:$0xff] }
 0x28d   :  { %v1256_v26 = vadd.f32 %v1248_v41, %v1196_v21 }
 0x28e   :  { %v1433_v45 = vadd.f32 %v1425_v2, %v1373_v20  ;;  %v5992_v20 = vld [vmem:[#allocation12_spill] sm:$0xff] }
 0x28f   :  { %v5351_v16 = vpop.permute.xlu0 %1393  ;;  %v1316_v42 = vadd.f32 %v1308_v59, %v1256_v26  ;;  %v5996_v59 = vld [vmem:[#allocation16_spill] sm:$0xff] }
 0x290   :  { %v1427_v57 = vmul.f32 %v5380_v4, %v5351_v16 }
 0x291   :  { %v5364_v3 = vpop.permute.xlu1 %1398  ;;  %v1376_v43 = vadd.f32 %v1368_v63, %v1316_v42  ;;  %v6000_v42 = vld [vmem:[#allocation10_spill] sm:$0xff] }
 0x292   :  { %5987 = vst [vmem:[#allocation21_spill] sm:$0xff] %v5364_v3  ;;  %v1078_v3 = vadd.f32 %v1070_v31, %v1018_v10  ;;  %v1254_v10 = vadd.f32 %v1246_v44, %v1194_v51  ;;  %v1130_v31 = vmul.f32 %v5315_v62, %v5232_v35  ;;  %v1367_v35 = vmul.f32 %v5370_v23, %v5290_v8 }
 0x293   :  { %v1315_v51 = vadd.f32 %v1307_v48, %v1255_v19  ;;  %v1131_v8 = vmul.f32 %v5315_v62, %v5234_v36  ;;  %v5991_v36 = vld [vmem:[#allocation11_spill] sm:$0xff] }
 0x294   :  { %v1314_v6 = vadd.f32 %v1306_v58, %v1254_v10  ;;  %v1138_v46 = vadd.f32 %v1130_v31, %v1078_v3  ;;  %v1249_v3 = vmul.f32 %v5323_v24, %v5262_v50  ;;  %v1197_v10 = vadd.f32 %v1189_v56, %v1137_v1  ;;  %v5995_v1 = vld [vmem:[#allocation6_spill] sm:$0xff]  ;;  %v5997_v56 = vld [vmem:[#allocation7_spill] sm:$0xff] }
 0x295   :  { %v1375_v15 = vadd.f32 %v1367_v35, %v1315_v51  ;;  %v1309_v2 = vmul.f32 %v5355_v60, %v5991_v36  ;;  %v1369_v31 = vmul.f32 %v5370_v23, %v5993_v52  ;;  %v1191_v21 = vmul.f32 %v5317_v53, %v5995_v1 }
 0x296   :  { %v1374_v38 = vadd.f32 %v1366_v55, %v1314_v6  ;;  %v1250_v55 = vmul.f32 %v5323_v24, %v5990_v30  ;;  %v1198_v37 = vadd.f32 %v1190_v47, %v1138_v46  ;;  %v1257_v6 = vadd.f32 %v1249_v3, %v1197_v10 }
 0x297   :  { %v5374_v22 = vpop.permute.xlu0 %1403  ;;  %v1435_v33 = vadd.f32 %v1427_v57, %v1375_v15  ;;  %v1139_v46 = vadd.f32 %v1131_v8, %v5390_v11  ;;  %v1192_v26 = vmul.f32 %v5317_v53, %v5997_v56  ;;  %v5999_v57 = vmov 0.0   ;;  %v6001_v11 = vld [vmem:[#allocation13_spill] sm:$0xff] }
 0x298   :  { %v1434_v44 = vadd.f32 %v1426_v7, %v1374_v38  ;;  %v1310_v7 = vmul.f32 %v5355_v60, %v5992_v20  ;;  %v1258_v19 = vadd.f32 %v1250_v55, %v1198_v37  ;;  %v1317_v35 = vadd.f32 %v1309_v2, %v1257_v6  ;;  %v6002_v2 = vld [vmem:[#allocation14_spill] sm:$0xff]  ;;  %v6004_v20 = vld [vmem:[#allocation19_spill] sm:$0xff] }
 0x299   :  { %v5384_v28 = vpop.permute.xlu1 %1408  ;;  %v5989_v18 = vld [vmem:[#allocation21_spill] sm:$0xff]  ;;  %v1199_v3 = vadd.f32 %v1191_v21, %v1139_v46  ;;  %v1252_v15 = vmul.f32 %v5323_v24, %v6000_v42  ;;  %v1311_v8 = vmul.f32 %v5355_v60, %v6001_v11  ;;  %v4796_v42 = vld [vmem:[#allocation3 + $0x2a0] ss:$8 sps:$4 sm:$0xff]  }
 0x29a   :  { %v1428_v32 = vmul.f32 %v5380_v4, %v5989_v18  ;;  %v1318_v51 = vadd.f32 %v1310_v7, %v1258_v19  ;;  %v1430_v47 = vmul.f32 %v5380_v4, %v5384_v28  ;;  %v1312_v28 = vmul.f32 %v5355_v60, %v6002_v2  ;;  %v4798_v11 = vld [vmem:[#allocation3 + $0x2c0] ss:$8 sps:$4 sm:$0xff]  }
 0x29b   :  { %v1372_v7 = vmul.f32 %v5370_v23, %v6004_v20 }
 0x29c   :  { %v1436_v41 = vadd.f32 %v1428_v32, %v1376_v43  ;;  %v6003_v43 = vld [vmem:[#allocation17_spill] sm:$0xff] }
 0x29f   :  { %v5396_v27 = vpop.permute.xlu0 %1413 }
 0x2a1   :  { %v5411_v9 = vpop.permute.xlu1 %1418 }
 0x2a7   :  { %v1444_v0 = vpop.permute.xlu0 %1443 }
 0x2a8   :  { %v1485_v29 = vmul.f32 %v5400_v12, %v1444_v0 }
 0x2a9   :  { %v1449_v25 = vpop.permute.xlu1 %1448 }
 0x2aa   :  { %v1493_v49 = vadd.f32 %v1485_v29, %v1433_v45  ;;  %v1486_v39 = vmul.f32 %v5400_v12, %v1449_v25  ;;  %v5994_v45 = vld [vmem:[#allocation20_spill] sm:$0xff]  ;;  %v1370_v25 = vmul.f32 %v5370_v23, %v5996_v59 }
 0x2ab   :  { %v1080_v29 = vadd.f32 %v1072_v61, %v5994_v45  ;;  %v5998_v61 = vld [vmem:[#allocation9_spill] sm:$0xff] }
 0x2ac   :  { %v1494_v17 = vadd.f32 %v1486_v39, %v1434_v44  ;;  %v1501_v58 = vmul.f32 0.2, %v1493_v49  ;;  %v1429_v44 = vmul.f32 %v5380_v4, %v5374_v22  ;;  %v1251_v63 = vmul.f32 %v5323_v24, %v5998_v61 }
 0x2ad   :  { %v1378_v18 = vadd.f32 %v1370_v25, %v1318_v51  ;;  %v4791_v51 = vld [vmem:[#allocation3 + $0x250] ss:$8 sps:$4 sm:$0xff]  }
 0x2ae   :  { %v1502_v16 = vmul.f32 0.2, %v1494_v17  ;;  %v1509_v40 = vmax.f32 %v1493_v49, %v1501_v58  ;;  %v1377_v58 = vadd.f32 %v1369_v31, %v1317_v35  ;;  %v1259_v36 = vadd.f32 %v1251_v63, %v1199_v3  ;;  %v4795_v3 = vld [vmem:[#allocation3 + $0x290] ss:$8 sps:$4 sm:$0xff]  }
 0x2af   :  { %v1454_v5 = vpop.permute.xlu0 %1453  ;;  %v1431_v31 = vmul.f32 %v5380_v4, %v5396_v27 }
 0x2b0   :  { %v1487_v50 = vmul.f32 %v5400_v12, %v1454_v5  ;;  %v1510_v14 = vmax.f32 %v1494_v17, %v1502_v16  ;;  %v1140_v17 = vadd.f32 %v1132_v54, %v1080_v29  ;;  %v1437_v16 = vadd.f32 %v1429_v44, %v1377_v58  ;;  %v4792_v58 = vld [vmem:[#allocation3 + $0x260] ss:$8 sps:$4 sm:$0xff]  }
 0x2b1   :  { %v1459_v34 = vpop.permute.xlu1 %1458  ;;  %v1371_v5 = vmul.f32 %v5370_v23, %v6003_v43  ;;  %v1319_v52 = vadd.f32 %v1311_v8, %v1259_v36  ;;  %v4799_v8 = vld [vmem:[#allocation3 + $0x2d0] ss:$8 sps:$4 sm:$0xff]   ;;  %v4800_v43 = vld [vmem:[#allocation3 + $0x2e0] ss:$8 sps:$4 sm:$0xff]  }
 0x2b2   :  { %v1495_v0 = vadd.f32 %v1487_v50, %v1435_v33  ;;  %v1488_v48 = vmul.f32 %v5400_v12, %v1459_v34  ;;  %v1517_v38 = vpack.c.bf16 %v1510_v14, %v1509_v40  ;;  %v1200_v54 = vadd.f32 %v1192_v26, %v1140_v17 }
 0x2b3   :  { %v1438_v50 = vadd.f32 %v1430_v47, %v1378_v18  ;;  %v6005_v17 = vmov 0   ;;  %v4793_v47 = vld [vmem:[#allocation3 + $0x270] ss:$8 sps:$4 sm:$0xff]  }
 0x2b4   :  { %v1503_v49 = vmul.f32 0.2, %v1495_v0  ;;  %v1496_v39 = vadd.f32 %v1488_v48, %v1436_v41  ;;  %4357 = vmatpush3.bf16.msra.mxu1 %v1517_v38  ;;  %v1260_v6 = vadd.f32 %v1252_v15, %v1200_v54  ;;  %v1379_v48 = vadd.f32 %v1371_v5, %v1319_v52  ;;  %v4797_v15 = vld [vmem:[#allocation3 + $0x2b0] ss:$8 sps:$4 sm:$0xff]  }
 0x2b5   :  { %4358 = vmatprep.subr.bf16.mxu1 %v5999_v57  ;;  %v1432_v38 = vmul.f32 %v5380_v4, %v5411_v9  ;;  %v4803_v52 = vld [vmem:[#allocation3 + $0x310] ss:$8 sps:$4 sm:$0xff]  }
 0x2b6   :  { %v1504_v22 = vmul.f32 0.2, %v1496_v39  ;;  %v1511_v10 = vmax.f32 %v1495_v0, %v1503_v49  ;;  %v1320_v0 = vadd.f32 %v1312_v28, %v1260_v6  ;;  %v1439_v21 = vadd.f32 %v1431_v31, %v1379_v48  ;;  %v4802_v6 = vld [vmem:[#allocation3 + $0x300] ss:$8 sps:$4 sm:$0xff]  }
 0x2b7   :  { %v1464_v32 = vpop.permute.xlu0 %1463 }
 0x2b8   :  { %v1512_v30 = vmax.f32 %v1496_v39, %v1504_v22  ;;  %v1489_v55 = vmul.f32 %v5400_v12, %v1464_v32  ;;  %v1380_v29 = vadd.f32 %v1372_v7, %v1320_v0  ;;  %v4794_v22 = vld [vmem:[#allocation3 + $0x280] ss:$8 sps:$4 sm:$0xff]  }
 0x2b9   :  { %v1469_v33 = vpop.permute.xlu1 %1468  ;;  %v4804_v0 = vld [vmem:[#allocation3 + $0x320] ss:$8 sps:$4 sm:$0xff]  }
 0x2ba   :  { %v1497_v40 = vadd.f32 %v1489_v55, %v1437_v16  ;;  %v1490_v14 = vmul.f32 %v5400_v12, %v1469_v33  ;;  %v1518_v37 = vpack.c.bf16 %v1512_v30, %v1511_v10  ;;  %v1440_v27 = vadd.f32 %v1432_v38, %v1380_v29 }
 0x2bc   :  { %v1505_v34 = vmul.f32 0.2, %v1497_v40  ;;  %v1498_v41 = vadd.f32 %v1490_v14, %v1438_v50  ;;  %4359 = vmatpush3.bf16.msra.mxu1 %v1518_v37  ;;  %v4801_v50 = vld [vmem:[#allocation3 + $0x2f0] ss:$8 sps:$4 sm:$0xff]  }
 0x2bd   :  { %4360 = vmatprep.subr.bf16.mxu1 %v5999_v57 }
 0x2be   :  { %v1506_v45 = vmul.f32 0.2, %v1498_v41  ;;  %v1513_v19 = vmax.f32 %v1497_v40, %v1505_v34 }
 0x2bf   :  { %v1474_v1 = vpop.permute.xlu0 %1473 }
 0x2c0   :  { %v1514_v59 = vmax.f32 %v1498_v41, %v1506_v45  ;;  %v1491_v25 = vmul.f32 %v5400_v12, %v1474_v1  ;;  %v4805_v45 = vld [vmem:[#allocation3 + $0x330] ss:$8 sps:$4 sm:$0xff]  }
 0x2c1   :  { %v1479_v35 = vpop.permute.xlu1 %1478 }
 0x2c2   :  { %v1499_v44 = vadd.f32 %v1491_v25, %v1439_v21  ;;  %v1492_v49 = vmul.f32 %v5400_v12, %v1479_v35  ;;  %v1519_v39 = vpack.c.bf16 %v1514_v59, %v1513_v19  ;;  %v4806_v19 = vld [vmem:[#allocation3 + $0x340] ss:$8 sps:$4 sm:$0xff]   ;;  %v4807_v35 = vld [vmem:[#allocation3 + $0x350] ss:$8 sps:$4 sm:$0xff]  }
 0x2c4   :  { %v1507_v46 = vmul.f32 0.2, %v1499_v44  ;;  %v1500_v56 = vadd.f32 %v1492_v49, %v1440_v27  ;;  %4361 = vmatpush3.bf16.msra.mxu1 %v1519_v39  ;;  %v4808_v39 = vld [vmem:[#allocation3 + $0x360] ss:$8 sps:$4 sm:$0xff]  }
 0x2c5   :  { %4362 = vmatprep.subr.bf16.mxu1 %v5999_v57 }
 0x2c6   :  { %v1508_v9 = vmul.f32 0.2, %v1500_v56  ;;  %v1515_v26 = vmax.f32 %v1499_v44, %v1507_v46 }
 0x2c8   :  { %v1516_v61 = vmax.f32 %v1500_v56, %v1508_v9 }
 0x2ca   :  { %v1520_v63 = vpack.c.bf16 %v1516_v61, %v1515_v26 }
 0x2cc   :  { %4363 = vmatpush3.bf16.msra.mxu1 %v1520_v63 }
 0x2cd   :  { %1834 = vmatprep.subr.bf16.mxu1 %v6005_v17 }
 0x2cf   :  { %4365 = vmatmul.mubr.msk.bf16.vlgmr.msra.gmra.mrb[0].mxu1 %vm1566_vm1, %v4791_v51 }
 0x2d0   :  { %4368 = vmatprep.mubr.msk.bf16.mxu1 %vm5030_vm0, %v5999_v57  ;;  %1835 = vmatpush1.bf16.msra.mxu1 %v4800_v43 }
 0x2d1   :  { %1836 = vmatprep.subr.bf16.mxu1 %v6005_v17 }
 0x2d4   :  { %1837 = vmatpush1.bf16.msra.mxu1 %v4801_v50 }
 0x2d5   :  { %1838 = vmatprep.subr.bf16.mxu1 %v6005_v17 }
 0x2d7   :  { %4369 = vmatmul.mubr.msk.bf16.gmra.mrb[4].mxu1 %vm1566_vm1, %v4792_v58 }
 0x2d8   :  { %4372 = vmatprep.mubr.msk.bf16.mxu1 %vm5030_vm0, %v5999_v57  ;;  %1839 = vmatpush1.bf16.msra.mxu1 %v4802_v6 }
 0x2d9   :  { %1840 = vmatprep.subr.bf16.mxu1 %v6005_v17 }
 0x2dc   :  { %1841 = vmatpush1.bf16.msra.mxu1 %v4803_v52 }
 0x2dd   :  { %1842 = vmatprep.subr.bf16.mxu1 %v6005_v17 }
 0x2df   :  { %4373 = vmatmul.mubr.msk.bf16.gmra.mrb[8].mxu1 %vm1566_vm1, %v4793_v47 }
 0x2e0   :  { %4376 = vmatprep.mubr.msk.bf16.mxu1 %vm5030_vm0, %v5999_v57  ;;  %1843 = vmatpush1.bf16.msra.mxu1 %v4804_v0 }
 0x2e1   :  { %1844 = vmatprep.subr.bf16.mxu1 %v6005_v17 }
 0x2e4   :  { %1845 = vmatpush1.bf16.msra.mxu1 %v4805_v45 }
 0x2e5   :  { %1846 = vmatprep.subr.bf16.mxu1 %v6005_v17 }
 0x2e7   :  { %4377 = vmatmul.mubr.msk.bf16.gmra.mrb[12].mxu1 %vm1566_vm1, %v4794_v22 }
 0x2e8   :  { %4380 = vmatprep.mubr.msk.bf16.mxu1 %vm5030_vm0, %v5999_v57  ;;  %1847 = vmatpush1.bf16.msra.mxu1 %v4806_v19 }
 0x2e9   :  { %1848 = vmatprep.subr.bf16.mxu1 %v6005_v17 }
 0x2ec   :  { %1849 = vmatpush1.bf16.msra.mxu1 %v4807_v35 }
 0x2ed   :  { %1850 = vmatprep.subr.bf16.mxu1 %v6005_v17 }
 0x2ef   :  { %4381 = vmatmul.mubr.msk.bf16.gmra.mrb[16].mxu1 %vm1566_vm1, %v4795_v3 }
 0x2f0   :  { %4384 = vmatprep.mubr.msk.bf16.mxu1 %vm5030_vm0, %v5999_v57  ;;  %1851 = vmatpush1.bf16.msra.mxu1 %v4808_v39 }
 0x2f1   :  { %4400 = vmatprep.subr.bf16.mxu1 %v5999_v57 }
 0x2f7   :  { %4385 = vmatmul.mubr.msk.bf16.gmra.mrb[20].mxu1 %vm1566_vm1, %v4796_v42 }
 0x2f8   :  { %4388 = vmatprep.mubr.msk.bf16.mxu1 %vm5030_vm0, %v5999_v57 }
 0x2ff   :  { %4389 = vmatmul.mubr.msk.bf16.gmra.mrb[24].mxu1 %vm1566_vm1, %v4797_v15 }
 0x300   :  { %4392 = vmatprep.mubr.msk.bf16.mxu1 %vm5030_vm0, %v5999_v57 }
 0x307   :  { %4393 = vmatmul.mubr.msk.bf16.gmra.mrb[28].mxu1 %vm1566_vm1, %v4798_v11 }
 0x308   :  { %4396 = vmatprep.mubr.msk.bf16.mxu1 %vm5030_vm0, %v5999_v57 }
 0x30f   :  { %4397 = vmatmul.mubr.msk.bf16.gmra.mrb[32].mxu1 %vm1566_vm1, %v4799_v8 }
 0x3a2   :  { %v5515_v18 = vpop.f32.mrb[0].mxu1 }
 0x3a3   :  { %v4366_v32 = vpop.f32.mrb[1].mxu1 }
 0x3a4   :  { %v5517_v16 = vpop.f32.mrb[2].mxu1 }
 0x3a5   :  { %v4367_v10 = vpop.f32.mrb[3].mxu1 }
 0x3aa   :  { %v1636_v30 = vpop.f32.mrb[4].mxu1 }
 0x3ab   :  { %v4370_v55 = vpop.f32.mrb[5].mxu1 }
 0x3ac   :  { %v1639_v54 = vpop.f32.mrb[6].mxu1 }
 0x3ad   :  { %v4573_v36 = vpack.i.bf16 %v1639_v54, %v1636_v30  ;;  %v4371_v2 = vpop.f32.mrb[7].mxu1 }
 0x3af   :  { %4574 = vrot.lane.b32.xlu0 %v4573_v36, %s5031_s6 }
 0x3b2   :  { %v1644_v28 = vpop.f32.mrb[8].mxu1 }
 0x3b3   :  { %v4374_v5 = vpop.f32.mrb[9].mxu1 }
 0x3b4   :  { %v1647_v33 = vpop.f32.mrb[10].mxu1 }
 0x3b5   :  { %v4578_v40 = vpack.i.bf16 %v1647_v33, %v1644_v28  ;;  %v4375_v14 = vpop.f32.mrb[11].mxu1 }
 0x3b7   :  { %4579 = vrot.lane.b32.xlu1 %v4578_v40, %s5032_s7 }
 0x3ba   :  { %v1652_v37 = vpop.f32.mrb[12].mxu1 }
 0x3bb   :  { %v4378_v20 = vpop.f32.mrb[13].mxu1 }
 0x3bc   :  { %v1655_v7 = vpop.f32.mrb[14].mxu1 }
 0x3bd   :  { %v4583_v31 = vpack.i.bf16 %v1655_v7, %v1652_v37  ;;  %v4379_v34 = vpop.f32.mrb[15].mxu1 }
 0x3bf   :  { %4584 = vrot.lane.b32.xlu0 %v4583_v31, %s5033_s8 }
 0x3c2   :  { %v1660_v41 = vpop.f32.mrb[16].mxu1 }
 0x3c3   :  { %v4382_v48 = vpop.f32.mrb[17].mxu1 }
 0x3c4   :  { %v1663_v38 = vpop.f32.mrb[18].mxu1 }
 0x3c5   :  { %v4588_v29 = vpack.i.bf16 %v1663_v38, %v1660_v41  ;;  %v4383_v1 = vpop.f32.mrb[19].mxu1 }
 0x3c7   :  { %4589 = vrot.lane.b32.xlu1 %v4588_v29, %s5034_s9 }
 0x3ca   :  { %v1668_v21 = vpop.f32.mrb[20].mxu1 }
 0x3cb   :  { %v4386_v59 = vpop.f32.mrb[21].mxu1 }
 0x3cc   :  { %v1671_v25 = vpop.f32.mrb[22].mxu1 }
 0x3cd   :  { %v4593_v27 = vpack.i.bf16 %v1671_v25, %v1668_v21  ;;  %v4387_v44 = vpop.f32.mrb[23].mxu1 }
 0x3cf   :  { %4594 = vrot.lane.b32.xlu0 %v4593_v27, %s5035_s10 }
 0x3d2   :  { %v1676_v49 = vpop.f32.mrb[24].mxu1 }
 0x3d3   :  { %v4390_v46 = vpop.f32.mrb[25].mxu1 }
 0x3d4   :  { %v1679_v56 = vpop.f32.mrb[26].mxu1 }
 0x3d5   :  { %v4598_v9 = vpack.i.bf16 %v1679_v56, %v1676_v49  ;;  %v4391_v26 = vpop.f32.mrb[27].mxu1 }
 0x3d7   :  { %4599 = vrot.lane.b32.xlu1 %v4598_v9, %s5036_s11 }
 0x3da   :  { %v1684_v61 = vpop.f32.mrb[28].mxu1 }
 0x3db   :  { %v4394_v63 = vpop.f32.mrb[29].mxu1 }
 0x3dc   :  { %v1687_v51 = vpop.f32.mrb[30].mxu1  ;;  %v4809_v63 = vld [vmem:[#allocation3 + $0x370] ss:$8 sps:$4 sm:$0xff]  }
 0x3dd   :  { %v4603_v58 = vpack.i.bf16 %v1687_v51, %v1684_v61  ;;  %v4395_v47 = vpop.f32.mrb[31].mxu1  ;;  %v4810_v51 = vld [vmem:[#allocation3 + $0x380] ss:$8 sps:$4 sm:$0xff]  }
 0x3de   :  { %v4812_v47 = vld [vmem:[#allocation3 + $0x3a0] ss:$8 sps:$4 sm:$0xff]  }
 0x3df   :  { %4604 = vrot.lane.b32.xlu0 %v4603_v58, %s5037_s12  ;;  %v4811_v58 = vld [vmem:[#allocation3 + $0x390] ss:$8 sps:$4 sm:$0xff]  }
 0x3e2   :  { %v1692_v22 = vpop.f32.mrb[32].mxu1 }
 0x3e3   :  { %v4398_v3 = vpop.f32.mrb[33].mxu1 }
 0x3e4   :  { %v1695_v42 = vpop.f32.mrb[34].mxu1  ;;  %v4814_v3 = vld [vmem:[#allocation3 + $0x438] ss:$8 sps:$4 sm:$0xff]  }
 0x3e5   :  { %v1776_v15 = vpack.c.bf16 %v1695_v42, %v1692_v22  ;;  %v4399_v11 = vpop.f32.mrb[35].mxu1  ;;  %v4813_v22 = vld [vmem:[#allocation3 + $0x3b0] ss:$0 sps:$4 sm:$0xff]   ;;  %v4815_v42 = vld [vmem:[#allocation3 + $0x3b8] ss:$8 sps:$4 sm:$0xff]  }
 0x3e6   :  { %v4817_v11 = vld [vmem:[#allocation3 + $0x3c8] ss:$8 sps:$4 sm:$0xff]  }
 0x3e7   :  { %4092 = vmatprep.mubr.msk.bf16.mxu1 %vm1755_vm2, %v1776_v15  ;;  %v4816_v15 = vld [vmem:[#allocation3 + $0x448] ss:$8 sps:$4 sm:$0xff]  }
 0x421   :  { %v4575_v8 = vpop.permute.xlu0 %4574 }
 0x422   :  { %v4577_v55 = vunpack.i.h.bf16 %v4575_v8  ;;  %v4576_v54 = vunpack.i.l.bf16 %v4575_v8  ;;  %v4818_v8 = vld [vmem:[#allocation3 + $0x458] ss:$8 sps:$4 sm:$0xff]  }
 0x424   :  { %v1757_v14 = vsel %vm1755_vm2, %v5517_v16, %v4577_v55  ;;  %v1756_v37 = vsel %vm1755_vm2, %v5515_v18, %v4576_v54  ;;  %v4822_v55 = vld [vmem:[#allocation3 + $0x478] ss:$8 sps:$4 sm:$0xff]  }
 0x425   :  { %v4823_v54 = vld [vmem:[#allocation3 + $0x3f8] ss:$8 sps:$4 sm:$0xff]  }
 0x429   :  { %v4580_v32 = vpop.permute.xlu1 %4579 }
 0x42a   :  { %v4582_v36 = vunpack.i.h.bf16 %v4580_v32  ;;  %v4581_v2 = vunpack.i.l.bf16 %v4580_v32  ;;  %v4819_v32 = vld [vmem:[#allocation3 + $0x3d8] ss:$8 sps:$4 sm:$0xff]  }
 0x42c   :  { %v1760_v7 = vsel %vm1758_vm3, %v1757_v14, %v4582_v36  ;;  %v1759_v52 = vsel %vm1758_vm3, %v1756_v37, %v4581_v2 }
 0x431   :  { %v4585_v10 = vpop.permute.xlu0 %4584 }
 0x432   :  { %v4587_v43 = vunpack.i.h.bf16 %v4585_v10  ;;  %v4586_v5 = vunpack.i.l.bf16 %v4585_v10  ;;  %v4820_v10 = vld [vmem:[#allocation3 + $0x468] ss:$8 sps:$4 sm:$0xff]  }
 0x434   :  { %v1763_v41 = vsel %vm1761_vm4, %v1760_v7, %v4587_v43  ;;  %v1762_v0 = vsel %vm1761_vm4, %v1759_v52, %v4586_v5  ;;  %v4828_v52 = vld [vmem:[#allocation3 + $0x4a8] ss:$8 sps:$4 sm:$0xff]  }
 0x439   :  { %v4590_v30 = vpop.permute.xlu1 %4589 }
 0x43a   :  { %v4592_v50 = vunpack.i.h.bf16 %v4590_v30  ;;  %v4591_v40 = vunpack.i.l.bf16 %v4590_v30  ;;  %v4821_v30 = vld [vmem:[#allocation3 + $0x3e8] ss:$8 sps:$4 sm:$0xff]  }
 0x43c   :  { %v1765_v48 = vsel %vm1566_vm1, %v1763_v41, %v4592_v50  ;;  %v1764_v16 = vsel %vm1566_vm1, %v1762_v0, %v4591_v40  ;;  %v4825_v40 = vld [vmem:[#allocation3 + $0x408] ss:$8 sps:$4 sm:$0xff]  }
 0x441   :  { %v4595_v28 = vpop.permute.xlu0 %4594 }
 0x442   :  { %v4597_v6 = vunpack.i.h.bf16 %v4595_v28  ;;  %v4596_v20 = vunpack.i.l.bf16 %v4595_v28 }
 0x444   :  { %v1768_v18 = vsel %vm1766_vm5, %v1765_v48, %v4597_v6  ;;  %v1767_v45 = vsel %vm1766_vm5, %v1764_v16, %v4596_v20  ;;  %v4826_v6 = vld [vmem:[#allocation3 + $0x498] ss:$8 sps:$4 sm:$0xff]  }
 0x445   :  { %v4827_v20 = vld [vmem:[#allocation3 + $0x418] ss:$8 sps:$4 sm:$0xff]  }
 0x449   :  { %v4600_v33 = vpop.permute.xlu1 %4599 }
 0x44a   :  { %v4602_v31 = vunpack.i.h.bf16 %v4600_v33  ;;  %v4601_v34 = vunpack.i.l.bf16 %v4600_v33  ;;  %v4824_v33 = vld [vmem:[#allocation3 + $0x488] ss:$8 sps:$4 sm:$0xff]  }
 0x44c   :  { %v1771_v21 = vsel %vm1769_vm6, %v1768_v18, %v4602_v31  ;;  %v1770_v19 = vsel %vm1769_vm6, %v1767_v45, %v4601_v34  ;;  %v4829_v34 = vld [vmem:[#allocation3 + $0x428] ss:$8 sps:$4 sm:$0xff]  }
 0x451   :  { %v4605_v38 = vpop.permute.xlu0 %4604 }
 0x452   :  { %v4607_v29 = vunpack.i.h.bf16 %v4605_v38  ;;  %v4606_v1 = vunpack.i.l.bf16 %v4605_v38 }
 0x454   :  { %v1774_v59 = vsel %vm1772_vm7, %v1771_v21, %v4607_v29  ;;  %v1773_v25 = vsel %vm1772_vm7, %v1770_v19, %v4606_v1 }
 0x455   :  { %v1775_v35 = vpack.c.bf16 %v1774_v59, %v1773_v25 }
 0x457   :  { %1867 = vmatmul.mubr.bf16.vlgmr.msra.gmra.mrb[36].mxu1 %v1775_v35 }
 0x458   :  { %4402 = vmatprep.mubr.msk.bf16.mxu1 %vm5030_vm0, %v5999_v57 }
 0x52a   :  { %v1868_v27 = vpop.f32.mrb[36].mxu1 }
 0x52b   :  { %v1875_v44 = vmul.f32 0.2, %v1868_v27  ;;  %v1870_v49 = vpop.f32.mrb[37].mxu1 }
 0x52c   :  { %v1871_v39 = vpop.f32.mrb[38].mxu1 }
 0x52d   :  { %v1876_v46 = vmul.f32 0.2, %v1871_v39  ;;  %v1873_v56 = vpop.f32.mrb[39].mxu1  ;;  %v1877_v9 = vmax.f32 %v1868_v27, %v1875_v44 }
 0x52f   :  { %v1878_v26 = vmax.f32 %v1871_v39, %v1876_v46 }
 0x531   :  { %v1879_v61 = vpack.c.bf16 %v1878_v26, %v1877_v9 }
 0x533   :  { %4401 = vmatpush3.bf16.msra.mxu1 %v1879_v61 }
 0x534   :  { %4219 = vmatprep.subr.bf16.mxu1 %v4814_v3 }
 0x536   :  { %4403 = vmatmul.mubr.msk.bf16.vlgmr.msra.gmra.mrb[40].mxu1 %vm1755_vm2, %v4809_v63 }
 0x537   :  { %4406 = vmatprep.mubr.msk.bf16.mxu1 %vm5030_vm0, %v5999_v57  ;;  %4220 = vmatpush3.bf16.msra.mxu1 %v4815_v42 }
 0x538   :  { %4221 = vmatprep.subr.bf16.mxu1 %v4816_v15  ;;  %v4830_v15 = vld [vmem:[#allocation3 + $0x4b8] ss:$8 sps:$4 sm:$0xff]  }
 0x53b   :  { %4222 = vmatpush3.bf16.msra.mxu1 %v4817_v11  ;;  %v4831_v11 = vld [vmem:[#allocation3 + $0x4c8] ss:$8 sps:$4 sm:$0xff]  }
 0x53c   :  { %4223 = vmatprep.subr.bf16.mxu1 %v4818_v8 }
 0x53e   :  { %4407 = vmatmul.mubr.msk.bf16.gmra.mrb[44].mxu1 %vm1755_vm2, %v4810_v51 }
 0x53f   :  { %4410 = vmatprep.mubr.msk.bf16.mxu1 %vm5030_vm0, %v5999_v57  ;;  %4224 = vmatpush3.bf16.msra.mxu1 %v4819_v32  ;;  %v4832_v32 = vld [vmem:[#allocation3 + $0x4d8] ss:$8 sps:$4 sm:$0xff]  }
 0x540   :  { %4225 = vmatprep.subr.bf16.mxu1 %v4820_v10 }
 0x543   :  { %4226 = vmatpush3.bf16.msra.mxu1 %v4821_v30 }
 0x544   :  { %4227 = vmatprep.subr.bf16.mxu1 %v4822_v55 }
 0x546   :  { %4411 = vmatmul.mubr.msk.bf16.gmra.mrb[48].mxu1 %vm1755_vm2, %v4811_v58 }
 0x547   :  { %4414 = vmatprep.mubr.msk.bf16.mxu1 %vm5030_vm0, %v5999_v57  ;;  %4228 = vmatpush3.bf16.msra.mxu1 %v4823_v54 }
 0x548   :  { %4229 = vmatprep.subr.bf16.mxu1 %v4824_v33 }
 0x54b   :  { %4230 = vmatpush3.bf16.msra.mxu1 %v4825_v40 }
 0x54c   :  { %4231 = vmatprep.subr.bf16.mxu1 %v4826_v6  ;;  %v4833_v6 = vld [vmem:[#allocation3 + $0x4e8] ss:$8 sps:$4 sm:$0xff]  }
 0x54e   :  { %4415 = vmatmul.mubr.msk.bf16.gmra.mrb[52].mxu1 %vm1755_vm2, %v4812_v47 }
 0x54f   :  { %4418 = vmatprep.mubr.msk.bf16.mxu1 %vm5030_vm0, %v5999_v57  ;;  %4232 = vmatpush3.bf16.msra.mxu1 %v4827_v20  ;;  %v4834_v20 = vld [vmem:[#allocation3 + $0x578] ss:$8 sps:$4 sm:$0xff]  }
 0x550   :  { %4233 = vmatprep.subr.bf16.mxu1 %v4828_v52  ;;  %v4836_v52 = vld [vmem:[#allocation3 + $0x588] ss:$8 sps:$4 sm:$0xff]  }
 0x553   :  { %4234 = vmatpush3.bf16.msra.mxu1 %v4829_v34  ;;  %v4838_v34 = vld [vmem:[#allocation3 + $0x598] ss:$8 sps:$4 sm:$0xff]  }
 0x554   :  { %4422 = vmatprep.subr.bf16.mxu1 %v5999_v57 }
 0x556   :  { %4419 = vmatmul.mubr.msk.bf16.gmra.mrb[56].mxu1 %vm1755_vm2, %v4813_v22 }
 0x609   :  { %v1952_v36 = vpop.f32.mrb[40].mxu1 }
 0x60a   :  { %v4404_v2 = vpop.f32.mrb[41].mxu1 }
 0x60b   :  { %v1955_v28 = vpop.f32.mrb[42].mxu1 }
 0x60c   :  { %v4405_v43 = vpop.f32.mrb[43].mxu1 }
 0x611   :  { %v1960_v5 = vpop.f32.mrb[44].mxu1 }
 0x612   :  { %v4408_v50 = vpop.f32.mrb[45].mxu1 }
 0x613   :  { %v1963_v14 = vpop.f32.mrb[46].mxu1 }
 0x614   :  { %v4409_v37 = vpop.f32.mrb[47].mxu1 }
 0x619   :  { %v1968_v7 = vpop.f32.mrb[48].mxu1 }
 0x61a   :  { %v4412_v31 = vpop.f32.mrb[49].mxu1 }
 0x61b   :  { %v1971_v41 = vpop.f32.mrb[50].mxu1  ;;  %v4837_v31 = vld [vmem:[#allocation3 + $0x508] ss:$8 sps:$4 sm:$0xff]  }
 0x61c   :  { %v4608_v0 = vpack.i.bf16 %v1955_v28, %v1971_v41  ;;  %v4413_v48 = vpop.f32.mrb[51].mxu1  ;;  %v4839_v41 = vld [vmem:[#allocation3 + $0x518] ss:$8 sps:$4 sm:$0xff]  }
 0x61d   :  { %v4841_v48 = vld [vmem:[#allocation3 + $0x528] ss:$8 sps:$4 sm:$0xff]  }
 0x61e   :  { %4609 = vrot.lane.b32.xlu1 %v4608_v0, %s5032_s7  ;;  %v4840_v0 = vld [vmem:[#allocation3 + $0x5a8] ss:$8 sps:$4 sm:$0xff]  }
 0x621   :  { %v1976_v16 = vpop.f32.mrb[52].mxu1 }
 0x622   :  { %v4613_v38 = vpack.i.bf16 %v1960_v5, %v1976_v16  ;;  %v4416_v18 = vpop.f32.mrb[53].mxu1  ;;  %v4842_v16 = vld [vmem:[#allocation3 + $0x5b8] ss:$8 sps:$4 sm:$0xff]  }
 0x623   :  { %v1979_v45 = vpop.f32.mrb[54].mxu1  ;;  %v4844_v18 = vld [vmem:[#allocation3 + $0x5c8] ss:$8 sps:$4 sm:$0xff]  }
 0x624   :  { %v4618_v29 = vpack.i.bf16 %v1963_v14, %v1979_v45  ;;  %4614 = vrot.lane.b32.xlu0 %v4613_v38, %s5034_s9  ;;  %v4417_v1 = vpop.f32.mrb[55].mxu1  ;;  %v4843_v38 = vld [vmem:[#allocation3 + $0x538] ss:$8 sps:$4 sm:$0xff]   ;;  %v4845_v45 = vld [vmem:[#allocation3 + $0x548] ss:$8 sps:$4 sm:$0xff]  }
 0x625   :  { %v4847_v1 = vld [vmem:[#allocation3 + $0x558] ss:$8 sps:$4 sm:$0xff]  }
 0x626   :  { %4619 = vrot.lane.b32.xlu1 %v4618_v29, %s5036_s11  ;;  %v4846_v29 = vld [vmem:[#allocation3 + $0x5d8] ss:$8 sps:$4 sm:$0xff]  }
 0x629   :  { %v1984_v21 = vpop.f32.mrb[56].mxu1 }
 0x62a   :  { %v4420_v19 = vpop.f32.mrb[57].mxu1  ;;  %v2022_v8 = vpack.c.bf16 %v1984_v21, %v1984_v21  ;;  %v4848_v21 = vld [vmem:[#allocation3 + $0x5e8] ss:$8 sps:$4 sm:$0xff]  }
 0x62b   :  { %v1987_v59 = vpop.f32.mrb[58].mxu1  ;;  %v4849_v19 = vld [vmem:[#allocation3 + $0x568] ss:$8 sps:$4 sm:$0xff]  }
 0x62c   :  { %v4421_v25 = vpop.f32.mrb[59].mxu1 }
 0x690   :  { %v4610_v35 = vpop.permute.xlu1 %4609 }
 0x691   :  { %v4612_v27 = vunpack.i.h.bf16 %v4610_v35  ;;  %v4611_v44 = vunpack.i.l.bf16 %v4610_v35 }
 0x693   :  { %v2014_v56 = vsel %vm1758_vm3, %v1952_v36, %v4612_v27  ;;  %v2017_v9 = vsel %vm1758_vm3, %v1968_v7, %v4611_v44  ;;  %v4835_v7 = vld [vmem:[#allocation3 + $0x4f8] ss:$8 sps:$4 sm:$0xff]  }
 0x696   :  { %v4615_v49 = vpop.permute.xlu0 %4614 }
 0x697   :  { %v4617_v39 = vunpack.i.h.bf16 %v4615_v49  ;;  %v4616_v46 = vunpack.i.l.bf16 %v4615_v49 }
 0x698   :  { %v4620_v26 = vpop.permute.xlu1 %4619 }
 0x699   :  { %v2015_v61 = vsel %vm1566_vm1, %v2014_v56, %v4617_v39  ;;  %v2018_v63 = vsel %vm1566_vm1, %v2017_v9, %v4616_v46  ;;  %v4622_v51 = vunpack.i.h.bf16 %v4620_v26  ;;  %v4621_v58 = vunpack.i.l.bf16 %v4620_v26 }
 0x69b   :  { %v2016_v47 = vsel %vm1769_vm6, %v2015_v61, %v4622_v51  ;;  %v2019_v22 = vsel %vm1769_vm6, %v2018_v63, %v4621_v58  ;;  %v4850_v63 = vld [vmem:[#allocation3 + $0x5f8] ss:$8 sps:$4 sm:$0xff]   ;;  %v4851_v51 = vld [vmem:[#allocation3 + $0x608] ss:$8 sps:$4 sm:$0xff]  }
 0x69c   :  { %v2020_v3 = vpack.c.bf16 %v2016_v47, %v2016_v47  ;;  %v2021_v42 = vpack.c.bf16 %v2019_v22, %v2019_v22  ;;  %v4852_v58 = vld [vmem:[#allocation3 + $0x618] ss:$8 sps:$4 sm:$0xff]   ;;  %v4853_v47 = vld [vmem:[#allocation3 + $0x628] ss:$8 sps:$4 sm:$0xff]  }
 0x69d   :  { %v4854_v22 = vld [vmem:[#allocation3 + $0x638] ss:$8 sps:$4 sm:$0xff]  }
 0x69e   :  { %2166 = vmatprep.mubr.bf16.mxu1 %v2021_v42  ;;  %v4856_v42 = vld [vmem:[#allocation3 + $0x658] ss:$8 sps:$4 sm:$0xff]  }
 0x69f   :  { %2167 = vmatmul.mubr.bf16.vlgmr.msra.gmra.mrb[60].mxu1 %v2020_v3  ;;  %v4855_v3 = vld [vmem:[#allocation3 + $0x648] ss:$8 sps:$4 sm:$0xff]  }
 0x6a0   :  { %4423 = vmatpush3.bf16.msra.mxu1 %v4830_v15  ;;  %4426 = vmatprep.mubr.msk.bf16.mxu1 %vm5030_vm0, %v5999_v57  ;;  %v4857_v15 = vld [vmem:[#allocation3 + $0x668] ss:$8 sps:$4 sm:$0xff]  }
 0x6a1   :  { %4424 = vmatprep.subr.bf16.mxu1 %v5999_v57 }
 0x6a4   :  { %4425 = vmatpush3.bf16.msra.mxu1 %v4831_v11 }
 0x6a7   :  { %4427 = vmatmul.mubr.msk.bf16.vlgmr.msra.gmra.mrb[64].mxu1 %vm1758_vm3, %v2022_v8 }
 0x6a8   :  { %4432 = vmatprep.mubr.msk.bf16.mxu1 %vm2227_vm8, %v4832_v32 }
 0x772   :  { %v4235_v10 = vpop.f32.mrb[60].mxu1 }
 0x773   :  { %v4236_v30 = vpop.f32.mrb[61].mxu1 }
 0x774   :  { %v4237_v55 = vadd.f32 %v4236_v30, %v4235_v10  ;;  %v4238_v54 = vpop.f32.mrb[62].mxu1 }
 0x775   :  { %v4239_v36 = vpop.f32.mrb[63].mxu1  ;;  %v4150_v54 = vld [vmem:[%s5961_s0 + $0x100] sm:$0xff] }
 0x776   :  { %v4151_v36 = vld [vmem:[%s5961_s0 + $0x108] sm:$0xff] }
 0x77a   :  { %v2208_v2 = vpop.f32.mrb[64].mxu1 }
 0x77b   :  { %v2209_v28 = vadd.f32 %v4237_v55, %v2208_v2  ;;  %v4428_v43 = vpop.f32.mrb[65].mxu1 }
 0x77c   :  { %v2211_v5 = vpop.f32.mrb[66].mxu1 }
 0x77d   :  { %v2214_v33 = vmul.f32 0.2, %v2209_v28  ;;  %v4429_v50 = vpop.f32.mrb[67].mxu1  ;;  %v4152_v5 = vld [vmem:[%s5961_s0 + $0x110] sm:$0xff] }
 0x77f   :  { %v2215_v40 = vmax.f32 %v2209_v28, %v2214_v33  ;;  %v2566_v28 = vpack.c.bf16 %v4151_v36, %v4150_v54  ;;  %v4153_v33 = vld [vmem:[%s5961_s0 + $0x118] sm:$0xff]  ;;  %v4866_v54 = vld [vmem:[#allocation3 + $0x24] ss:$8 sps:$4 sm:$0xff]   ;;  %v4867_v36 = vld [vmem:[#allocation3 + $0x20] ss:$8 sps:$4 sm:$0xff]  }
 0x780   :  { %v2567_v50 = vpack.c.bf16 %v4153_v33, %v4152_v5  ;;  %v4871_v5 = vld [vmem:[#allocation3 + $0x40] ss:$8 sps:$4 sm:$0xff]   ;;  %v4872_v33 = vld [vmem:[#allocation3 + $0x54] ss:$8 sps:$4 sm:$0xff]  }
 0x781   :  { %v2216_v14 = vpack.c.bf16 %v2215_v40, %v2215_v40  ;;  %v4862_v40 = vld [vmem:[#allocation3 + $0x4] ss:$8 sps:$4 sm:$0xff]  }
 0x783   :  { %4556 = vmatprep.subr.msk.bf16.mxu1 %vm2234_vm9, %v2216_v14  ;;  %v2236_v37 = vsel %vm2234_vm9, %v2216_v14, 0  ;;  %v4154_v14 = vld [vmem:[%s5961_s0 + $0x120] sm:$0xff] }
 0x784   :  { %4431 = vmatpush3.bf16.msra.mxu1 %v2236_v37  ;;  %v4155_v37 = vld [vmem:[%s5961_s0 + $0x128] sm:$0xff] }
 0x785   :  { %4247 = vmatprep.subr.bf16.mxu1 %v4834_v20  ;;  %v4156_v20 = vld [vmem:[%s5961_s0 + $0x130] sm:$0xff] }
 0x787   :  { %4433 = vmatmul.mubr.msk.bf16.vlgmr.msra.gmra.mrb[68].mxu1 %vm2227_vm8, %v4833_v6  ;;  %v2568_v6 = vpack.c.bf16 %v4155_v37, %v4154_v14  ;;  %v4875_v14 = vld [vmem:[#allocation3 + $0x60] ss:$8 sps:$4 sm:$0xff]   ;;  %v4876_v37 = vld [vmem:[#allocation3 + $0x74] ss:$8 sps:$4 sm:$0xff]  }
 0x788   :  { %4248 = vmatpush3.bf16.msra.mxu1 %v4835_v7  ;;  %v4157_v7 = vld [vmem:[%s5961_s0 + $0x138] sm:$0xff] }
 0x789   :  { %4249 = vmatprep.subr.bf16.mxu1 %v4836_v52  ;;  %v2569_v52 = vpack.c.bf16 %v4157_v7, %v4156_v20  ;;  %v4878_v20 = vld [vmem:[#allocation3 + $0x84] ss:$8 sps:$4 sm:$0xff]   ;;  %v4879_v7 = vld [vmem:[#allocation3 + $0x80] ss:$8 sps:$4 sm:$0xff]  }
 0x78c   :  { %4250 = vmatpush3.bf16.msra.mxu1 %v4837_v31  ;;  %v4158_v31 = vld [vmem:[%s5961_s0 + $0x140] sm:$0xff] }
 0x78d   :  { %4251 = vmatprep.subr.bf16.mxu1 %v4838_v34  ;;  %v4159_v34 = vld [vmem:[%s5961_s0 + $0x148] sm:$0xff] }
 0x790   :  { %4252 = vmatpush3.bf16.msra.mxu1 %v4839_v41  ;;  %v2570_v41 = vpack.c.bf16 %v4159_v34, %v4158_v31  ;;  %v4881_v31 = vld [vmem:[#allocation3 + $0x90] ss:$8 sps:$4 sm:$0xff]   ;;  %v4882_v34 = vld [vmem:[#allocation3 + $0xa4] ss:$8 sps:$4 sm:$0xff]  }
 0x791   :  { %4253 = vmatprep.subr.bf16.mxu1 %v4840_v0  ;;  %v4160_v0 = vld [vmem:[%s5961_s0 + $0x150] sm:$0xff] }
 0x794   :  { %4254 = vmatpush3.bf16.msra.mxu1 %v4841_v48  ;;  %v4161_v48 = vld [vmem:[%s5961_s0 + $0x158] sm:$0xff] }
 0x795   :  { %4255 = vmatprep.subr.bf16.mxu1 %v4842_v16  ;;  %v2571_v16 = vpack.c.bf16 %v4161_v48, %v4160_v0  ;;  %v4884_v0 = vld [vmem:[#allocation3 + $0xb4] ss:$8 sps:$4 sm:$0xff]   ;;  %v4885_v48 = vld [vmem:[#allocation3 + $0xb0] ss:$8 sps:$4 sm:$0xff]  }
 0x798   :  { %4256 = vmatpush3.bf16.msra.mxu1 %v4843_v38  ;;  %v4162_v38 = vld [vmem:[%s5961_s0 + $0x160] sm:$0xff] }
 0x799   :  { %4257 = vmatprep.subr.bf16.mxu1 %v4844_v18  ;;  %v4163_v18 = vld [vmem:[%s5961_s0 + $0x168] sm:$0xff] }
 0x79c   :  { %4258 = vmatpush3.bf16.msra.mxu1 %v4845_v45  ;;  %v2572_v45 = vpack.c.bf16 %v4163_v18, %v4162_v38  ;;  %v4887_v38 = vld [vmem:[#allocation3 + $0xc0] ss:$8 sps:$4 sm:$0xff]   ;;  %v4888_v18 = vld [vmem:[#allocation3 + $0xd4] ss:$8 sps:$4 sm:$0xff]  }
 0x79d   :  { %4259 = vmatprep.subr.bf16.mxu1 %v4846_v29  ;;  %v4164_v29 = vld [vmem:[%s5961_s0 + $0x170] sm:$0xff] }
 0x7a0   :  { %4260 = vmatpush3.bf16.msra.mxu1 %v4847_v1  ;;  %v4165_v1 = vld [vmem:[%s5961_s0 + $0x178] sm:$0xff] }
 0x7a1   :  { %4261 = vmatprep.subr.bf16.mxu1 %v4848_v21  ;;  %v2573_v21 = vpack.c.bf16 %v4165_v1, %v4164_v29  ;;  %v4890_v29 = vld [vmem:[#allocation3 + $0xe4] ss:$8 sps:$4 sm:$0xff]   ;;  %v4891_v1 = vld [vmem:[#allocation3 + $0xe0] ss:$8 sps:$4 sm:$0xff]  }
 0x7a4   :  { %4262 = vmatpush3.bf16.msra.mxu1 %v4849_v19  ;;  %v4166_v19 = vld [vmem:[%s5961_s0 + $0x180] sm:$0xff] }
 0x7a5   :  { %4436 = vmatprep.subr.bf16.mxu1 %v5999_v57 }
 0x85a   :  { %v4434_v59 = vpop.f32.mrb[68].mxu1 }
 0x85b   :  { %v2272_v25 = vpop.f32.mrb[69].mxu1 }
 0x85c   :  { %v4435_v35 = vpop.f32.mrb[70].mxu1 }
 0x85d   :  { %v2275_v27 = vpop.f32.mrb[71].mxu1 }
 0x85e   :  { %v4623_v44 = vpack.i.bf16 %v2275_v27, %v4435_v35  ;;  %v4168_v35 = vld [vmem:[%s5961_s0 + $0x190] sm:$0xff]  ;;  %v4169_v27 = vld [vmem:[%s5961_s0 + $0x198] sm:$0xff] }
 0x860   :  { %4624 = vrot.lane.b32.xlu0 %v4623_v44, %s5034_s9  ;;  %v2575_v44 = vpack.c.bf16 %v4169_v27, %v4168_v35  ;;  %v4896_v35 = vld [vmem:[#allocation3 + $0x114] ss:$8 sps:$4 sm:$0xff]   ;;  %v4897_v27 = vld [vmem:[#allocation3 + $0x110] ss:$8 sps:$4 sm:$0xff]  }
 0x8d2   :  { %v4625_v49 = vpop.permute.xlu0 %4624 }
 0x8d3   :  { %v4627_v39 = vunpack.i.h.bf16 %v4625_v49  ;;  %v4626_v46 = vunpack.i.l.bf16 %v4625_v49  ;;  %v4170_v49 = vld [vmem:[%s5961_s0 + $0x1a0] sm:$0xff] }
 0x8d5   :  { %v2295_v56 = vsel %vm1566_vm1, %v2272_v25, %v4627_v39  ;;  %v2296_v9 = vsel %vm1566_vm1, %v4434_v59, %v4626_v46  ;;  %v4167_v59 = vld [vmem:[%s5961_s0 + $0x188] sm:$0xff] }
 0x8d6   :  { %v2297_v26 = vpack.c.bf16 %v2295_v56, %v2295_v56  ;;  %v2298_v61 = vpack.c.bf16 %v2296_v9, %v2296_v9  ;;  %v2574_v25 = vpack.c.bf16 %v4167_v59, %v4166_v19  ;;  %v4171_v39 = vld [vmem:[%s5961_s0 + $0x1a8] sm:$0xff]  ;;  %v4172_v56 = vld [vmem:[%s5961_s0 + $0x1b0] sm:$0xff]  ;;  %v4173_v9 = vld [vmem:[%s5961_s0 + $0x1b8] sm:$0xff] }
 0x8d7   :  { %v2576_v46 = vpack.c.bf16 %v4171_v39, %v4170_v49  ;;  %v4893_v19 = vld [vmem:[#allocation3 + $0xf0] ss:$8 sps:$4 sm:$0xff]   ;;  %v4894_v59 = vld [vmem:[#allocation3 + $0x104] ss:$8 sps:$4 sm:$0xff]   ;;  %v4899_v49 = vld [vmem:[#allocation3 + $0x120] ss:$8 sps:$4 sm:$0xff]   ;;  %v2438_v39 = vstv %s5963_s2 }
 0x8d8   :  { %2427 = vmatprep.mubr.bf16.mxu1 %v2298_v61  ;;  %v4174_v61 = vld [vmem:[%s5961_s0 + $0x1c0] sm:$0xff] }
 0x8d9   :  { %2428 = vmatmul.mubr.bf16.vlgmr.msra.gmra.mrb[72].mxu1 %v2297_v26  ;;  %v2577_v26 = vpack.c.bf16 %v4173_v9, %v4172_v56 }
 0x8da   :  { %4437 = vmatpush3.bf16.msra.mxu1 %v4850_v63  ;;  %4452 = vmatprep.mubr.msk.bf16.mxu1 %vm5030_vm0, %v5999_v57  ;;  %v4175_v63 = vld [vmem:[%s5961_s0 + $0x1c8] sm:$0xff] }
 0x8db   :  { %4438 = vmatprep.subr.bf16.mxu1 %v5999_v57 }
 0x8de   :  { %4439 = vmatpush3.bf16.msra.mxu1 %v4851_v51  ;;  %v2578_v51 = vpack.c.bf16 %v4175_v63, %v4174_v61 }
 0x8df   :  { %4440 = vmatprep.subr.bf16.mxu1 %v5999_v57 }
 0x8e2   :  { %4441 = vmatpush3.bf16.msra.mxu1 %v4852_v58  ;;  %v4176_v58 = vld [vmem:[%s5961_s0 + $0x1d0] sm:$0xff] }
 0x8e3   :  { %4442 = vmatprep.subr.bf16.mxu1 %v5999_v57 }
 0x8e6   :  { %4443 = vmatpush3.bf16.msra.mxu1 %v4853_v47  ;;  %v4177_v47 = vld [vmem:[%s5961_s0 + $0x1d8] sm:$0xff] }
 0x8e7   :  { %4444 = vmatprep.subr.bf16.mxu1 %v5999_v57 }
 0x8ea   :  { %4445 = vmatpush3.bf16.msra.mxu1 %v4854_v22  ;;  %v2579_v22 = vpack.c.bf16 %v4177_v47, %v4176_v58  ;;  %v4901_v58 = vld [vmem:[#allocation3 + $0x130] ss:$8 sps:$4 sm:$0xff]   ;;  %v4902_v47 = vld [vmem:[#allocation3 + $0x144] ss:$8 sps:$4 sm:$0xff]  }
 0x8eb   :  { %4446 = vmatprep.subr.bf16.mxu1 %v5999_v57 }
 0x8ee   :  { %4447 = vmatpush3.bf16.msra.mxu1 %v4855_v3  ;;  %v4178_v3 = vld [vmem:[%s5961_s0 + $0x1e0] sm:$0xff] }
 0x8ef   :  { %4448 = vmatprep.subr.bf16.mxu1 %v5999_v57 }
 0x8f2   :  { %4449 = vmatpush3.bf16.msra.mxu1 %v4856_v42  ;;  %v4179_v42 = vld [vmem:[%s5961_s0 + $0x1e8] sm:$0xff] }
 0x8f3   :  { %4450 = vmatprep.subr.bf16.mxu1 %v5999_v57 }
 0x8f6   :  { %4451 = vmatpush3.bf16.msra.mxu1 %v4857_v15  ;;  %v2580_v15 = vpack.c.bf16 %v4179_v42, %v4178_v3  ;;  %v4904_v3 = vld [vmem:[#allocation3 + $0x154] ss:$8 sps:$4 sm:$0xff]  }
 0x8f7   :  { %2582 = vmatprep.subr.bf16.mxu1 %v6005_v17 }
 0x9ac   :  { %v4263_v11 = vpop.f32.mrb[72].mxu1 }
 0x9ad   :  { %v4264_v8 = vpop.f32.mrb[73].mxu1 }
 0x9ae   :  { %v4265_v32 = vadd.f32 %v4264_v8, %v4263_v11  ;;  %v4266_v10 = vpop.f32.mrb[74].mxu1  ;;  %v4180_v11 = vld [vmem:[%s5961_s0 + $0x1f0] sm:$0xff]  ;;  %v4181_v8 = vld [vmem:[%s5961_s0 + $0x1f8] sm:$0xff] }
 0x9af   :  { %v4267_v30 = vpop.f32.mrb[75].mxu1  ;;  %v4863_v10 = vld [vmem:[#allocation3] ss:$8 sps:$4 sm:$0xff]  }
 0x9b0   :  { %v2435_v55 = vmul.f32 0.2, %v4265_v32  ;;  %v4864_v30 = vld [vmem:[#allocation3 + $0x14] ss:$8 sps:$4 sm:$0xff]  }
 0x9b2   :  { %v2436_v2 = vmax.f32 %v4265_v32, %v2435_v55  ;;  %v2581_v32 = vpack.c.bf16 %v4181_v8, %v4180_v11  ;;  %v4865_v55 = vld [vmem:[#allocation3 + $0x10] ss:$8 sps:$4 sm:$0xff]  }
 0x9b3   :  { %v4905_v8 = vld [vmem:[#allocation3 + $0x150] ss:$8 sps:$4 sm:$0xff]  }
 0x9b4   :  { %v2437_v43 = vpack.c.bf16 %v2436_v2, %v2436_v2  ;;  %v4868_v2 = vld [vmem:[#allocation3 + $0x34] ss:$8 sps:$4 sm:$0xff]  }
 0x9b6   :  { %4453 = vmatmul.mubr.bf16.vlgmr.msra.gmra.mrb[76].mxu1 %v2437_v43  ;;  %v4870_v43 = vld [vmem:[#allocation3 + $0x44] ss:$8 sps:$4 sm:$0xff]  }
 0x9b7   :  { %2583 = vmatpush1.bf16.msra.mxu1 %v2566_v28  ;;  %2614 = vmatprep.mubr.bf16.mxu1 %v4862_v40  ;;  %v4869_v28 = vld [vmem:[#allocation3 + $0x30] ss:$8 sps:$4 sm:$0xff]   ;;  %v4874_v40 = vld [vmem:[#allocation3 + $0x64] ss:$8 sps:$4 sm:$0xff]  }
 0x9b8   :  { %2584 = vmatprep.subr.bf16.mxu1 %v6005_v17 }
 0x9bb   :  { %2585 = vmatpush1.bf16.msra.mxu1 %v2567_v50  ;;  %v4873_v50 = vld [vmem:[#allocation3 + $0x50] ss:$8 sps:$4 sm:$0xff]  }
 0x9bc   :  { %2586 = vmatprep.subr.bf16.mxu1 %v6005_v17 }
 0x9bf   :  { %2587 = vmatpush1.bf16.msra.mxu1 %v2568_v6  ;;  %v4877_v6 = vld [vmem:[#allocation3 + $0x70] ss:$8 sps:$4 sm:$0xff]  }
 0x9c0   :  { %2588 = vmatprep.subr.bf16.mxu1 %v6005_v17 }
 0x9c3   :  { %2589 = vmatpush1.bf16.msra.mxu1 %v2569_v52  ;;  %v4880_v52 = vld [vmem:[#allocation3 + $0x94] ss:$8 sps:$4 sm:$0xff]  }
 0x9c4   :  { %2590 = vmatprep.subr.bf16.mxu1 %v6005_v17 }
 0x9c7   :  { %2591 = vmatpush1.bf16.msra.mxu1 %v2570_v41  ;;  %v4883_v41 = vld [vmem:[#allocation3 + $0xa0] ss:$8 sps:$4 sm:$0xff]  }
 0x9c8   :  { %2592 = vmatprep.subr.bf16.mxu1 %v6005_v17 }
 0x9cb   :  { %2593 = vmatpush1.bf16.msra.mxu1 %v2571_v16  ;;  %v4886_v16 = vld [vmem:[#allocation3 + $0xc4] ss:$8 sps:$4 sm:$0xff]  }
 0x9cc   :  { %2594 = vmatprep.subr.bf16.mxu1 %v6005_v17 }
 0x9cf   :  { %2595 = vmatpush1.bf16.msra.mxu1 %v2572_v45  ;;  %v4889_v45 = vld [vmem:[#allocation3 + $0xd0] ss:$8 sps:$4 sm:$0xff]  }
 0x9d0   :  { %2596 = vmatprep.subr.bf16.mxu1 %v6005_v17 }
 0x9d3   :  { %2597 = vmatpush1.bf16.msra.mxu1 %v2573_v21  ;;  %v4892_v21 = vld [vmem:[#allocation3 + $0xf4] ss:$8 sps:$4 sm:$0xff]  }
 0x9d4   :  { %2598 = vmatprep.subr.bf16.mxu1 %v6005_v17 }
 0x9d7   :  { %2599 = vmatpush1.bf16.msra.mxu1 %v2574_v25  ;;  %v4895_v25 = vld [vmem:[#allocation3 + $0x100] ss:$8 sps:$4 sm:$0xff]  }
 0x9d8   :  { %2600 = vmatprep.subr.bf16.mxu1 %v6005_v17 }
 0x9db   :  { %2601 = vmatpush1.bf16.msra.mxu1 %v2575_v44  ;;  %v4898_v44 = vld [vmem:[#allocation3 + $0x124] ss:$8 sps:$4 sm:$0xff]  }
 0x9dc   :  { %2602 = vmatprep.subr.bf16.mxu1 %v6005_v17 }
 0x9df   :  { %2603 = vmatpush1.bf16.msra.mxu1 %v2576_v46  ;;  %v4900_v46 = vld [vmem:[#allocation3 + $0x134] ss:$8 sps:$4 sm:$0xff]  }
 0x9e0   :  { %2604 = vmatprep.subr.bf16.mxu1 %v6005_v17 }
 0x9e3   :  { %2605 = vmatpush1.bf16.msra.mxu1 %v2577_v26 }
 0x9e4   :  { %2606 = vmatprep.subr.bf16.mxu1 %v6005_v17 }
 0x9e7   :  { %2607 = vmatpush1.bf16.msra.mxu1 %v2578_v51 }
 0x9e8   :  { %2608 = vmatprep.subr.bf16.mxu1 %v6005_v17 }
 0x9eb   :  { %2609 = vmatpush1.bf16.msra.mxu1 %v2579_v22  ;;  %v4903_v22 = vld [vmem:[#allocation3 + $0x140] ss:$8 sps:$4 sm:$0xff]  }
 0x9ec   :  { %2610 = vmatprep.subr.bf16.mxu1 %v6005_v17 }
 0x9ef   :  { %2611 = vmatpush1.bf16.msra.mxu1 %v2580_v15 }
 0x9f0   :  { %2612 = vmatprep.subr.bf16.mxu1 %v6005_v17 }
 0x9f3   :  { %2613 = vmatpush1.bf16.msra.mxu1 %v2581_v32  ;;  %v4906_v32 = vld [vmem:[#allocation3 + $0x164] ss:$8 sps:$4 sm:$0xff]  }
 0x9f6   :  { %2615 = vmatmul.mubr.bf16.vlgmr.msra.gmra.mrb[80].mxu1 %v4863_v10  ;;  %v4907_v10 = vld [vmem:[#allocation3 + $0x160] ss:$8 sps:$4 sm:$0xff]  }
 0x9f7   :  { %2622 = vmatprep.mubr.bf16.mxu1 %v4864_v30  ;;  %v4908_v30 = vld [vmem:[#allocation3 + $0x174] ss:$8 sps:$4 sm:$0xff]  }
 0x9fe   :  { %2623 = vmatmul.mubr.bf16.gmra.mrb[84].mxu1 %v4865_v55  ;;  %v4909_v55 = vld [vmem:[#allocation3 + $0x170] ss:$8 sps:$4 sm:$0xff]  }
 0x9ff   :  { %2630 = vmatprep.mubr.bf16.mxu1 %v4866_v54  ;;  %v4910_v54 = vld [vmem:[#allocation3 + $0x184] ss:$8 sps:$4 sm:$0xff]  }
 0xa06   :  { %2631 = vmatmul.mubr.bf16.gmra.mrb[88].mxu1 %v4867_v36  ;;  %v4911_v36 = vld [vmem:[#allocation3 + $0x180] ss:$8 sps:$4 sm:$0xff]  }
 0xa07   :  { %2638 = vmatprep.mubr.bf16.mxu1 %v4868_v2  ;;  %v4912_v2 = vld [vmem:[#allocation3 + $0x194] ss:$8 sps:$4 sm:$0xff]  }
 0xa0e   :  { %2639 = vmatmul.mubr.bf16.gmra.mrb[92].mxu1 %v4869_v28  ;;  %v4913_v28 = vld [vmem:[#allocation3 + $0x190] ss:$8 sps:$4 sm:$0xff]  }
 0xa0f   :  { %2646 = vmatprep.mubr.bf16.mxu1 %v4870_v43  ;;  %v4914_v43 = vld [vmem:[#allocation3 + $0x1a4] ss:$8 sps:$4 sm:$0xff]  }
 0xa16   :  { %2647 = vmatmul.mubr.bf16.gmra.mrb[96].mxu1 %v4871_v5  ;;  %v4915_v5 = vld [vmem:[#allocation3 + $0x1a0] ss:$8 sps:$4 sm:$0xff]  }
 0xa17   :  { %2654 = vmatprep.mubr.bf16.mxu1 %v4872_v33  ;;  %v4916_v33 = vld [vmem:[#allocation3 + $0x1b4] ss:$8 sps:$4 sm:$0xff]  }
 0xa1e   :  { %2655 = vmatmul.mubr.bf16.gmra.mrb[100].mxu1 %v4873_v50 }
 0xa1f   :  { %2662 = vmatprep.mubr.bf16.mxu1 %v4874_v40 }
 0xa26   :  { %2663 = vmatmul.mubr.bf16.gmra.mrb[104].mxu1 %v4875_v14 }
 0xa27   :  { %2670 = vmatprep.mubr.bf16.mxu1 %v4876_v37 }
 0xa2e   :  { %2671 = vmatmul.mubr.bf16.gmra.mrb[108].mxu1 %v4877_v6  ;;  %v4917_v6 = vld [vmem:[#allocation3 + $0x1b0] ss:$8 sps:$4 sm:$0xff]  }
 0xa2f   :  { %2678 = vmatprep.mubr.bf16.mxu1 %v4878_v20  ;;  %v4918_v20 = vld [vmem:[#allocation3 + $0x1c4] ss:$8 sps:$4 sm:$0xff]  }
 0xa36   :  { %2679 = vmatmul.mubr.bf16.gmra.mrb[112].mxu1 %v4879_v7 }
 0xa37   :  { %2686 = vmatprep.mubr.bf16.mxu1 %v4880_v52 }
 0xa3e   :  { %2687 = vmatmul.mubr.bf16.gmra.mrb[116].mxu1 %v4881_v31 }
 0xa3f   :  { %2694 = vmatprep.mubr.bf16.mxu1 %v4882_v34 }
 0xa46   :  { %2695 = vmatmul.mubr.bf16.gmra.mrb[120].mxu1 %v4883_v41  ;;  %v4919_v41 = vld [vmem:[#allocation3 + $0x1c0] ss:$8 sps:$4 sm:$0xff]  }
 0xa47   :  { %2702 = vmatprep.mubr.bf16.mxu1 %v4884_v0  ;;  %v4920_v0 = vld [vmem:[#allocation3 + $0x1d4] ss:$8 sps:$4 sm:$0xff]  }
 0xa4e   :  { %2703 = vmatmul.mubr.bf16.gmra.mrb[124].mxu1 %v4885_v48 }
 0xa4f   :  { %2710 = vmatprep.mubr.bf16.mxu1 %v4886_v16 }
 0xa56   :  { %2711 = vmatmul.mubr.bf16.gmra.mrb[128].mxu1 %v4887_v38 }
 0xa57   :  { %2718 = vmatprep.mubr.bf16.mxu1 %v4888_v18 }
 0xa5e   :  { %2719 = vmatmul.mubr.bf16.gmra.mrb[132].mxu1 %v4889_v45  ;;  %v4921_v45 = vld [vmem:[#allocation3 + $0x1d0] ss:$8 sps:$4 sm:$0xff]  }
 0xa5f   :  { %2726 = vmatprep.mubr.bf16.mxu1 %v4890_v29  ;;  %v4922_v29 = vld [vmem:[#allocation3 + $0x1e4] ss:$8 sps:$4 sm:$0xff]  }
 0xa66   :  { %2727 = vmatmul.mubr.bf16.gmra.mrb[136].mxu1 %v4891_v1 }
 0xa67   :  { %2734 = vmatprep.mubr.bf16.mxu1 %v4892_v21 }
 0xa6e   :  { %2735 = vmatmul.mubr.bf16.gmra.mrb[140].mxu1 %v4893_v19 }
 0xa6f   :  { %2742 = vmatprep.mubr.bf16.mxu1 %v4894_v59 }
 0xa76   :  { %2743 = vmatmul.mubr.bf16.gmra.mrb[144].mxu1 %v4895_v25  ;;  %v4923_v25 = vld [vmem:[#allocation3 + $0x1e0] ss:$8 sps:$4 sm:$0xff]  }
 0xa77   :  { %2750 = vmatprep.mubr.bf16.mxu1 %v4896_v35  ;;  %v4924_v35 = vld [vmem:[#allocation3 + $0x1f4] ss:$8 sps:$4 sm:$0xff]  }
 0xa7e   :  { %2751 = vmatmul.mubr.bf16.gmra.mrb[148].mxu1 %v4897_v27 }
 0xa7f   :  { %2758 = vmatprep.mubr.bf16.mxu1 %v4898_v44 }
 0xa86   :  { %2759 = vmatmul.mubr.bf16.gmra.mrb[152].mxu1 %v4899_v49 }
 0xa87   :  { %2766 = vmatprep.mubr.bf16.mxu1 %v4900_v46 }
 0xa89   :  { %v2521_v56 = vpop.f32.mrb[76].mxu1 }
 0xa8a   :  { %v2522_v9 = vadd.f32 %v2521_v56, %v2438_v39  ;;  %v4454_v26 = vpop.f32.mrb[77].mxu1  ;;  %v4925_v56 = vld [vmem:[#allocation3 + $0x1f0] ss:$8 sps:$4 sm:$0xff]  }
 0xa8b   :  { %v2524_v61 = vpop.f32.mrb[78].mxu1 }
 0xa8c   :  { %v2527_v63 = vmul.f32 0.5, %v2522_v9  ;;  %v4455_v51 = vpop.f32.mrb[79].mxu1  ;;  %v4926_v9 = vld [vmem:[#allocation3 + $0x204] ss:$8 sps:$4 sm:$0xff]  }
 0xa8e   :  { %4858 = vtanh.f32 %v2527_v63  ;;  %2767 = vmatmul.mubr.bf16.gmra.mrb[156].mxu1 %v4901_v58  ;;  %v4927_v58 = vld [vmem:[#allocation3 + $0x200] ss:$8 sps:$4 sm:$0xff]  }
 0xa8f   :  { %2774 = vmatprep.mubr.bf16.mxu1 %v4902_v47  ;;  %v4928_v47 = vld [vmem:[#allocation3 + $0x214] ss:$8 sps:$4 sm:$0xff]  }
 0xa96   :  { %2775 = vmatmul.mubr.bf16.gmra.mrb[160].mxu1 %v4903_v22 }
 0xa97   :  { %2782 = vmatprep.mubr.bf16.mxu1 %v4904_v3 }
 0xa98   :  { %v4859_v42 = vpop.eup %4858 }
 0xa99   :  { %v2529_v15 = vadd.f32 1.0, %v4859_v42 }
 0xa9b   :  { %v2530_v11 = vmul.f32 0.5, %v2529_v15 }
 0xa9d   :  { %2532 = vst.msk [vmem:[%s5964_s3] sm:$0x1] %vm2531_vm10, %v2530_v11  ;;  %v4929_v11 = vld [vmem:[#allocation3 + $0x210] ss:$8 sps:$4 sm:$0xff]  }
 0xa9e   :  { %2783 = vmatmul.mubr.bf16.gmra.mrb[164].mxu1 %v4905_v8  ;;  %v4930_v8 = vld [vmem:[#allocation3 + $0x224] ss:$8 sps:$4 sm:$0xff]  }
 0xa9f   :  { %2790 = vmatprep.mubr.bf16.mxu1 %v4906_v32 }
 0xaa6   :  { %2791 = vmatmul.mubr.bf16.gmra.mrb[168].mxu1 %v4907_v10 }
 0xaa7   :  { %2798 = vmatprep.mubr.bf16.mxu1 %v4908_v30 }
 0xaae   :  { %2799 = vmatmul.mubr.bf16.gmra.mrb[172].mxu1 %v4909_v55 }
 0xaaf   :  { %2806 = vmatprep.mubr.bf16.mxu1 %v4910_v54  ;;  %v4931_v54 = vld [vmem:[#allocation3 + $0x220] ss:$8 sps:$4 sm:$0xff]  }
 0xab6   :  { %2807 = vmatmul.mubr.bf16.gmra.mrb[176].mxu1 %v4911_v36  ;;  %v4932_v36 = vld [vmem:[#allocation3 + $0x234] ss:$8 sps:$4 sm:$0xff]  }
 0xab7   :  { %2814 = vmatprep.mubr.bf16.mxu1 %v4912_v2 }
 0xabe   :  { %2815 = vmatmul.mubr.bf16.gmra.mrb[180].mxu1 %v4913_v28 }
 0xabf   :  { %2822 = vmatprep.mubr.bf16.mxu1 %v4914_v43 }
 0xac6   :  { %2823 = vmatmul.mubr.bf16.gmra.mrb[184].mxu1 %v4915_v5 }
 0xac7   :  { %2830 = vmatprep.mubr.bf16.mxu1 %v4916_v33  ;;  %v4933_v33 = vld [vmem:[#allocation3 + $0x230] ss:$8 sps:$4 sm:$0xff]  }
 0xac9   :  { %v2616_v50 = vpop.f32.mrb[80].mxu1 }
 0xaca   :  { %2905 = vperm.xlu1 %4572, %v2616_v50   ;;  %v2618_v40 = vpop.f32.mrb[81].mxu1 }
 0xacb   :  { %v2619_v14 = vpop.f32.mrb[82].mxu1 }
 0xacc   :  { %2910 = vperm.xlu0 %4571, %v2619_v14   ;;  %v2621_v37 = vpop.f32.mrb[83].mxu1 }
 0xace   :  { %2831 = vmatmul.mubr.bf16.gmra.mrb[188].mxu1 %v4917_v6 }
 0xacf   :  { %2838 = vmatprep.mubr.bf16.mxu1 %v4918_v20 }
 0xad1   :  { %v2624_v7 = vpop.f32.mrb[84].mxu1 }
 0xad2   :  { %2915 = vperm.xlu1 %4572, %v2624_v7   ;;  %v2626_v52 = vpop.f32.mrb[85].mxu1 }
 0xad3   :  { %v2627_v31 = vpop.f32.mrb[86].mxu1 }
 0xad4   :  { %2920 = vperm.xlu0 %4571, %v2627_v31   ;;  %v2629_v34 = vpop.f32.mrb[87].mxu1 }
 0xad6   :  { %2839 = vmatmul.mubr.bf16.gmra.mrb[192].mxu1 %v4919_v41 }
 0xad7   :  { %2846 = vmatprep.mubr.bf16.mxu1 %v4920_v0 }
 0xad9   :  { %v2632_v48 = vpop.f32.mrb[88].mxu1 }
 0xada   :  { %2925 = vperm.xlu1 %4572, %v2632_v48   ;;  %v2634_v16 = vpop.f32.mrb[89].mxu1 }
 0xadb   :  { %v2635_v38 = vpop.f32.mrb[90].mxu1 }
 0xadc   :  { %2930 = vperm.xlu0 %4571, %v2635_v38   ;;  %v2637_v18 = vpop.f32.mrb[91].mxu1 }
 0xade   :  { %2847 = vmatmul.mubr.bf16.gmra.mrb[196].mxu1 %v4921_v45 }
 0xadf   :  { %2854 = vmatprep.mubr.bf16.mxu1 %v4922_v29 }
 0xae1   :  { %v2640_v1 = vpop.f32.mrb[92].mxu1 }
 0xae2   :  { %2935 = vperm.xlu1 %4572, %v2640_v1   ;;  %v2642_v21 = vpop.f32.mrb[93].mxu1 }
 0xae3   :  { %v2643_v19 = vpop.f32.mrb[94].mxu1 }
 0xae4   :  { %2940 = vperm.xlu0 %4571, %v2643_v19   ;;  %v2645_v59 = vpop.f32.mrb[95].mxu1 }
 0xae6   :  { %2855 = vmatmul.mubr.bf16.gmra.mrb[200].mxu1 %v4923_v25 }
 0xae7   :  { %2862 = vmatprep.mubr.bf16.mxu1 %v4924_v35 }
 0xae9   :  { %v2648_v27 = vpop.f32.mrb[96].mxu1 }
 0xaea   :  { %2953 = vperm.xlu1 %4572, %v2648_v27   ;;  %v2650_v44 = vpop.f32.mrb[97].mxu1 }
 0xaeb   :  { %v2651_v49 = vpop.f32.mrb[98].mxu1 }
 0xaec   :  { %2958 = vperm.xlu0 %4571, %v2651_v49   ;;  %v2653_v46 = vpop.f32.mrb[99].mxu1 }
 0xaee   :  { %2863 = vmatmul.mubr.bf16.gmra.mrb[204].mxu1 %v4925_v56 }
 0xaef   :  { %2870 = vmatprep.mubr.bf16.mxu1 %v4926_v9 }
 0xaf1   :  { %v2656_v26 = vpop.f32.mrb[100].mxu1 }
 0xaf2   :  { %2963 = vperm.xlu1 %4572, %v2656_v26   ;;  %v2658_v61 = vpop.f32.mrb[101].mxu1 }
 0xaf3   :  { %v2659_v63 = vpop.f32.mrb[102].mxu1 }
 0xaf4   :  { %2968 = vperm.xlu0 %4571, %v2659_v63   ;;  %v2661_v51 = vpop.f32.mrb[103].mxu1 }
 0xaf6   :  { %2871 = vmatmul.mubr.bf16.gmra.mrb[208].mxu1 %v4927_v58 }
 0xaf7   :  { %2878 = vmatprep.mubr.bf16.mxu1 %v4928_v47 }
 0xaf9   :  { %v2664_v22 = vpop.f32.mrb[104].mxu1 }
 0xafa   :  { %2973 = vperm.xlu1 %4572, %v2664_v22   ;;  %v2666_v3 = vpop.f32.mrb[105].mxu1 }
 0xafb   :  { %v2667_v42 = vpop.f32.mrb[106].mxu1 }
 0xafc   :  { %2978 = vperm.xlu0 %4571, %v2667_v42   ;;  %v2669_v15 = vpop.f32.mrb[107].mxu1 }
 0xafe   :  { %2879 = vmatmul.mubr.bf16.gmra.mrb[212].mxu1 %v4929_v11 }
 0xaff   :  { %2886 = vmatprep.mubr.bf16.mxu1 %v4930_v8 }
 0xb01   :  { %v2672_v32 = vpop.f32.mrb[108].mxu1 }
 0xb02   :  { %2983 = vperm.xlu1 %4572, %v2672_v32   ;;  %v2674_v10 = vpop.f32.mrb[109].mxu1 }
 0xb03   :  { %v2675_v30 = vpop.f32.mrb[110].mxu1 }
 0xb04   :  { %2988 = vperm.xlu0 %4571, %v2675_v30   ;;  %v2677_v55 = vpop.f32.mrb[111].mxu1 }
 0xb06   :  { %2887 = vmatmul.mubr.bf16.gmra.mrb[216].mxu1 %v4931_v54 }
 0xb07   :  { %2894 = vmatprep.mubr.bf16.mxu1 %v4932_v36 }
 0xb09   :  { %v2680_v2 = vpop.f32.mrb[112].mxu1 }
 0xb0a   :  { %3009 = vperm.xlu1 %4572, %v2680_v2   ;;  %v2682_v28 = vpop.f32.mrb[113].mxu1 }
 0xb0b   :  { %v2683_v43 = vpop.f32.mrb[114].mxu1 }
 0xb0c   :  { %3014 = vperm.xlu0 %4571, %v2683_v43   ;;  %v2685_v5 = vpop.f32.mrb[115].mxu1 }
 0xb0e   :  { %2895 = vmatmul.mubr.bf16.gmra.mrb[220].mxu1 %v4933_v33 }
 0xb11   :  { %v2688_v50 = vpop.f32.mrb[116].mxu1 }
 0xb12   :  { %3019 = vperm.xlu1 %4572, %v2688_v50   ;;  %v2690_v40 = vpop.f32.mrb[117].mxu1 }
 0xb13   :  { %v2691_v14 = vpop.f32.mrb[118].mxu1  ;;  %v6006_v40 = vld [vmem:[#allocation18_spill] sm:$0xff] }
 0xb14   :  { %3024 = vperm.xlu0 %4571, %v2691_v14   ;;  %v2693_v37 = vpop.f32.mrb[119].mxu1 }
 0xb19   :  { %v2696_v6 = vpop.f32.mrb[120].mxu1 }
 0xb1a   :  { %3029 = vperm.xlu1 %4572, %v2696_v6   ;;  %v2698_v20 = vpop.f32.mrb[121].mxu1 }
 0xb1b   :  { %v2699_v7 = vpop.f32.mrb[122].mxu1 }
 0xb1c   :  { %3034 = vperm.xlu0 %4571, %v2699_v7   ;;  %v2701_v52 = vpop.f32.mrb[123].mxu1 }
 0xb21   :  { %v2704_v31 = vpop.f32.mrb[124].mxu1 }
 0xb22   :  { %3039 = vperm.xlu1 %4572, %v2704_v31   ;;  %v2706_v34 = vpop.f32.mrb[125].mxu1 }
 0xb23   :  { %v2707_v41 = vpop.f32.mrb[126].mxu1 }
 0xb24   :  { %3044 = vperm.xlu0 %4571, %v2707_v41   ;;  %v2709_v0 = vpop.f32.mrb[127].mxu1 }
 0xb29   :  { %v2712_v48 = vpop.f32.mrb[128].mxu1 }
 0xb2a   :  { %3065 = vperm.xlu1 %4572, %v2712_v48   ;;  %v2714_v16 = vpop.f32.mrb[129].mxu1 }
 0xb2b   :  { %v2715_v38 = vpop.f32.mrb[130].mxu1 }
 0xb2c   :  { %3070 = vperm.xlu0 %4571, %v2715_v38   ;;  %v2717_v18 = vpop.f32.mrb[131].mxu1 }
 0xb31   :  { %v2720_v45 = vpop.f32.mrb[132].mxu1 }
 0xb32   :  { %3075 = vperm.xlu1 %4572, %v2720_v45   ;;  %v2722_v29 = vpop.f32.mrb[133].mxu1 }
 0xb33   :  { %v2723_v1 = vpop.f32.mrb[134].mxu1 }
 0xb34   :  { %3080 = vperm.xlu0 %4571, %v2723_v1   ;;  %v2725_v21 = vpop.f32.mrb[135].mxu1 }
 0xb39   :  { %v2728_v19 = vpop.f32.mrb[136].mxu1 }
 0xb3a   :  { %3085 = vperm.xlu1 %4572, %v2728_v19   ;;  %v2730_v59 = vpop.f32.mrb[137].mxu1 }
 0xb3b   :  { %v2731_v25 = vpop.f32.mrb[138].mxu1 }
 0xb3c   :  { %3090 = vperm.xlu0 %4571, %v2731_v25   ;;  %v2733_v35 = vpop.f32.mrb[139].mxu1 }
 0xb41   :  { %v2736_v27 = vpop.f32.mrb[140].mxu1 }
 0xb42   :  { %3095 = vperm.xlu1 %4572, %v2736_v27   ;;  %v2738_v44 = vpop.f32.mrb[141].mxu1 }
 0xb43   :  { %v2739_v49 = vpop.f32.mrb[142].mxu1 }
 0xb44   :  { %3100 = vperm.xlu0 %4571, %v2739_v49   ;;  %v2741_v46 = vpop.f32.mrb[143].mxu1 }
 0xb49   :  { %v2744_v56 = vpop.f32.mrb[144].mxu1  ;;  %v2906_v22 = vpop.permute.xlu1 %2905 }
 0xb4a   :  { %3121 = vperm.xlu1 %4572, %v2744_v56   ;;  %v2746_v9 = vpop.f32.mrb[145].mxu1  ;;  %v2943_v14 = vmul.f32 %v2906_v22, %v6006_v40 }
 0xb4b   :  { %v2747_v26 = vpop.f32.mrb[146].mxu1  ;;  %v2911_v15 = vpop.permute.xlu0 %2910 }
 0xb4c   :  { %3126 = vperm.xlu0 %4571, %v2747_v26   ;;  %v2749_v61 = vpop.f32.mrb[147].mxu1  ;;  %v2944_v52 = vmul.f32 %v2911_v15, %v6006_v40 }
 0xb51   :  { %v2752_v63 = vpop.f32.mrb[148].mxu1  ;;  %v2916_v32 = vpop.permute.xlu1 %2915 }
 0xb52   :  { %3131 = vperm.xlu1 %4572, %v2752_v63   ;;  %v2754_v51 = vpop.f32.mrb[149].mxu1  ;;  %v2945_v38 = vmul.f32 %v2916_v32, %v6006_v40 }
 0xb53   :  { %v2755_v58 = vpop.f32.mrb[150].mxu1  ;;  %v2921_v10 = vpop.permute.xlu0 %2920 }
 0xb54   :  { %3136 = vperm.xlu0 %4571, %v2755_v58   ;;  %v2757_v47 = vpop.f32.mrb[151].mxu1  ;;  %v2946_v21 = vmul.f32 %v2921_v10, %v6006_v40 }
 0xb59   :  { %v2760_v3 = vpop.f32.mrb[152].mxu1  ;;  %v2926_v30 = vpop.permute.xlu1 %2925 }
 0xb5a   :  { %3141 = vperm.xlu1 %4572, %v2760_v3   ;;  %v2762_v42 = vpop.f32.mrb[153].mxu1  ;;  %v2947_v49 = vmul.f32 %v2926_v30, %v6006_v40 }
 0xb5b   :  { %v2763_v11 = vpop.f32.mrb[154].mxu1  ;;  %v2931_v36 = vpop.permute.xlu0 %2930 }
 0xb5c   :  { %3146 = vperm.xlu0 %4571, %v2763_v11   ;;  %v2765_v8 = vpop.f32.mrb[155].mxu1  ;;  %v2948_v61 = vmul.f32 %v2931_v36, %v6006_v40 }
 0xb61   :  { %v2768_v55 = vpop.f32.mrb[156].mxu1  ;;  %v2936_v43 = vpop.permute.xlu1 %2935 }
 0xb62   :  { %3151 = vperm.xlu1 %4572, %v2768_v55   ;;  %v2770_v54 = vpop.f32.mrb[157].mxu1  ;;  %v2949_v42 = vmul.f32 %v2936_v43, %v6006_v40 }
 0xb63   :  { %v2771_v2 = vpop.f32.mrb[158].mxu1  ;;  %v2941_v5 = vpop.permute.xlu0 %2940 }
 0xb64   :  { %3156 = vperm.xlu0 %4571, %v2771_v2   ;;  %v2773_v28 = vpop.f32.mrb[159].mxu1  ;;  %v2950_v10 = vmul.f32 %v2941_v5, %v6006_v40 }
 0xb69   :  { %v2954_v33 = vpop.permute.xlu1 %2953  ;;  %v2776_v50 = vpop.f32.mrb[160].mxu1 }
 0xb6a   :  { %v2991_v37 = vmul.f32 %v2954_v33, %v5310_v13  ;;  %3177 = vperm.xlu1 %4572, %v2776_v50   ;;  %v2778_v6 = vpop.f32.mrb[161].mxu1 }
 0xb6b   :  { %v2959_v20 = vpop.permute.xlu0 %2958  ;;  %v2779_v7 = vpop.f32.mrb[162].mxu1 }
 0xb6c   :  { %v2999_v31 = vadd.f32 %v2991_v37, %v2943_v14  ;;  %v2992_v34 = vmul.f32 %v2959_v20, %v5310_v13  ;;  %3182 = vperm.xlu0 %4571, %v2779_v7   ;;  %v2781_v41 = vpop.f32.mrb[163].mxu1 }
 0xb6e   :  { %v3000_v0 = vadd.f32 %v2992_v34, %v2944_v52 }
 0xb71   :  { %v2964_v48 = vpop.permute.xlu1 %2963  ;;  %v2784_v16 = vpop.f32.mrb[164].mxu1 }
 0xb72   :  { %v2993_v18 = vmul.f32 %v2964_v48, %v5310_v13  ;;  %3187 = vperm.xlu1 %4572, %v2784_v16   ;;  %v2786_v45 = vpop.f32.mrb[165].mxu1 }
 0xb73   :  { %v2969_v29 = vpop.permute.xlu0 %2968  ;;  %v2787_v1 = vpop.f32.mrb[166].mxu1 }
 0xb74   :  { %v3001_v19 = vadd.f32 %v2993_v18, %v2945_v38  ;;  %v2994_v59 = vmul.f32 %v2969_v29, %v5310_v13  ;;  %3192 = vperm.xlu0 %4571, %v2787_v1   ;;  %v2789_v25 = vpop.f32.mrb[167].mxu1 }
 0xb76   :  { %v3002_v35 = vadd.f32 %v2994_v59, %v2946_v21 }
 0xb79   :  { %v2974_v27 = vpop.permute.xlu1 %2973  ;;  %v2792_v44 = vpop.f32.mrb[168].mxu1 }
 0xb7a   :  { %v2995_v46 = vmul.f32 %v2974_v27, %v5310_v13  ;;  %3197 = vperm.xlu1 %4572, %v2792_v44   ;;  %v2794_v56 = vpop.f32.mrb[169].mxu1 }
 0xb7b   :  { %v2979_v9 = vpop.permute.xlu0 %2978  ;;  %v2795_v26 = vpop.f32.mrb[170].mxu1 }
 0xb7c   :  { %v3003_v63 = vadd.f32 %v2995_v46, %v2947_v49  ;;  %v2996_v51 = vmul.f32 %v2979_v9, %v5310_v13  ;;  %3202 = vperm.xlu0 %4571, %v2795_v26   ;;  %v2797_v58 = vpop.f32.mrb[171].mxu1 }
 0xb7e   :  { %v3004_v47 = vadd.f32 %v2996_v51, %v2948_v61 }
 0xb81   :  { %v2984_v22 = vpop.permute.xlu1 %2983  ;;  %v2800_v3 = vpop.f32.mrb[172].mxu1 }
 0xb82   :  { %v2997_v15 = vmul.f32 %v2984_v22, %v5310_v13  ;;  %3207 = vperm.xlu1 %4572, %v2800_v3   ;;  %v2802_v11 = vpop.f32.mrb[173].mxu1 }
 0xb83   :  { %v2989_v8 = vpop.permute.xlu0 %2988  ;;  %v2803_v32 = vpop.f32.mrb[174].mxu1 }
 0xb84   :  { %v3005_v30 = vadd.f32 %v2997_v15, %v2949_v42  ;;  %v2998_v55 = vmul.f32 %v2989_v8, %v5310_v13  ;;  %3212 = vperm.xlu0 %4571, %v2803_v32   ;;  %v2805_v54 = vpop.f32.mrb[175].mxu1 }
 0xb86   :  { %v3006_v36 = vadd.f32 %v2998_v55, %v2950_v10 }
 0xb89   :  { %v3010_v2 = vpop.permute.xlu1 %3009  ;;  %v2808_v28 = vpop.f32.mrb[176].mxu1 }
 0xb8a   :  { %v3047_v33 = vmul.f32 %v3010_v2, %v5315_v62  ;;  %3233 = vperm.xlu1 %4572, %v2808_v28   ;;  %v2810_v43 = vpop.f32.mrb[177].mxu1 }
 0xb8b   :  { %v3015_v50 = vpop.permute.xlu0 %3014  ;;  %v2811_v14 = vpop.f32.mrb[178].mxu1 }
 0xb8c   :  { %v3055_v37 = vadd.f32 %v3047_v33, %v2999_v31  ;;  %v3048_v6 = vmul.f32 %v3015_v50, %v5315_v62  ;;  %3238 = vperm.xlu0 %4571, %v2811_v14   ;;  %v2813_v20 = vpop.f32.mrb[179].mxu1 }
 0xb8e   :  { %v3056_v5 = vadd.f32 %v3048_v6, %v3000_v0 }
 0xb91   :  { %v3020_v40 = vpop.permute.xlu1 %3019  ;;  %v2816_v7 = vpop.f32.mrb[180].mxu1 }
 0xb92   :  { %v3049_v13 = vmul.f32 %v3020_v40, %v5315_v62  ;;  %3243 = vperm.xlu1 %4572, %v2816_v7   ;;  %v2818_v52 = vpop.f32.mrb[181].mxu1 }
 0xb93   :  { %v3025_v34 = vpop.permute.xlu0 %3024  ;;  %v2819_v41 = vpop.f32.mrb[182].mxu1 }
 0xb94   :  { %v3057_v48 = vadd.f32 %v3049_v13, %v3001_v19  ;;  %v3050_v16 = vmul.f32 %v3025_v34, %v5315_v62  ;;  %3248 = vperm.xlu0 %4571, %v2819_v41   ;;  %v2821_v38 = vpop.f32.mrb[183].mxu1 }
 0xb96   :  { %v3058_v18 = vadd.f32 %v3050_v16, %v3002_v35 }
 0xb99   :  { %v3030_v31 = vpop.permute.xlu1 %3029  ;;  %v2824_v45 = vpop.f32.mrb[184].mxu1 }
 0xb9a   :  { %v3051_v29 = vmul.f32 %v3030_v31, %v5315_v62  ;;  %3253 = vperm.xlu1 %4572, %v2824_v45   ;;  %v2826_v0 = vpop.f32.mrb[185].mxu1 }
 0xb9b   :  { %v3035_v1 = vpop.permute.xlu0 %3034  ;;  %v2827_v21 = vpop.f32.mrb[186].mxu1 }
 0xb9c   :  { %v3059_v59 = vadd.f32 %v3051_v29, %v3003_v63  ;;  %v3052_v25 = vmul.f32 %v3035_v1, %v5315_v62  ;;  %3258 = vperm.xlu0 %4571, %v2827_v21   ;;  %v2829_v27 = vpop.f32.mrb[187].mxu1 }
 0xb9e   :  { %v3060_v44 = vadd.f32 %v3052_v25, %v3004_v47 }
 0xba1   :  { %v3040_v19 = vpop.permute.xlu1 %3039  ;;  %v2832_v49 = vpop.f32.mrb[188].mxu1 }
 0xba2   :  { %v3053_v46 = vmul.f32 %v3040_v19, %v5315_v62  ;;  %3263 = vperm.xlu1 %4572, %v2832_v49   ;;  %v2834_v35 = vpop.f32.mrb[189].mxu1 }
 0xba3   :  { %v3045_v56 = vpop.permute.xlu0 %3044  ;;  %v2835_v9 = vpop.f32.mrb[190].mxu1 }
 0xba4   :  { %v3061_v26 = vadd.f32 %v3053_v46, %v3005_v30  ;;  %v3054_v61 = vmul.f32 %v3045_v56, %v5315_v62  ;;  %3268 = vperm.xlu0 %4571, %v2835_v9   ;;  %v2837_v51 = vpop.f32.mrb[191].mxu1 }
 0xba6   :  { %v3062_v58 = vadd.f32 %v3054_v61, %v3006_v36 }
 0xba9   :  { %v3066_v63 = vpop.permute.xlu1 %3065  ;;  %v2840_v22 = vpop.f32.mrb[192].mxu1 }
 0xbaa   :  { %v3103_v3 = vmul.f32 %v3066_v63, %v5317_v53  ;;  %3289 = vperm.xlu1 %4572, %v2840_v22   ;;  %v2842_v47 = vpop.f32.mrb[193].mxu1 }
 0xbab   :  { %v3071_v42 = vpop.permute.xlu0 %3070  ;;  %v2843_v15 = vpop.f32.mrb[194].mxu1 }
 0xbac   :  { %v5746_v11 = vadd.f32 %v3103_v3, %v3055_v37  ;;  %v3104_v8 = vmul.f32 %v3071_v42, %v5317_v53  ;;  %3294 = vperm.xlu0 %4571, %v2843_v15   ;;  %v2845_v32 = vpop.f32.mrb[195].mxu1 }
 0xbae   :  { %v5749_v10 = vadd.f32 %v3104_v8, %v3056_v5 }
 0xbb1   :  { %v3076_v62 = vpop.permute.xlu1 %3075  ;;  %v2848_v30 = vpop.f32.mrb[196].mxu1 }
 0xbb2   :  { %v3105_v55 = vmul.f32 %v3076_v62, %v5317_v53  ;;  %3299 = vperm.xlu1 %4572, %v2848_v30   ;;  %v2850_v54 = vpop.f32.mrb[197].mxu1 }
 0xbb3   :  { %v3081_v36 = vpop.permute.xlu0 %3080  ;;  %v2851_v2 = vpop.f32.mrb[198].mxu1 }
 0xbb4   :  { %v5752_v28 = vadd.f32 %v3105_v55, %v3057_v48  ;;  %v3106_v33 = vmul.f32 %v3081_v36, %v5317_v53  ;;  %3304 = vperm.xlu0 %4571, %v2851_v2   ;;  %v2853_v43 = vpop.f32.mrb[199].mxu1 }
 0xbb6   :  { %v5755_v50 = vadd.f32 %v3106_v33, %v3058_v18 }
 0xbb9   :  { %v3086_v14 = vpop.permute.xlu1 %3085  ;;  %v2856_v37 = vpop.f32.mrb[200].mxu1 }
 0xbba   :  { %v3107_v6 = vmul.f32 %v3086_v14, %v5317_v53  ;;  %3309 = vperm.xlu1 %4572, %v2856_v37   ;;  %v2858_v20 = vpop.f32.mrb[201].mxu1 }
 0xbbb   :  { %v3091_v5 = vpop.permute.xlu0 %3090  ;;  %v2859_v40 = vpop.f32.mrb[202].mxu1 }
 0xbbc   :  { %v3115_v7 = vadd.f32 %v3107_v6, %v3059_v59  ;;  %v3108_v13 = vmul.f32 %v3091_v5, %v5317_v53  ;;  %3314 = vperm.xlu0 %4571, %v2859_v40   ;;  %v2861_v52 = vpop.f32.mrb[203].mxu1 }
 0xbbe   :  { %v3116_v34 = vadd.f32 %v3108_v13, %v3060_v44 }
 0xbc1   :  { %v3096_v41 = vpop.permute.xlu1 %3095  ;;  %v2864_v48 = vpop.f32.mrb[204].mxu1 }
 0xbc2   :  { %v3109_v16 = vmul.f32 %v3096_v41, %v5317_v53  ;;  %3319 = vperm.xlu1 %4572, %v2864_v48   ;;  %v2866_v38 = vpop.f32.mrb[205].mxu1 }
 0xbc3   :  { %v3101_v18 = vpop.permute.xlu0 %3100  ;;  %v2867_v31 = vpop.f32.mrb[206].mxu1 }
 0xbc4   :  { %v3117_v45 = vadd.f32 %v3109_v16, %v3061_v26  ;;  %v3110_v29 = vmul.f32 %v3101_v18, %v5317_v53  ;;  %3324 = vperm.xlu0 %4571, %v2867_v31   ;;  %v2869_v0 = vpop.f32.mrb[207].mxu1 }
 0xbc6   :  { %v3118_v1 = vadd.f32 %v3110_v29, %v3062_v58 }
 0xbc9   :  { %v2872_v21 = vpop.f32.mrb[208].mxu1  ;;  %v3122_v44 = vpop.permute.xlu1 %3121 }
 0xbca   :  { %3345 = vperm.xlu1 %4572, %v2872_v21   ;;  %v2874_v59 = vpop.f32.mrb[209].mxu1  ;;  %v3159_v21 = vmul.f32 %v3122_v44, %v5323_v24 }
 0xbcb   :  { %v2875_v25 = vpop.f32.mrb[210].mxu1  ;;  %v3127_v46 = vpop.permute.xlu0 %3126 }
 0xbcc   :  { %3350 = vperm.xlu0 %4571, %v2875_v25   ;;  %v2877_v27 = vpop.f32.mrb[211].mxu1  ;;  %v3160_v25 = vmul.f32 %v3127_v46, %v5323_v24 }
 0xbd1   :  { %v2880_v19 = vpop.f32.mrb[212].mxu1  ;;  %v3132_v9 = vpop.permute.xlu1 %3131 }
 0xbd2   :  { %3355 = vperm.xlu1 %4572, %v2880_v19   ;;  %v2882_v49 = vpop.f32.mrb[213].mxu1  ;;  %v3161_v46 = vmul.f32 %v3132_v9, %v5323_v24 }
 0xbd3   :  { %v2883_v35 = vpop.f32.mrb[214].mxu1  ;;  %v5761_v26 = vpop.permute.xlu0 %3136  ;;  %v3167_v49 = vadd.f32 %v3159_v21, %v5746_v11 }
 0xbd4   :  { %3360 = vperm.xlu0 %4571, %v2883_v35   ;;  %v2885_v56 = vpop.f32.mrb[215].mxu1 }
 0xbd9   :  { %v3142_v53 = vpop.permute.xlu1 %3141  ;;  %v2888_v61 = vpop.f32.mrb[216].mxu1 }
 0xbda   :  { %v3163_v51 = vmul.f32 %v3142_v53, %v5323_v24  ;;  %3365 = vperm.xlu1 %4572, %v2888_v61   ;;  %v2890_v58 = vpop.f32.mrb[217].mxu1  ;;  %v3168_v61 = vadd.f32 %v3160_v25, %v5749_v10 }
 0xbdb   :  { %v3147_v63 = vpop.permute.xlu0 %3146  ;;  %v2891_v22 = vpop.f32.mrb[218].mxu1 }
 0xbdc   :  { %v5764_v3 = vadd.f32 %v3163_v51, %v3115_v7  ;;  %v3164_v47 = vmul.f32 %v3147_v63, %v5323_v24  ;;  %3370 = vperm.xlu0 %4571, %v2891_v22   ;;  %v2893_v42 = vpop.f32.mrb[219].mxu1 }
 0xbdd   :  { %v3162_v42 = vmul.f32 %v5761_v26, %v5323_v24 }
 0xbde   :  { %v5767_v15 = vadd.f32 %v3164_v47, %v3116_v34 }
 0xbe1   :  { %v3152_v8 = vpop.permute.xlu1 %3151  ;;  %v2896_v32 = vpop.f32.mrb[220].mxu1 }
 0xbe2   :  { %v3165_v62 = vmul.f32 %v3152_v8, %v5323_v24  ;;  %3375 = vperm.xlu1 %4572, %v2896_v32   ;;  %v2898_v30 = vpop.f32.mrb[221].mxu1 }
 0xbe3   :  { %v3157_v55 = vpop.permute.xlu0 %3156  ;;  %v2899_v54 = vpop.f32.mrb[222].mxu1 }
 0xbe4   :  { %v5770_v36 = vadd.f32 %v3165_v62, %v3117_v45  ;;  %v3166_v2 = vmul.f32 %v3157_v55, %v5323_v24  ;;  %3380 = vperm.xlu0 %4571, %v2899_v54   ;;  %v2901_v33 = vpop.f32.mrb[223].mxu1  ;;  %v3169_v55 = vadd.f32 %v3161_v46, %v5752_v28  ;;  %v3170_v24 = vadd.f32 %v3162_v42, %v5755_v50 }
 0xbe6   :  { %v5773_v43 = vadd.f32 %v3166_v2, %v3118_v1 }
 0xbe9   :  { %v3178_v14 = vpop.permute.xlu1 %3177 }
 0xbea   :  { %v3215_v27 = vmul.f32 %v3178_v14, %v5355_v60 }
 0xbeb   :  { %v3183_v37 = vpop.permute.xlu0 %3182 }
 0xbec   :  { %v3216_v35 = vmul.f32 %v3183_v37, %v5355_v60  ;;  %v3223_v51 = vadd.f32 %v3215_v27, %v3167_v49 }
 0xbee   :  { %v3224_v22 = vadd.f32 %v3216_v35, %v3168_v61 }
 0xbf1   :  { %v3188_v6 = vpop.permute.xlu1 %3187 }
 0xbf2   :  { %v3217_v32 = vmul.f32 %v3188_v6, %v5355_v60 }
 0xbf3   :  { %v3193_v20 = vpop.permute.xlu0 %3192 }
 0xbf4   :  { %v3218_v9 = vmul.f32 %v3193_v20, %v5355_v60  ;;  %v3225_v6 = vadd.f32 %v3217_v32, %v3169_v55 }
 0xbf9   :  { %v3198_v5 = vpop.permute.xlu1 %3197 }
 0xbfb   :  { %v5775_v40 = vpop.permute.xlu0 %3202 }
 0xc01   :  { %v5777_v7 = vpop.permute.xlu1 %3207 }
 0xc02   :  { %v3221_v32 = vmul.f32 %v5777_v7, %v5355_v60 }
 0xc03   :  { %v5779_v13 = vpop.permute.xlu0 %3212 }
 0xc04   :  { %v3222_v55 = vmul.f32 %v5779_v13, %v5355_v60 }
 0xc09   :  { %v3234_v52 = vpop.permute.xlu1 %3233 }
 0xc0a   :  { %v3271_v56 = vmul.f32 %v3234_v52, %v5370_v23 }
 0xc0b   :  { %v3239_v34 = vpop.permute.xlu0 %3238 }
 0xc0c   :  { %v3272_v58 = vmul.f32 %v3239_v34, %v5370_v23  ;;  %v3279_v47 = vadd.f32 %v3271_v56, %v3223_v51 }
 0xc0e   :  { %v3280_v10 = vadd.f32 %v3272_v58, %v3224_v22 }
 0xc11   :  { %v3244_v41 = vpop.permute.xlu1 %3243 }
 0xc12   :  { %v3273_v2 = vmul.f32 %v3244_v41, %v5370_v23  ;;  %v3219_v41 = vmul.f32 %v3198_v5, %v5355_v60 }
 0xc13   :  { %v3249_v48 = vpop.permute.xlu0 %3248 }
 0xc14   :  { %v3274_v26 = vmul.f32 %v3249_v48, %v5370_v23  ;;  %v3281_v28 = vadd.f32 %v3273_v2, %v3225_v6  ;;  %v3220_v48 = vmul.f32 %v5775_v40, %v5355_v60  ;;  %v3227_v46 = vadd.f32 %v3219_v41, %v5764_v3 }
 0xc15   :  { %v3230_v60 = vadd.f32 %v3222_v55, %v5773_v43 }
 0xc16   :  { %v3228_v42 = vadd.f32 %v3220_v48, %v5767_v15  ;;  %v4939_v48 = vld [vmem:[#allocation3 + $0x310] ss:$8 sps:$4 sm:$0xff]  }
 0xc19   :  { %v3254_v16 = vpop.permute.xlu1 %3253 }
 0xc1b   :  { %v3259_v38 = vpop.permute.xlu0 %3258 }
 0xc1c   :  { %v3276_v5 = vmul.f32 %v3259_v38, %v5370_v23 }
 0xc21   :  { %v5781_v18 = vpop.permute.xlu1 %3263 }
 0xc22   :  { %v3277_v15 = vmul.f32 %v5781_v18, %v5370_v23 }
 0xc23   :  { %v5783_v31 = vpop.permute.xlu0 %3268 }
 0xc24   :  { %v3278_v7 = vmul.f32 %v5783_v31, %v5370_v23 }
 0xc29   :  { %v3290_v45 = vpop.permute.xlu1 %3289 }
 0xc2a   :  { %v3327_v44 = vmul.f32 %v3290_v45, %v5380_v4 }
 0xc2b   :  { %v3295_v29 = vpop.permute.xlu0 %3294 }
 0xc2c   :  { %v3328_v11 = vmul.f32 %v3295_v29, %v5380_v4  ;;  %v3335_v62 = vadd.f32 %v3327_v44, %v3279_v47  ;;  %v3226_v29 = vadd.f32 %v3218_v9, %v3170_v24 }
 0xc2e   :  { %v3336_v33 = vadd.f32 %v3328_v11, %v3280_v10  ;;  %v3282_v25 = vadd.f32 %v3274_v26, %v3226_v29  ;;  %v3284_v10 = vadd.f32 %v3276_v5, %v3228_v42  ;;  %v4946_v5 = vld [vmem:[#allocation3 + $0x290] ss:$8 sps:$4 sm:$0xff]  }
 0xc31   :  { %v3300_v0 = vpop.permute.xlu1 %3299 }
 0xc32   :  { %v3329_v52 = vmul.f32 %v3300_v0, %v5380_v4  ;;  %v3275_v0 = vmul.f32 %v3254_v16, %v5370_v23 }
 0xc33   :  { %v3305_v1 = vpop.permute.xlu0 %3304 }
 0xc34   :  { %v3330_v20 = vmul.f32 %v3305_v1, %v5380_v4  ;;  %v3337_v49 = vadd.f32 %v3329_v52, %v3281_v28  ;;  %v3283_v40 = vadd.f32 %v3275_v0, %v3227_v46  ;;  %v3286_v52 = vadd.f32 %v3278_v7, %v3230_v60  ;;  %v4940_v0 = vld [vmem:[#allocation3 + $0x270] ss:$8 sps:$4 sm:$0xff]   ;;  %v4947_v46 = vld [vmem:[#allocation3 + $0x360] ss:$8 sps:$4 sm:$0xff]  }
 0xc36   :  { %v3338_v51 = vadd.f32 %v3330_v20, %v3282_v25 }
 0xc39   :  { %v3310_v59 = vpop.permute.xlu1 %3309 }
 0xc3a   :  { %v3331_v22 = vmul.f32 %v3310_v59, %v5380_v4 }
 0xc3b   :  { %v3315_v19 = vpop.permute.xlu0 %3314 }
 0xc3c   :  { %v3332_v16 = vmul.f32 %v3315_v19, %v5380_v4 }
 0xc41   :  { %v5791_v53 = vpop.permute.xlu1 %3319 }
 0xc43   :  { %v5797_v63 = vpop.permute.xlu0 %3324 }
 0xc44   :  { %v3334_v18 = vmul.f32 %v5797_v63, %v5380_v4 }
 0xc46   :  { %v3342_v29 = vadd.f32 %v3334_v18, %v3286_v52 }
 0xc49   :  { %v3346_v8 = vpop.permute.xlu1 %3345 }
 0xc4a   :  { %v3383_v30 = vmul.f32 %v3346_v8, %v5400_v12 }
 0xc4b   :  { %v3351_v54 = vpop.permute.xlu0 %3350 }
 0xc4c   :  { %v3391_v14 = vadd.f32 %v3383_v30, %v3335_v62  ;;  %v3384_v37 = vmul.f32 %v3351_v54, %v5400_v12  ;;  %v3339_v62 = vadd.f32 %v3331_v22, %v3283_v40  ;;  %v3340_v54 = vadd.f32 %v3332_v16, %v3284_v10  ;;  %v4948_v22 = vld [vmem:[#allocation3 + $0x2a0] ss:$8 sps:$4 sm:$0xff]  }
 0xc4e   :  { %v3399_v34 = vmul.f32 0.2, %v3391_v14  ;;  %v3392_v45 = vadd.f32 %v3384_v37, %v3336_v33  ;;  %v3333_v37 = vmul.f32 %v5791_v53, %v5380_v4 }
 0xc50   :  { %v3400_v21 = vmul.f32 0.2, %v3392_v45  ;;  %v3407_v35 = vmax.f32 %v3391_v14, %v3399_v34  ;;  %v3229_v14 = vadd.f32 %v3221_v32, %v5770_v36 }
 0xc51   :  { %v3356_v27 = vpop.permute.xlu1 %3355 }
 0xc52   :  { %v3408_v56 = vmax.f32 %v3392_v45, %v3400_v21  ;;  %v3385_v50 = vmul.f32 %v3356_v27, %v5400_v12  ;;  %v3285_v13 = vadd.f32 %v3277_v15, %v3229_v14 }
 0xc53   :  { %v3361_v61 = vpop.permute.xlu0 %3360 }
 0xc54   :  { %v3415_v58 = vpack.c.bf16 %v3408_v56, %v3407_v35  ;;  %v3393_v44 = vadd.f32 %v3385_v50, %v3337_v49  ;;  %v3386_v1 = vmul.f32 %v3361_v61, %v5400_v12  ;;  %v3341_v23 = vadd.f32 %v3333_v37, %v3285_v13  ;;  %v4934_v49 = vld [vmem:[#allocation3 + $0x250] ss:$8 sps:$4 sm:$0xff]   ;;  %v4935_v35 = vld [vmem:[#allocation3 + $0x2e0] ss:$8 sps:$4 sm:$0xff]  }
 0xc55   :  { %v4937_v56 = vld [vmem:[#allocation3 + $0x260] ss:$8 sps:$4 sm:$0xff]  }
 0xc56   :  { %v3401_v47 = vmul.f32 0.2, %v3393_v44  ;;  %v3394_v11 = vadd.f32 %v3386_v1, %v3338_v51  ;;  %4457 = vmatpush3.bf16.msra.mxu0 %v3415_v58  ;;  %v4938_v50 = vld [vmem:[#allocation3 + $0x300] ss:$8 sps:$4 sm:$0xff]   ;;  %v4942_v51 = vld [vmem:[#allocation3 + $0x330] ss:$8 sps:$4 sm:$0xff]  }
 0xc57   :  { %4458 = vmatprep.subr.bf16.mxu0 %v5999_v57  ;;  %v4941_v61 = vld [vmem:[#allocation3 + $0x320] ss:$8 sps:$4 sm:$0xff]   ;;  %v4945_v1 = vld [vmem:[#allocation3 + $0x350] ss:$8 sps:$4 sm:$0xff]  }
 0xc58   :  { %v3402_v8 = vmul.f32 0.2, %v3394_v11  ;;  %v3409_v3 = vmax.f32 %v3393_v44, %v3401_v47  ;;  %v4943_v58 = vld [vmem:[#allocation3 + $0x280] ss:$8 sps:$4 sm:$0xff]   ;;  %v4949_v47 = vld [vmem:[#allocation3 + $0x2b0] ss:$8 sps:$4 sm:$0xff]  }
 0xc59   :  { %v3366_v38 = vpop.permute.xlu1 %3365  ;;  %v4944_v44 = vld [vmem:[#allocation3 + $0x340] ss:$8 sps:$4 sm:$0xff]  }
 0xc5a   :  { %v3410_v30 = vmax.f32 %v3394_v11, %v3402_v8  ;;  %v3387_v59 = vmul.f32 %v3366_v38, %v5400_v12  ;;  %v4951_v11 = vld [vmem:[#allocation3 + $0x2d0] ss:$8 sps:$4 sm:$0xff]  }
 0xc5b   :  { %v3371_v9 = vpop.permute.xlu0 %3370 }
 0xc5c   :  { %v3416_v19 = vpack.c.bf16 %v3410_v30, %v3409_v3  ;;  %v3395_v2 = vadd.f32 %v3387_v59, %v3339_v62  ;;  %v3388_v33 = vmul.f32 %v3371_v9, %v5400_v12 }
 0xc5e   :  { %v3403_v24 = vmul.f32 0.2, %v3395_v2  ;;  %v3396_v26 = vadd.f32 %v3388_v33, %v3340_v54  ;;  %4459 = vmatpush3.bf16.msra.mxu0 %v3416_v19 }
 0xc5f   :  { %4460 = vmatprep.subr.bf16.mxu0 %v5999_v57 }
 0xc60   :  { %v3404_v6 = vmul.f32 0.2, %v3396_v26  ;;  %v3411_v31 = vmax.f32 %v3395_v2, %v3403_v24 }
 0xc61   :  { %v3376_v34 = vpop.permute.xlu1 %3375 }
 0xc62   :  { %v3412_v36 = vmax.f32 %v3396_v26, %v3404_v6  ;;  %v3389_v45 = vmul.f32 %v3376_v34, %v5400_v12 }
 0xc63   :  { %v3381_v53 = vpop.permute.xlu0 %3380 }
 0xc64   :  { %v3417_v28 = vpack.c.bf16 %v3412_v36, %v3411_v31  ;;  %v3397_v20 = vadd.f32 %v3389_v45, %v3341_v23  ;;  %v3390_v43 = vmul.f32 %v3381_v53, %v5400_v12  ;;  %v4936_v12 = vld [vmem:[#allocation3 + $0x2f0] ss:$8 sps:$4 sm:$0xff]  }
 0xc66   :  { %v3405_v21 = vmul.f32 0.2, %v3397_v20  ;;  %v3398_v41 = vadd.f32 %v3390_v43, %v3342_v29  ;;  %4461 = vmatpush3.bf16.msra.mxu0 %v3417_v28 }
 0xc67   :  { %4462 = vmatprep.subr.bf16.mxu0 %v5999_v57 }
 0xc68   :  { %v3406_v4 = vmul.f32 0.2, %v3398_v41  ;;  %v3413_v63 = vmax.f32 %v3397_v20, %v3405_v21 }
 0xc6a   :  { %v3414_v25 = vmax.f32 %v3398_v41, %v3406_v4 }
 0xc6c   :  { %v3418_v27 = vpack.c.bf16 %v3414_v25, %v3413_v63 }
 0xc6e   :  { %4463 = vmatpush3.bf16.msra.mxu0 %v3418_v27 }
 0xc6f   :  { %3599 = vmatprep.subr.bf16.mxu0 %v6005_v17 }
 0xc71   :  { %4465 = vmatmul.mubr.msk.bf16.vlgmr.msra.gmra.mrb[144].mxu0 %vm1566_vm1, %v4934_v49 }
 0xc72   :  { %4468 = vmatprep.mubr.msk.bf16.mxu0 %vm5030_vm0, %v5999_v57  ;;  %3600 = vmatpush1.bf16.msra.mxu0 %v4935_v35 }
 0xc73   :  { %3601 = vmatprep.subr.bf16.mxu0 %v6005_v17 }
 0xc76   :  { %3602 = vmatpush1.bf16.msra.mxu0 %v4936_v12 }
 0xc77   :  { %3603 = vmatprep.subr.bf16.mxu0 %v6005_v17 }
 0xc79   :  { %4469 = vmatmul.mubr.msk.bf16.gmra.mrb[148].mxu0 %vm1566_vm1, %v4937_v56 }
 0xc7a   :  { %4472 = vmatprep.mubr.msk.bf16.mxu0 %vm5030_vm0, %v5999_v57  ;;  %3604 = vmatpush1.bf16.msra.mxu0 %v4938_v50 }
 0xc7b   :  { %3605 = vmatprep.subr.bf16.mxu0 %v6005_v17 }
 0xc7e   :  { %3606 = vmatpush1.bf16.msra.mxu0 %v4939_v48 }
 0xc7f   :  { %3607 = vmatprep.subr.bf16.mxu0 %v6005_v17 }
 0xc81   :  { %4473 = vmatmul.mubr.msk.bf16.gmra.mrb[152].mxu0 %vm1566_vm1, %v4940_v0 }
 0xc82   :  { %4476 = vmatprep.mubr.msk.bf16.mxu0 %vm5030_vm0, %v5999_v57  ;;  %3608 = vmatpush1.bf16.msra.mxu0 %v4941_v61 }
 0xc83   :  { %3609 = vmatprep.subr.bf16.mxu0 %v6005_v17 }
 0xc86   :  { %3610 = vmatpush1.bf16.msra.mxu0 %v4942_v51 }
 0xc87   :  { %3611 = vmatprep.subr.bf16.mxu0 %v6005_v17 }
 0xc89   :  { %4477 = vmatmul.mubr.msk.bf16.gmra.mrb[156].mxu0 %vm1566_vm1, %v4943_v58 }
 0xc8a   :  { %4480 = vmatprep.mubr.msk.bf16.mxu0 %vm5030_vm0, %v5999_v57  ;;  %3612 = vmatpush1.bf16.msra.mxu0 %v4944_v44 }
 0xc8b   :  { %3613 = vmatprep.subr.bf16.mxu0 %v6005_v17 }
 0xc8e   :  { %3614 = vmatpush1.bf16.msra.mxu0 %v4945_v1 }
 0xc8f   :  { %3615 = vmatprep.subr.bf16.mxu0 %v6005_v17  ;;  %v4950_v17 = vld [vmem:[#allocation3 + $0x2c0] ss:$8 sps:$4 sm:$0xff]  }
 0xc91   :  { %4481 = vmatmul.mubr.msk.bf16.gmra.mrb[160].mxu0 %vm1566_vm1, %v4946_v5 }
 0xc92   :  { %4484 = vmatprep.mubr.msk.bf16.mxu0 %vm5030_vm0, %v5999_v57  ;;  %3616 = vmatpush1.bf16.msra.mxu0 %v4947_v46 }
 0xc93   :  { %4500 = vmatprep.subr.bf16.mxu0 %v5999_v57 }
 0xc99   :  { %4485 = vmatmul.mubr.msk.bf16.gmra.mrb[164].mxu0 %vm1566_vm1, %v4948_v22 }
 0xc9a   :  { %4488 = vmatprep.mubr.msk.bf16.mxu0 %vm5030_vm0, %v5999_v57 }
 0xca1   :  { %4489 = vmatmul.mubr.msk.bf16.gmra.mrb[168].mxu0 %vm1566_vm1, %v4949_v47 }
 0xca2   :  { %4492 = vmatprep.mubr.msk.bf16.mxu0 %vm5030_vm0, %v5999_v57 }
 0xca9   :  { %4493 = vmatmul.mubr.msk.bf16.gmra.mrb[172].mxu0 %vm1566_vm1, %v4950_v17 }
 0xcaa   :  { %4496 = vmatprep.mubr.msk.bf16.mxu0 %vm5030_vm0, %v5999_v57 }
 0xcb1   :  { %4497 = vmatmul.mubr.msk.bf16.gmra.mrb[176].mxu0 %vm1566_vm1, %v4951_v11 }
 0xd44   :  { %v5879_v42 = vpop.f32.mrb[144].mxu0 }
 0xd45   :  { %v4466_v40 = vpop.f32.mrb[145].mxu0 }
 0xd46   :  { %v5881_v16 = vpop.f32.mrb[146].mxu0 }
 0xd47   :  { %v4467_v8 = vpop.f32.mrb[147].mxu0 }
 0xd4c   :  { %v3461_v32 = vpop.f32.mrb[148].mxu0 }
 0xd4d   :  { %v4470_v10 = vpop.f32.mrb[149].mxu0 }
 0xd4e   :  { %v3464_v38 = vpop.f32.mrb[150].mxu0 }
 0xd4f   :  { %v4628_v62 = vpack.i.bf16 %v3464_v38, %v3461_v32  ;;  %v4471_v3 = vpop.f32.mrb[151].mxu0 }
 0xd51   :  { %4629 = vrot.lane.b32.xlu1 %v4628_v62, %s5031_s6 }
 0xd54   :  { %v3469_v30 = vpop.f32.mrb[152].mxu0 }
 0xd55   :  { %v4474_v59 = vpop.f32.mrb[153].mxu0 }
 0xd56   :  { %v3472_v55 = vpop.f32.mrb[154].mxu0 }
 0xd57   :  { %v4633_v15 = vpack.i.bf16 %v3472_v55, %v3469_v30  ;;  %v4475_v9 = vpop.f32.mrb[155].mxu0 }
 0xd59   :  { %4634 = vrot.lane.b32.xlu0 %v4633_v15, %s5032_s7 }
 0xd5c   :  { %v3477_v54 = vpop.f32.mrb[156].mxu0 }
 0xd5d   :  { %v4478_v19 = vpop.f32.mrb[157].mxu0 }
 0xd5e   :  { %v3480_v2 = vpop.f32.mrb[158].mxu0 }
 0xd5f   :  { %v4638_v33 = vpack.i.bf16 %v3480_v2, %v3477_v54  ;;  %v4479_v7 = vpop.f32.mrb[159].mxu0 }
 0xd61   :  { %4639 = vrot.lane.b32.xlu1 %v4638_v33, %s5033_s8 }
 0xd64   :  { %v3485_v14 = vpop.f32.mrb[160].mxu0 }
 0xd65   :  { %v4482_v37 = vpop.f32.mrb[161].mxu0 }
 0xd66   :  { %v3488_v24 = vpop.f32.mrb[162].mxu0 }
 0xd67   :  { %v4643_v26 = vpack.i.bf16 %v3488_v24, %v3485_v14  ;;  %v4483_v60 = vpop.f32.mrb[163].mxu0 }
 0xd69   :  { %4644 = vrot.lane.b32.xlu0 %v4643_v26, %s5034_s9 }
 0xd6c   :  { %v3493_v13 = vpop.f32.mrb[164].mxu0 }
 0xd6d   :  { %v4486_v18 = vpop.f32.mrb[165].mxu0 }
 0xd6e   :  { %v3496_v6 = vpop.f32.mrb[166].mxu0 }
 0xd6f   :  { %v4648_v52 = vpack.i.bf16 %v3496_v6, %v3493_v13  ;;  %v4487_v34 = vpop.f32.mrb[167].mxu0 }
 0xd70   :  { %v4953_v34 = vld [vmem:[#allocation3 + $0x370] ss:$8 sps:$4 sm:$0xff]  }
 0xd71   :  { %4649 = vrot.lane.b32.xlu1 %v4648_v52, %s5035_s10  ;;  %v4952_v52 = vld [vmem:[#allocation3 + $0x438] ss:$8 sps:$4 sm:$0xff]  }
 0xd74   :  { %v3501_v23 = vpop.f32.mrb[168].mxu0 }
 0xd75   :  { %v4490_v31 = vpop.f32.mrb[169].mxu0 }
 0xd76   :  { %v3504_v36 = vpop.f32.mrb[170].mxu0  ;;  %v4955_v31 = vld [vmem:[#allocation3 + $0x448] ss:$8 sps:$4 sm:$0xff]  }
 0xd77   :  { %v4653_v45 = vpack.i.bf16 %v3504_v36, %v3501_v23  ;;  %v4491_v53 = vpop.f32.mrb[171].mxu0  ;;  %v4954_v23 = vld [vmem:[#allocation3 + $0x3b8] ss:$8 sps:$4 sm:$0xff]   ;;  %v4956_v36 = vld [vmem:[#allocation3 + $0x3c8] ss:$8 sps:$4 sm:$0xff]  }
 0xd78   :  { %v4958_v53 = vld [vmem:[#allocation3 + $0x380] ss:$8 sps:$4 sm:$0xff]  }
 0xd79   :  { %4654 = vrot.lane.b32.xlu0 %v4653_v45, %s5036_s11  ;;  %v4957_v45 = vld [vmem:[#allocation3 + $0x458] ss:$8 sps:$4 sm:$0xff]  }
 0xd7c   :  { %v3509_v29 = vpop.f32.mrb[172].mxu0 }
 0xd7d   :  { %v4494_v28 = vpop.f32.mrb[173].mxu0 }
 0xd7e   :  { %v3512_v20 = vpop.f32.mrb[174].mxu0  ;;  %v4960_v28 = vld [vmem:[#allocation3 + $0x468] ss:$8 sps:$4 sm:$0xff]  }
 0xd7f   :  { %v4658_v43 = vpack.i.bf16 %v3512_v20, %v3509_v29  ;;  %v4495_v21 = vpop.f32.mrb[175].mxu0  ;;  %v4959_v29 = vld [vmem:[#allocation3 + $0x3d8] ss:$8 sps:$4 sm:$0xff]   ;;  %v4961_v20 = vld [vmem:[#allocation3 + $0x3e8] ss:$8 sps:$4 sm:$0xff]  }
 0xd80   :  { %v4963_v21 = vld [vmem:[#allocation3 + $0x390] ss:$8 sps:$4 sm:$0xff]  }
 0xd81   :  { %4659 = vrot.lane.b32.xlu1 %v4658_v43, %s5037_s12  ;;  %v4962_v43 = vld [vmem:[#allocation3 + $0x478] ss:$8 sps:$4 sm:$0xff]  }
 0xd84   :  { %v3517_v41 = vpop.f32.mrb[176].mxu0 }
 0xd85   :  { %v4498_v4 = vpop.f32.mrb[177].mxu0 }
 0xd86   :  { %v3520_v63 = vpop.f32.mrb[178].mxu0  ;;  %v4965_v4 = vld [vmem:[#allocation3 + $0x488] ss:$8 sps:$4 sm:$0xff]  }
 0xd87   :  { %v3595_v25 = vpack.c.bf16 %v3520_v63, %v3517_v41  ;;  %v4499_v27 = vpop.f32.mrb[179].mxu0  ;;  %v4964_v41 = vld [vmem:[#allocation3 + $0x3f8] ss:$8 sps:$4 sm:$0xff]   ;;  %v4966_v63 = vld [vmem:[#allocation3 + $0x408] ss:$8 sps:$4 sm:$0xff]  }
 0xd88   :  { %v4968_v27 = vld [vmem:[#allocation3 + $0x3a0] ss:$8 sps:$4 sm:$0xff]  }
 0xd89   :  { %4191 = vmatprep.mubr.msk.bf16.mxu0 %vm1755_vm2, %v3595_v25  ;;  %v4967_v25 = vld [vmem:[#allocation3 + $0x498] ss:$8 sps:$4 sm:$0xff]  }
 0xdc3   :  { %v4630_v49 = vpop.permute.xlu1 %4629 }
 0xdc4   :  { %v4632_v50 = vunpack.i.h.bf16 %v4630_v49  ;;  %v4631_v48 = vunpack.i.l.bf16 %v4630_v49  ;;  %v4969_v49 = vld [vmem:[#allocation3 + $0x418] ss:$8 sps:$4 sm:$0xff]  }
 0xdc6   :  { %v3581_v22 = vsel %vm1755_vm2, %v5881_v16, %v4632_v50  ;;  %v3580_v47 = vsel %vm1755_vm2, %v5879_v42, %v4631_v48 }
 0xdcb   :  { %v4635_v35 = vpop.permute.xlu0 %4634 }
 0xdcc   :  { %v4637_v0 = vunpack.i.h.bf16 %v4635_v35  ;;  %v4636_v61 = vunpack.i.l.bf16 %v4635_v35  ;;  %v4970_v35 = vld [vmem:[#allocation3 + $0x4a8] ss:$8 sps:$4 sm:$0xff]  }
 0xdce   :  { %v3583_v40 = vsel %vm1758_vm3, %v3581_v22, %v4637_v0  ;;  %v3582_v8 = vsel %vm1758_vm3, %v3580_v47, %v4636_v61 }
 0xdd3   :  { %v4640_v12 = vpop.permute.xlu1 %4639 }
 0xdd4   :  { %v4642_v58 = vunpack.i.h.bf16 %v4640_v12  ;;  %v4641_v44 = vunpack.i.l.bf16 %v4640_v12  ;;  %v4971_v12 = vld [vmem:[#allocation3 + $0x428] ss:$8 sps:$4 sm:$0xff]  }
 0xdd6   :  { %v3585_v38 = vsel %vm1761_vm4, %v3583_v40, %v4642_v58  ;;  %v3584_v62 = vsel %vm1761_vm4, %v3582_v8, %v4641_v44 }
 0xddb   :  { %v4645_v56 = vpop.permute.xlu0 %4644 }
 0xddc   :  { %v4647_v5 = vunpack.i.h.bf16 %v4645_v56  ;;  %v4646_v46 = vunpack.i.l.bf16 %v4645_v56  ;;  %v4972_v56 = vld [vmem:[#allocation3 + $0x3b0] ss:$0 sps:$4 sm:$0xff]  }
 0xdde   :  { %v3587_v3 = vsel %vm1566_vm1, %v3585_v38, %v4647_v5  ;;  %v3586_v30 = vsel %vm1566_vm1, %v3584_v62, %v4646_v46 }
 0xde3   :  { %v4650_v51 = vpop.permute.xlu1 %4649 }
 0xde4   :  { %v4652_v17 = vunpack.i.h.bf16 %v4650_v51  ;;  %v4651_v11 = vunpack.i.l.bf16 %v4650_v51 }
 0xde6   :  { %v3589_v59 = vsel %vm1766_vm5, %v3587_v3, %v4652_v17  ;;  %v3588_v42 = vsel %vm1766_vm5, %v3586_v30, %v4651_v11 }
 0xdeb   :  { %v4655_v1 = vpop.permute.xlu0 %4654 }
 0xdec   :  { %v4657_v32 = vunpack.i.h.bf16 %v4655_v1  ;;  %v4656_v10 = vunpack.i.l.bf16 %v4655_v1 }
 0xdee   :  { %v3591_v9 = vsel %vm1769_vm6, %v3589_v59, %v4657_v32  ;;  %v3590_v54 = vsel %vm1769_vm6, %v3588_v42, %v4656_v10 }
 0xdf3   :  { %v4660_v16 = vpop.permute.xlu1 %4659 }
 0xdf4   :  { %v4662_v55 = vunpack.i.h.bf16 %v4660_v16  ;;  %v4661_v15 = vunpack.i.l.bf16 %v4660_v16 }
 0xdf6   :  { %v3593_v19 = vsel %vm1772_vm7, %v3591_v9, %v4662_v55  ;;  %v3592_v2 = vsel %vm1772_vm7, %v3590_v54, %v4661_v15 }
 0xdf7   :  { %v3594_v33 = vpack.c.bf16 %v3593_v19, %v3592_v2 }
 0xdf9   :  { %3632 = vmatmul.mubr.bf16.vlgmr.msra.gmra.mrb[180].mxu0 %v3594_v33 }
 0xdfa   :  { %4502 = vmatprep.mubr.msk.bf16.mxu0 %vm5030_vm0, %v5999_v57 }
 0xecc   :  { %v3633_v7 = vpop.f32.mrb[180].mxu0 }
 0xecd   :  { %v3640_v14 = vmul.f32 0.2, %v3633_v7  ;;  %v3635_v37 = vpop.f32.mrb[181].mxu0 }
 0xece   :  { %v3636_v24 = vpop.f32.mrb[182].mxu0 }
 0xecf   :  { %v3641_v26 = vmul.f32 0.2, %v3636_v24  ;;  %v3638_v60 = vpop.f32.mrb[183].mxu0  ;;  %v3642_v13 = vmax.f32 %v3633_v7, %v3640_v14 }
 0xed1   :  { %v3643_v18 = vmax.f32 %v3636_v24, %v3641_v26 }
 0xed3   :  { %v3644_v6 = vpack.c.bf16 %v3643_v18, %v3642_v13 }
 0xed5   :  { %4501 = vmatpush3.bf16.msra.mxu0 %v3644_v6  ;;  %v4973_v6 = vld [vmem:[#allocation3 + $0x4b8] ss:$8 sps:$4 sm:$0xff]  }
 0xed6   :  { %4297 = vmatprep.subr.bf16.mxu0 %v4952_v52 }
 0xed8   :  { %4503 = vmatmul.mubr.msk.bf16.vlgmr.msra.gmra.mrb[184].mxu0 %vm1755_vm2, %v4953_v34  ;;  %v4974_v34 = vld [vmem:[#allocation3 + $0x4c8] ss:$8 sps:$4 sm:$0xff]  }
 0xed9   :  { %4506 = vmatprep.mubr.msk.bf16.mxu0 %vm5030_vm0, %v5999_v57  ;;  %4298 = vmatpush3.bf16.msra.mxu0 %v4954_v23  ;;  %v4975_v23 = vld [vmem:[#allocation3 + $0x4d8] ss:$8 sps:$4 sm:$0xff]  }
 0xeda   :  { %4299 = vmatprep.subr.bf16.mxu0 %v4955_v31 }
 0xedd   :  { %4300 = vmatpush3.bf16.msra.mxu0 %v4956_v36 }
 0xede   :  { %4301 = vmatprep.subr.bf16.mxu0 %v4957_v45 }
 0xee0   :  { %4507 = vmatmul.mubr.msk.bf16.gmra.mrb[188].mxu0 %vm1755_vm2, %v4958_v53 }
 0xee1   :  { %4510 = vmatprep.mubr.msk.bf16.mxu0 %vm5030_vm0, %v5999_v57  ;;  %4302 = vmatpush3.bf16.msra.mxu0 %v4959_v29 }
 0xee2   :  { %4303 = vmatprep.subr.bf16.mxu0 %v4960_v28 }
 0xee5   :  { %4304 = vmatpush3.bf16.msra.mxu0 %v4961_v20 }
 0xee6   :  { %4305 = vmatprep.subr.bf16.mxu0 %v4962_v43 }
 0xee8   :  { %4511 = vmatmul.mubr.msk.bf16.gmra.mrb[192].mxu0 %vm1755_vm2, %v4963_v21 }
 0xee9   :  { %4514 = vmatprep.mubr.msk.bf16.mxu0 %vm5030_vm0, %v5999_v57  ;;  %4306 = vmatpush3.bf16.msra.mxu0 %v4964_v41 }
 0xeea   :  { %4307 = vmatprep.subr.bf16.mxu0 %v4965_v4 }
 0xeed   :  { %4308 = vmatpush3.bf16.msra.mxu0 %v4966_v63 }
 0xeee   :  { %4309 = vmatprep.subr.bf16.mxu0 %v4967_v25 }
 0xef0   :  { %4515 = vmatmul.mubr.msk.bf16.gmra.mrb[196].mxu0 %vm1755_vm2, %v4968_v27 }
 0xef1   :  { %4518 = vmatprep.mubr.msk.bf16.mxu0 %vm5030_vm0, %v5999_v57  ;;  %4310 = vmatpush3.bf16.msra.mxu0 %v4969_v49  ;;  %v4976_v49 = vld [vmem:[#allocation3 + $0x578] ss:$8 sps:$4 sm:$0xff]  }
 0xef2   :  { %4311 = vmatprep.subr.bf16.mxu0 %v4970_v35  ;;  %v4977_v35 = vld [vmem:[#allocation3 + $0x4e8] ss:$8 sps:$4 sm:$0xff]  }
 0xef5   :  { %4312 = vmatpush3.bf16.msra.mxu0 %v4971_v12  ;;  %v4978_v12 = vld [vmem:[#allocation3 + $0x4f8] ss:$8 sps:$4 sm:$0xff]  }
 0xef6   :  { %4522 = vmatprep.subr.bf16.mxu0 %v5999_v57 }
 0xef8   :  { %4519 = vmatmul.mubr.msk.bf16.gmra.mrb[200].mxu0 %vm1755_vm2, %v4972_v56  ;;  %v4979_v56 = vld [vmem:[#allocation3 + $0x588] ss:$8 sps:$4 sm:$0xff]  }
 0xfab   :  { %v3679_v50 = vpop.f32.mrb[184].mxu0 }
 0xfac   :  { %v4504_v48 = vpop.f32.mrb[185].mxu0 }
 0xfad   :  { %v3682_v0 = vpop.f32.mrb[186].mxu0  ;;  %v4981_v48 = vld [vmem:[#allocation3 + $0x598] ss:$8 sps:$4 sm:$0xff]  }
 0xfae   :  { %v4505_v61 = vpop.f32.mrb[187].mxu0 }
 0xfaf   :  { %v4983_v61 = vld [vmem:[#allocation3 + $0x5a8] ss:$8 sps:$4 sm:$0xff]  }
 0xfb3   :  { %v3687_v51 = vpop.f32.mrb[188].mxu0 }
 0xfb4   :  { %v4508_v58 = vpop.f32.mrb[189].mxu0 }
 0xfb5   :  { %v3690_v44 = vpop.f32.mrb[190].mxu0  ;;  %v4985_v58 = vld [vmem:[#allocation3 + $0x5b8] ss:$8 sps:$4 sm:$0xff]  }
 0xfb6   :  { %v4509_v1 = vpop.f32.mrb[191].mxu0 }
 0xfb7   :  { %v4987_v1 = vld [vmem:[#allocation3 + $0x5c8] ss:$8 sps:$4 sm:$0xff]  }
 0xfbb   :  { %v3695_v5 = vpop.f32.mrb[192].mxu0 }
 0xfbc   :  { %v4512_v46 = vpop.f32.mrb[193].mxu0 }
 0xfbd   :  { %v3698_v22 = vpop.f32.mrb[194].mxu0  ;;  %v4989_v46 = vld [vmem:[#allocation3 + $0x5d8] ss:$8 sps:$4 sm:$0xff]  }
 0xfbe   :  { %v4663_v47 = vpack.i.bf16 %v3682_v0, %v3698_v22  ;;  %v4513_v17 = vpop.f32.mrb[195].mxu0  ;;  %v4982_v0 = vld [vmem:[#allocation3 + $0x518] ss:$8 sps:$4 sm:$0xff]  }
 0xfbf   :  { %v4990_v22 = vld [vmem:[#allocation3 + $0x558] ss:$8 sps:$4 sm:$0xff]   ;;  %v4992_v17 = vld [vmem:[#allocation3 + $0x568] ss:$8 sps:$4 sm:$0xff]  }
 0xfc0   :  { %4664 = vrot.lane.b32.xlu0 %v4663_v47, %s5032_s7  ;;  %v4991_v47 = vld [vmem:[#allocation3 + $0x5e8] ss:$8 sps:$4 sm:$0xff]  }
 0xfc3   :  { %v3703_v11 = vpop.f32.mrb[196].mxu0 }
 0xfc4   :  { %v4668_v40 = vpack.i.bf16 %v3687_v51, %v3703_v11  ;;  %v4516_v8 = vpop.f32.mrb[197].mxu0  ;;  %v4984_v51 = vld [vmem:[#allocation3 + $0x528] ss:$8 sps:$4 sm:$0xff]  }
 0xfc5   :  { %v3706_v32 = vpop.f32.mrb[198].mxu0 }
 0xfc6   :  { %v4673_v10 = vpack.i.bf16 %v3690_v44, %v3706_v32  ;;  %4669 = vrot.lane.b32.xlu1 %v4668_v40, %s5034_s9  ;;  %v4517_v38 = vpop.f32.mrb[199].mxu0  ;;  %v4986_v44 = vld [vmem:[#allocation3 + $0x538] ss:$8 sps:$4 sm:$0xff]  }
 0xfc8   :  { %4674 = vrot.lane.b32.xlu0 %v4673_v10, %s5036_s11 }
 0xfcb   :  { %v3711_v62 = vpop.f32.mrb[200].mxu0 }
 0xfcc   :  { %v4520_v3 = vpop.f32.mrb[201].mxu0  ;;  %v3749_v52 = vpack.c.bf16 %v3711_v62, %v3711_v62 }
 0xfcd   :  { %v3714_v30 = vpop.f32.mrb[202].mxu0 }
 0xfce   :  { %v4521_v16 = vpop.f32.mrb[203].mxu0 }
0x1032   :  { %v4665_v59 = vpop.permute.xlu0 %4664 }
0x1033   :  { %v4667_v42 = vunpack.i.h.bf16 %v4665_v59  ;;  %v4666_v55 = vunpack.i.l.bf16 %v4665_v59 }
0x1035   :  { %v3741_v19 = vsel %vm1758_vm3, %v3679_v50, %v4667_v42  ;;  %v3744_v2 = vsel %vm1758_vm3, %v3695_v5, %v4666_v55  ;;  %v4980_v50 = vld [vmem:[#allocation3 + $0x508] ss:$8 sps:$4 sm:$0xff]   ;;  %v4993_v55 = vld [vmem:[#allocation3 + $0x5f8] ss:$8 sps:$4 sm:$0xff]  }
0x1036   :  { %v4988_v5 = vld [vmem:[#allocation3 + $0x548] ss:$8 sps:$4 sm:$0xff]  }
0x1038   :  { %v4670_v15 = vpop.permute.xlu1 %4669 }
0x1039   :  { %v4672_v9 = vunpack.i.h.bf16 %v4670_v15  ;;  %v4671_v54 = vunpack.i.l.bf16 %v4670_v15  ;;  %v4994_v15 = vld [vmem:[#allocation3 + $0x608] ss:$8 sps:$4 sm:$0xff]  }
0x103a   :  { %v4675_v33 = vpop.permute.xlu0 %4674 }
0x103b   :  { %v3742_v7 = vsel %vm1566_vm1, %v3741_v19, %v4672_v9  ;;  %v3745_v14 = vsel %vm1566_vm1, %v3744_v2, %v4671_v54  ;;  %v4677_v37 = vunpack.i.h.bf16 %v4675_v33  ;;  %v4676_v24 = vunpack.i.l.bf16 %v4675_v33  ;;  %v4995_v9 = vld [vmem:[#allocation3 + $0x618] ss:$8 sps:$4 sm:$0xff]   ;;  %v4996_v54 = vld [vmem:[#allocation3 + $0x628] ss:$8 sps:$4 sm:$0xff]  }
0x103c   :  { %v4997_v19 = vld [vmem:[#allocation3 + $0x638] ss:$8 sps:$4 sm:$0xff]   ;;  %v4998_v2 = vld [vmem:[#allocation3 + $0x648] ss:$8 sps:$4 sm:$0xff]  }
0x103d   :  { %v3743_v26 = vsel %vm1769_vm6, %v3742_v7, %v4677_v37  ;;  %v3746_v60 = vsel %vm1769_vm6, %v3745_v14, %v4676_v24  ;;  %v4999_v33 = vld [vmem:[#allocation3 + $0x658] ss:$8 sps:$4 sm:$0xff]   ;;  %v5000_v7 = vld [vmem:[#allocation3 + $0x668] ss:$8 sps:$4 sm:$0xff]  }
0x103e   :  { %v3747_v13 = vpack.c.bf16 %v3743_v26, %v3743_v26  ;;  %v3748_v18 = vpack.c.bf16 %v3746_v60, %v3746_v60 }
0x1040   :  { %3785 = vmatprep.mubr.bf16.mxu0 %v3748_v18 }
0x1041   :  { %3786 = vmatmul.mubr.bf16.vlgmr.msra.gmra.mrb[204].mxu0 %v3747_v13 }
0x1042   :  { %4523 = vmatpush3.bf16.msra.mxu0 %v4973_v6  ;;  %4526 = vmatprep.mubr.msk.bf16.mxu0 %vm5030_vm0, %v5999_v57 }
0x1043   :  { %4524 = vmatprep.subr.bf16.mxu0 %v5999_v57 }
0x1046   :  { %4525 = vmatpush3.bf16.msra.mxu0 %v4974_v34 }
0x1049   :  { %4527 = vmatmul.mubr.msk.bf16.vlgmr.msra.gmra.mrb[208].mxu0 %vm1758_vm3, %v3749_v52 }
0x104a   :  { %4532 = vmatprep.mubr.msk.bf16.mxu0 %vm2227_vm8, %v4975_v23 }
0x1114   :  { %v4313_v31 = vpop.f32.mrb[204].mxu0 }
0x1115   :  { %v4314_v36 = vpop.f32.mrb[205].mxu0 }
0x1116   :  { %v4315_v45 = vadd.f32 %v4314_v36, %v4313_v31  ;;  %v4316_v53 = vpop.f32.mrb[206].mxu0 }
0x1117   :  { %v4317_v29 = vpop.f32.mrb[207].mxu0 }
0x111c   :  { %v3827_v28 = vpop.f32.mrb[208].mxu0 }
0x111d   :  { %v3828_v20 = vadd.f32 %v4315_v45, %v3827_v28  ;;  %v4528_v43 = vpop.f32.mrb[209].mxu0 }
0x111e   :  { %v3830_v21 = vpop.f32.mrb[210].mxu0 }
0x111f   :  { %v3833_v41 = vmul.f32 0.2, %v3828_v20  ;;  %v4529_v4 = vpop.f32.mrb[211].mxu0 }
0x1121   :  { %v3834_v63 = vmax.f32 %v3828_v20, %v3833_v41 }
0x1123   :  { %v3835_v25 = vpack.c.bf16 %v3834_v63, %v3834_v63 }
0x1125   :  { %4557 = vmatprep.subr.msk.bf16.mxu0 %vm2234_vm9, %v3835_v25  ;;  %v3837_v27 = vsel %vm2234_vm9, %v3835_v25, 0 }
0x1126   :  { %4531 = vmatpush3.bf16.msra.mxu0 %v3837_v27 }
0x1127   :  { %4325 = vmatprep.subr.bf16.mxu0 %v4976_v49 }
0x1129   :  { %4533 = vmatmul.mubr.msk.bf16.vlgmr.msra.gmra.mrb[212].mxu0 %vm2227_vm8, %v4977_v35 }
0x112a   :  { %4326 = vmatpush3.bf16.msra.mxu0 %v4978_v12 }
0x112b   :  { %4327 = vmatprep.subr.bf16.mxu0 %v4979_v56 }
0x112e   :  { %4328 = vmatpush3.bf16.msra.mxu0 %v4980_v50 }
0x112f   :  { %4329 = vmatprep.subr.bf16.mxu0 %v4981_v48 }
0x1132   :  { %4330 = vmatpush3.bf16.msra.mxu0 %v4982_v0 }
0x1133   :  { %4331 = vmatprep.subr.bf16.mxu0 %v4983_v61 }
0x1136   :  { %4332 = vmatpush3.bf16.msra.mxu0 %v4984_v51 }
0x1137   :  { %4333 = vmatprep.subr.bf16.mxu0 %v4985_v58 }
0x113a   :  { %4334 = vmatpush3.bf16.msra.mxu0 %v4986_v44 }
0x113b   :  { %4335 = vmatprep.subr.bf16.mxu0 %v4987_v1 }
0x113e   :  { %4336 = vmatpush3.bf16.msra.mxu0 %v4988_v5 }
0x113f   :  { %4337 = vmatprep.subr.bf16.mxu0 %v4989_v46 }
0x1142   :  { %4338 = vmatpush3.bf16.msra.mxu0 %v4990_v22 }
0x1143   :  { %4339 = vmatprep.subr.bf16.mxu0 %v4991_v47 }
0x1146   :  { %4340 = vmatpush3.bf16.msra.mxu0 %v4992_v17 }
0x1147   :  { %4536 = vmatprep.subr.bf16.mxu0 %v5999_v57 }
0x11fc   :  { %v4534_v11 = vpop.f32.mrb[212].mxu0 }
0x11fd   :  { %v3873_v40 = vpop.f32.mrb[213].mxu0 }
0x11fe   :  { %v4535_v8 = vpop.f32.mrb[214].mxu0 }
0x11ff   :  { %v3876_v32 = vpop.f32.mrb[215].mxu0 }
0x1200   :  { %v4678_v10 = vpack.i.bf16 %v3876_v32, %v4535_v8 }
0x1202   :  { %4679 = vrot.lane.b32.xlu1 %v4678_v10, %s5034_s9 }
0x1274   :  { %v4680_v38 = vpop.permute.xlu1 %4679 }
0x1275   :  { %v4682_v62 = vunpack.i.h.bf16 %v4680_v38  ;;  %v4681_v3 = vunpack.i.l.bf16 %v4680_v38 }
0x1277   :  { %v3896_v30 = vsel %vm1566_vm1, %v3873_v40, %v4682_v62  ;;  %v3897_v16 = vsel %vm1566_vm1, %v4534_v11, %v4681_v3 }
0x1278   :  { %v3898_v59 = vpack.c.bf16 %v3896_v30, %v3896_v30  ;;  %v3899_v42 = vpack.c.bf16 %v3897_v16, %v3897_v16 }
0x127a   :  { %3932 = vmatprep.mubr.bf16.mxu0 %v3899_v42 }
0x127b   :  { %3933 = vmatmul.mubr.bf16.vlgmr.msra.gmra.mrb[216].mxu0 %v3898_v59 }
0x127c   :  { %4537 = vmatpush3.bf16.msra.mxu0 %v4993_v55  ;;  %4552 = vmatprep.mubr.msk.bf16.mxu0 %vm5030_vm0, %v5999_v57 }
0x127d   :  { %4538 = vmatprep.subr.bf16.mxu0 %v5999_v57 }
0x1280   :  { %4539 = vmatpush3.bf16.msra.mxu0 %v4994_v15 }
0x1281   :  { %4540 = vmatprep.subr.bf16.mxu0 %v5999_v57 }
0x1284   :  { %4541 = vmatpush3.bf16.msra.mxu0 %v4995_v9 }
0x1285   :  { %4542 = vmatprep.subr.bf16.mxu0 %v5999_v57 }
0x1288   :  { %4543 = vmatpush3.bf16.msra.mxu0 %v4996_v54 }
0x1289   :  { %4544 = vmatprep.subr.bf16.mxu0 %v5999_v57 }
0x128c   :  { %4545 = vmatpush3.bf16.msra.mxu0 %v4997_v19 }
0x128d   :  { %4546 = vmatprep.subr.bf16.mxu0 %v5999_v57 }
0x1290   :  { %4547 = vmatpush3.bf16.msra.mxu0 %v4998_v2 }
0x1291   :  { %4548 = vmatprep.subr.bf16.mxu0 %v5999_v57 }
0x1294   :  { %4549 = vmatpush3.bf16.msra.mxu0 %v4999_v33 }
0x1295   :  { %4550 = vmatprep.subr.bf16.mxu0 %v5999_v57 }
0x1298   :  { %4551 = vmatpush3.bf16.msra.mxu0 %v5000_v7 }
0x134e   :  { %v4341_v14 = vpop.f32.mrb[216].mxu0 }
0x134f   :  { %v4342_v37 = vpop.f32.mrb[217].mxu0 }
0x1350   :  { %v4343_v24 = vadd.f32 %v4342_v37, %v4341_v14  ;;  %v4344_v26 = vpop.f32.mrb[218].mxu0 }
0x1351   :  { %v4345_v60 = vpop.f32.mrb[219].mxu0 }
0x1352   :  { %v3940_v13 = vmul.f32 0.2, %v4343_v24 }
0x1354   :  { %v3941_v18 = vmax.f32 %v4343_v24, %v3940_v13 }
0x1356   :  { %v3942_v6 = vpack.c.bf16 %v3941_v18, %v3941_v18 }
0x1358   :  { %4553 = vmatmul.mubr.bf16.vlgmr.msra.gmra.mrb[220].mxu0 %v3942_v6 }
0x142b   :  { %v3977_v52 = vpop.f32.mrb[220].mxu0 }
0x142c   :  { %v3978_v34 = vadd.f32 %v3977_v52, %v2438_v39  ;;  %v4554_v23 = vpop.f32.mrb[221].mxu0 }
0x142d   :  { %v3980_v31 = vpop.f32.mrb[222].mxu0 }
0x142e   :  { %v3983_v57 = vmul.f32 0.5, %v3978_v34  ;;  %v4555_v36 = vpop.f32.mrb[223].mxu0 }
0x1430   :  { %4860 = vtanh.f32 %v3983_v57 }
0x143a   :  { %v4861_v45 = vpop.eup %4860 }
0x143b   :  { %v3985_v53 = vadd.f32 1.0, %v4861_v45 }
0x143d   :  { %v3986_v29 = vmul.f32 0.5, %v3985_v53 }
0x143f   :  { %3987 = vst.msk [vmem:[%s5964_s3 + $0x1] sm:$0x1] %vm2531_vm10, %v3986_v29 }
0x1440   :  { %3992 = vsyncpa [#allocation4], 1 }

</bundles_post_ra>
